<compile_context>
chip_gen: v6e
topology: v6e:2x2x1
jax: 0.10.0
libtpu: 0.0.40
codegen_flags: <defaults>
</compile_context>

<pallas_src>
import functools

import jax
import jax.numpy as jnp
from jax import lax
from jax.experimental import pallas as pl
from jax.experimental.pallas import tpu as pltpu


def _round_up(v, m):
    return ((v + m - 1) // m) * m


# ---------------------------------------------------------------------------
# Kernels. Grid is (M-tiles, N-tiles, K-tiles) with the K (reduction) axis
# innermost and marked "arbitrary"; the output block's index_map ignores k,
# so the out tile stays resident in VMEM across the whole reduction.
# NOTE: the direct `o_ref[...] +=` accumulation in the f32 kernel is only
# correct under exactly this grid layout -- do not reorder the grid axes.
# ---------------------------------------------------------------------------
def _mm_kernel_f32(x_ref, w_ref, o_ref, *, precision):
    @pl.when(pl.program_id(2) == 0)
    def _():
        o_ref[...] = jnp.zeros_like(o_ref)

    o_ref[...] += jnp.dot(
        x_ref[...], w_ref[...],
        preferred_element_type=jnp.float32, precision=precision)


def _mm_kernel_acc(x_ref, w_ref, o_ref, acc_ref, *, precision):
    # Non-f32 outputs (e.g. bf16): accumulate in f32 VMEM scratch, cast once.
    @pl.when(pl.program_id(2) == 0)
    def _():
        acc_ref[...] = jnp.zeros_like(acc_ref)

    acc_ref[...] += jnp.dot(
        x_ref[...], w_ref[...],
        preferred_element_type=jnp.float32, precision=precision)

    @pl.when(pl.program_id(2) == pl.num_programs(2) - 1)
    def _():
        o_ref[...] = acc_ref[...].astype(o_ref.dtype)


# ---------------------------------------------------------------------------
# Tile selection.  M/N are NEVER padded: the grid uses pl.cdiv and the exact
# (M, N) out_shape, so edge blocks are handled by Pallas masking.  Only the
# reduction axis K is ever zero-padded (required for correctness), and tk is
# chosen to make that padding (near) zero.
# ---------------------------------------------------------------------------
def _pick_mn(dim, align):
    if dim >= 2048:
        return 1024          # bigger output tile -> 2x arithmetic intensity
    if dim >= 512:
        return 512
    return _round_up(dim, align)   # single (masked) block for small dims


def _pick_tk(K, gm, gn, tk_max=1024):
    single_block = (gm * gn) == 1
    if K <= tk_max and not (single_block and K >= 512):
        # Full-K block: legal even when K isn't 128-aligned (block dim == array dim).
        return K, K
    limit = tk_max
    if single_block and K >= 512:
        # No M/N pipelining available -> force >=2 K steps so input DMAs overlap compute.
        limit = min(tk_max, max(128, _round_up(pl.cdiv(K, 2), 128)))
    best = None
    for tk in range(128, limit + 1, 128):
        kp = _round_up(K, tk)
        key = (kp - K, -tk)          # minimize K padding, then prefer larger tk
        if best is None or key < best[0]:
            best = (key, tk, kp)
    return best[1], best[2]


def mm(x, w, *, tm=None, tn=None, tk_max=1024, precision=lax.Precision.HIGHEST):
    """out = x @ w  (torch.mm equivalent). precision pins MXU numerics; pass
    bf16 inputs (or precision=lax.Precision.DEFAULT) for the fast MXU path."""
    M, K = x.shape
    K2, N = w.shape
    assert K == K2, "inner dimensions must match"
    out_dtype = jnp.result_type(x.dtype, w.dtype)
    if x.dtype != out_dtype:
        x = x.astype(out_dtype)
    if w.dtype != out_dtype:
        w = w.astype(out_dtype)

    # --- M/N tiles (8 / 128 aligned); no padding, edges masked by Pallas. ---
    tm = _pick_mn(M, 8) if tm is None else min(_round_up(tm, 8), _round_up(M, 8))
    tn = _pick_mn(N, 128) if tn is None else min(_round_up(tn, 128), _round_up(N, 128))

    # v7x megacore: ensure >=2 parallel output blocks for big problems so both
    # TensorCores get work (prefer splitting M to keep stores lane-dense).
    if pl.cdiv(M, tm) * pl.cdiv(N, tn) == 1 and M * N >= 512 * 512:
        if M >= 256:
            tm = _round_up(pl.cdiv(M, 2), 128)
        elif N >= 256:
            tn = _round_up(pl.cdiv(N, 2), 128)

    gm, gn = pl.cdiv(M, tm), pl.cdiv(N, tn)

    # --- K tile: only the reduction axis ever gets zero-padded. ---
    tk, Kp = _pick_tk(K, gm, gn, tk_max)
    if Kp != K:
        x = jnp.pad(x, ((0, 0), (0, Kp - K)))
        w = jnp.pad(w, ((0, Kp - K), (0, 0)))
    gk = Kp // tk

    f32_out = jnp.dtype(out_dtype) == jnp.dtype(jnp.float32)
    if f32_out:
        kernel = functools.partial(_mm_kernel_f32, precision=precision)
        scratch = []
    else:
        kernel = functools.partial(_mm_kernel_acc, precision=precision)
        scratch = [pltpu.VMEM((tm, tn), jnp.float32)]

    in_itemsize = x.dtype.itemsize
    out_itemsize = jnp.dtype(out_dtype).itemsize
    tile_bytes = (2 * (tm * tk + tk * tn) * in_itemsize
                  + 2 * tm * tn * out_itemsize
                  + (0 if f32_out else tm * tn * 4))
    # Keep the request well under v7x's 64 MiB/core VMEM (also fine on v5e/v6e).
    vmem_limit = int(min(max(2 * tile_bytes, 32 * 1024 * 1024), 48 * 1024 * 1024))

    # HBM traffic: x re-read once per N-tile, w once per M-tile, out written once.
    bytes_io = (M * Kp * gn * in_itemsize
                + Kp * N * gm * in_itemsize
                + M * N * out_itemsize)

    return pl.pallas_call(
        kernel,
        out_shape=jax.ShapeDtypeStruct((M, N), out_dtype),
        grid_spec=pltpu.PrefetchScalarGridSpec(
            num_scalar_prefetch=0,
            grid=(gm, gn, gk),
            in_specs=[
                pl.BlockSpec((tm, tk), lambda i, j, k: (i, k)),
                pl.BlockSpec((tk, tn), lambda i, j, k: (k, j)),
            ],
            out_specs=pl.BlockSpec((tm, tn), lambda i, j, k: (i, j)),
            scratch_shapes=scratch,
        ),
        compiler_params=pltpu.CompilerParams(
            dimension_semantics=("parallel", "parallel", "arbitrary"),
            vmem_limit_bytes=vmem_limit,
        ),
        cost_estimate=pl.CostEstimate(
            flops=2 * M * N * Kp, transcendentals=0, bytes_accessed=bytes_io),
    )(x, w)


class Model:
    """JAX/Pallas equivalent of the PyTorch Model: forward(x) = x @ weight."""

    def __init__(self, weight):
        self.weight = weight

    def __call__(self, x):
        return mm(x, self.weight)


if __name__ == "__main__":
    key = jax.random.PRNGKey(0)
    k1, k2, k3, k4 = jax.random.split(key, 4)

    # Case 1: small, non-128-aligned shapes -> masked edge blocks, full-K tile,
    # no padding anywhere (matches the module's forward: out = x @ weight).
    M, K, N = 100, 200, 300
    x = jax.random.normal(k1, (M, K), dtype=jnp.float32)
    weight = jax.random.normal(k2, (K, N), dtype=jnp.float32)
    model = Model(weight)
    out = jax.block_until_ready(model(x))
    ref = jnp.dot(x, weight, precision=lax.Precision.HIGHEST)
    assert out.shape == (M, N)
    assert jnp.allclose(out, ref, atol=2e-2, rtol=1e-3), float(jnp.max(jnp.abs(out - ref)))

    # Case 2: K split across the reduction grid axis (2 K-steps, zero K padding).
    M2, K2, N2 = 256, 1280, 512
    x2 = jax.random.normal(k3, (M2, K2), dtype=jnp.float32)
    w2 = jax.random.normal(k4, (K2, N2), dtype=jnp.float32)
    out2 = jax.block_until_ready(mm(x2, w2))
    ref2 = jnp.dot(x2, w2, precision=lax.Precision.HIGHEST)
    assert out2.shape == (M2, N2)
    assert jnp.allclose(out2, ref2, atol=2e-2, rtol=1e-3), float(jnp.max(jnp.abs(out2 - ref2)))

    # Case 3: bf16 inputs -> native MXU path with f32 accumulation scratch.
    x3 = x2.astype(jnp.bfloat16)
    w3 = w2.astype(jnp.bfloat16)
    out3 = jax.block_until_ready(mm(x3, w3))
    ref3 = jnp.dot(x3.astype(jnp.float32), w3.astype(jnp.float32),
                   precision=lax.Precision.HIGHEST)
    assert out3.shape == (M2, N2) and out3.dtype == jnp.bfloat16
    err3 = float(jnp.max(jnp.abs(out3.astype(jnp.float32) - ref3)))
    assert err3 < 1.0, err3

    print("KERNEL_OK")
</pallas_src>

<mosaic_0001>
module attributes {stable_mosaic.version = 11 : i64} {
  func.func @_mm_kernel_f32(%arg0: i32, %arg1: i32, %arg2: i32, %arg3: memref<104x200xf32, #tpu.memory_space<vmem>>, %arg4: memref<200x384xf32, #tpu.memory_space<vmem>>, %arg5: memref<104x384xf32, #tpu.memory_space<vmem>>) attributes {dimension_semantics = [#tpu.dimension_semantics<parallel>, #tpu.dimension_semantics<parallel>, #tpu.dimension_semantics<arbitrary>], iteration_bounds = array<i64: 1, 1, 1>, scalar_prefetch = 0 : i64, scratch_operands = 0 : i64, tpu.core_type = #tpu.core_type<tc>, window_params = [{transform_indices = @transform_0, window_bounds = array<i64: 104, 200>}, {transform_indices = @transform_1, window_bounds = array<i64: 200, 384>}, {transform_indices = @transform_2, window_bounds = array<i64: 104, 384>}]} {
    %c0_i32 = arith.constant 0 : i32
    %0 = arith.cmpi eq, %arg2, %c0_i32 : i32
    %1 = arith.extui %0 : i1 to i32
    %c0_i32_0 = arith.constant 0 : i32
    %2 = arith.cmpi ne, %1, %c0_i32_0 : i32
    scf.if %2 {
      %cst_8 = arith.constant 0.000000e+00 : f32
      %9 = vector.broadcast %cst_8 : f32 to vector<104x384xf32>
      %c0_9 = arith.constant 0 : index
      %c0_10 = arith.constant 0 : index
      %10 = vector.load %arg5[%c0_9, %c0_10] : memref<104x384xf32, #tpu.memory_space<vmem>>, vector<104x384xf32>
      tpu.vector_store %arg5[%c0_9, %c0_10], %9 {strides = array<i32>} : memref<104x384xf32, #tpu.memory_space<vmem>>, vector<104x384xf32>,
    } else {
    }
    %c0 = arith.constant 0 : index
    %c0_1 = arith.constant 0 : index
    %3 = vector.load %arg5[%c0, %c0_1] : memref<104x384xf32, #tpu.memory_space<vmem>>, vector<104x384xf32>
    %c0_2 = arith.constant 0 : index
    %c0_3 = arith.constant 0 : index
    %4 = vector.load %arg3[%c0_2, %c0_3] : memref<104x200xf32, #tpu.memory_space<vmem>>, vector<104x200xf32>
    %c0_4 = arith.constant 0 : index
    %c0_5 = arith.constant 0 : index
    %5 = vector.load %arg4[%c0_4, %c0_5] : memref<200x384xf32, #tpu.memory_space<vmem>>, vector<200x384xf32>
    %cst = arith.constant dense<0.000000e+00> : vector<104x384xf32>
    %6 = tpu.matmul %4, %5, %cst {dimension_numbers = #tpu.dot_dimension_numbers<[1], [0], [0], [1], [0, 0, 1, 1], [], []>, precision = #tpu.contract_precision<fp32>} : vector<104x200xf32>, vector<200x384xf32>, vector<104x384xf32> -> vector<104x384xf32>
    %7 = arith.addf %3, %6 : vector<104x384xf32>
    %c0_6 = arith.constant 0 : index
    %c0_7 = arith.constant 0 : index
    %8 = vector.load %arg5[%c0_6, %c0_7] : memref<104x384xf32, #tpu.memory_space<vmem>>, vector<104x384xf32>
    tpu.vector_store %arg5[%c0_6, %c0_7], %7 {strides = array<i32>} : memref<104x384xf32, #tpu.memory_space<vmem>>, vector<104x384xf32>,
    return
  }
  func.func @transform_0(%arg0: i32, %arg1: i32, %arg2: i32) -> (i32, i32) {
    %c0_i32 = arith.constant 0 : i32
    return %arg0, %arg2 : i32, i32
  }
  func.func @transform_1(%arg0: i32, %arg1: i32, %arg2: i32) -> (i32, i32) {
    %c0_i32 = arith.constant 0 : i32
    return %arg2, %arg1 : i32, i32
  }
  func.func @transform_2(%arg0: i32, %arg1: i32, %arg2: i32) -> (i32, i32) {
    %c0_i32 = arith.constant 0 : i32
    return %arg0, %arg1 : i32, i32
  }
}

</mosaic_0001>

<bundles_post_ra>
// kernel: tpu_custom_call.1
= control target key start
LH: loop header
LB: loop body
LE: loop exit
PB: predicated region body
PF: predicated region fallthrough
CT: control target
= control target key end

     0   :  { %7 = vsyncpa [#allocation3], 0  ;;  %s3646_s9 = smov [#allocation2]   ;;  %s6251_s0 = inlined_call_operand.vmem [shape: f32[100,200], index: 0, kind: input, shape index: {}]   ;;  %s6252_s1 = inlined_call_operand.hbm [shape: f32[200,300], index: 1, kind: input, shape index: {}]   ;;  %s6253_s2 = inlined_call_operand.vmem [shape: f32[100,300], index: 2, kind: output, shape index: {}]  }
   0x1   :  { %s15_s10 = sshll.u32 %s3646_s9, 4  ;;  %s16_s10 = int_to_ptr.vmem [resolvable:$true] %s15_s10 }
   0x2   :  { %s3632_s11 = scalar_lea.vmem %s16_s10, 9600  ;;  %p3637_p1 = scmp.lt.s32.totalorder %s16_s10, %s16_s10 }
   0x3   :  { %p3633_p0 = scmp.ne.s32.totalorder %s16_s10, %s3632_s11  ;;  %p3638_p2 = scmp.lt.s32.totalorder %s3632_s11, %s3632_s11 }
   0x5   :  { %p3639_p3 = por %p3638_p2, %p3637_p1 }
   0x7   :  { %p3640_p4 = pnand %p3639_p3, %p3633_p0 }
   0x9   :  { %3643 = shalt.err (!%p3640_p4)
}
   0xa   :  { %s3647_s12 = smov 384   ;;  %s3648_s13 = smov 24  }
   0xb   :  { %21 = dma.hbm_to_vmem [thread:$0]  %s6252_s1, 9600, %s16_s10, [#allocation3], %s3647_s12, %s3647_s12, %s3648_s13  }
   0xc   :  { %3644 = dma.done.wait [#allocation3], 9600  }
   0xd   :  { %3645 = vsyncadd [#allocation3], 4294957696  ;;  %v179_v0 = vld [vmem:[#allocation2 + $0x170] sm:$0xff]  ;;  %v178_v1 = vld [vmem:[#allocation2 + $0x168] sm:$0xff]  ;;  %vm208_vm0 = vcmask 588800  }
   0xe   :  { %v176_v2 = vld [vmem:[#allocation2 + $0x158] sm:$0xff]  ;;  %v3668_v3 = vand.u32 4294901760, %v179_v0  ;;  %v3670_v4 = vand.u32 4294901760, %v178_v1  ;;  %v175_v6 = vld [vmem:[#allocation2 + $0x150] sm:$0xff]  ;;  %v173_v7 = vld [vmem:[#allocation2 + $0x140] sm:$0xff] }
   0xf   :  { %v3672_v5 = vand.u32 4294901760, %v176_v2  ;;  %v172_v8 = vld [vmem:[#allocation2 + $0x138] sm:$0xff]  ;;  %v3674_v9 = vand.u32 4294901760, %v175_v6  ;;  %v3676_v10 = vand.u32 4294901760, %v173_v7  ;;  %v170_v12 = vld [vmem:[#allocation2 + $0x128] sm:$0xff]  ;;  %v169_v13 = vld [vmem:[#allocation2 + $0x120] sm:$0xff] }
  0x10   :  { %v3678_v11 = vand.u32 4294901760, %v172_v8  ;;  %v167_v14 = vld [vmem:[#allocation2 + $0x110] sm:$0xff]  ;;  %249 = vmatprep.subr.mxu0 %v3668_v3  ;;  %v3681_v15 = vand.u32 4294901760, %v170_v12  ;;  %v3683_v16 = vand.u32 4294901760, %v169_v13  ;;  %v3688_v18 = vsub.f32 %v179_v0, %v3668_v3  ;;  %v3690_v19 = vld [vmem:[#allocation2 + $0x108] sm:$0xff]  ;;  %v3692_v20 = vld [vmem:[#allocation2 + $0xf8] sm:$0xff] }
  0x11   :  { %v3685_v17 = vand.u32 4294901760, %v167_v14  ;;  %v3694_v21 = vld [vmem:[#allocation2 + $0xf0] sm:$0xff]  ;;  %251 = vmatpush1.msra.mxu0 %v3670_v4  ;;  %v3698_v22 = vand.u32 4294901760, %v3690_v19  ;;  %v3701_v23 = vsub.f32 %v178_v1, %v3670_v4  ;;  %v3704_v24 = vand.u32 4294901760, %v3692_v20  ;;  %v3709_v26 = vld [vmem:[#allocation2 + $0xe0] sm:$0xff]  ;;  %v3711_v27 = vld [vmem:[#allocation2 + $0xd8] sm:$0xff] }
  0x12   :  { %6660 = vst [vmem:[#allocation5_spill] sm:$0xff] %v3688_v18  ;;  %v3707_v25 = vsub.f32 %v176_v2, %v3672_v5  ;;  %v3713_v28 = vld [vmem:[#allocation2 + $0xc8] sm:$0xff]  ;;  %253 = vmatprep.subr.mxu0 %v3672_v5  ;;  %v6267_v29 = vand.u32 4294901760, %v3688_v18  ;;  %v3718_v30 = vand.u32 4294901760, %v3694_v21  ;;  %v3721_v31 = vsub.f32 %v175_v6, %v3674_v9  ;;  %v3735_v37 = vld [vmem:[#allocation2 + $0xc0] sm:$0xff]  ;;  %v3759_v46 = vld [vmem:[#allocation2 + $0xb0] sm:$0xff] }
  0x13   :  { %6661 = vst [vmem:[#allocation6_spill] sm:$0xff] %v3704_v24  ;;  %v3724_v32 = vand.u32 4294901760, %v3709_v26  ;;  %255 = vmatpush1.msra.mxu0 %v3674_v9  ;;  %v6265_v33 = vand.u32 4294901760, %v3701_v23  ;;  %v3730_v35 = vsub.f32 %v173_v7, %v3676_v10  ;;  %v3733_v36 = vand.u32 4294901760, %v3711_v27  ;;  %v3769_v51 = vld [vmem:[#allocation2 + $0xa8] sm:$0xff]  ;;  %v3776_v56 = vld [vmem:[#allocation2 + $0x98] sm:$0xff] }
  0x14   :  { %6662 = vst [vmem:[#allocation7_spill] sm:$0xff] %v3707_v25  ;;  %6663 = vst [vmem:[#allocation8_spill] sm:$0xff] %v3718_v30  ;;  %v6264_v34 = vand.u32 4294901760, %v3707_v25  ;;  %257 = vmatprep.subr.mxu0 %v3676_v10  ;;  %v574_v38 = vsub.f32 %v3688_v18, %v6267_v29  ;;  %v6262_v39 = vand.u32 4294901760, %v3721_v31  ;;  %v3743_v40 = vsub.f32 %v172_v8, %v3678_v11  ;;  %v3788_v61 = vld [vmem:[#allocation2 + $0x90] sm:$0xff]  ;;  %v3800_v2 = vld [vmem:[#allocation2 + $0x80] sm:$0xff] }
  0x15   :  { %6664 = vst [vmem:[#allocation9_spill] sm:$0xff] %v3721_v31  ;;  %6665 = vst [vmem:[#allocation10_spill] sm:$0xff] %v3724_v32  ;;  %v3746_v41 = vand.u32 4294901760, %v3713_v28  ;;  %259 = vmatpush1.msra.mxu0 %v3678_v11  ;;  %v580_v42 = vsub.f32 %v3701_v23, %v6265_v33  ;;  %v6260_v44 = vand.u32 4294901760, %v3730_v35  ;;  %v3757_v45 = vsub.f32 %v170_v12, %v3681_v15 }
  0x16   :  { %6666 = vst [vmem:[#allocation11_spill] sm:$0xff] %v3730_v35  ;;  %6667 = vst [vmem:[#allocation12_spill] sm:$0xff] %v3733_v36  ;;  %v586_v43 = vsub.f32 %v3707_v25, %v6264_v34  ;;  %261 = vmatprep.subr.mxu0 %v3681_v15  ;;  %v575_v47 = vand.u32 4294901760, %v574_v38  ;;  %v592_v48 = vsub.f32 %v3721_v31, %v6262_v39  ;;  %v6259_v49 = vand.u32 4294901760, %v3743_v40  ;;  %v3891_v39 = vld [vmem:[#allocation2 + $0x38] sm:$0xff]  ;;  %v3901_v34 = vld [vmem:[#allocation2 + $0x30] sm:$0xff] }
  0x17   :  { %6668 = vst [vmem:[#allocation13_spill] sm:$0xff] %v3743_v40  ;;  %6669 = vst [vmem:[#allocation14_spill] sm:$0xff] %v3746_v41  ;;  %v3767_v50 = vand.u32 4294901760, %v3735_v37  ;;  %263 = vmatpush1.msra.mxu0 %v3683_v16  ;;  %v581_v52 = vand.u32 4294901760, %v580_v42  ;;  %v598_v54 = vsub.f32 %v3730_v35, %v6260_v44  ;;  %v6257_v55 = vand.u32 4294901760, %v3757_v45 }
  0x18   :  { %6670 = vst [vmem:[#allocation15_spill] sm:$0xff] %v3757_v45  ;;  %v587_v53 = vand.u32 4294901760, %v586_v43  ;;  %265 = vmatprep.subr.mxu0 %v3685_v17  ;;  %576 = vmatprep.subr.mxu1 %v575_v47  ;;  %v593_v57 = vand.u32 4294901760, %v592_v48  ;;  %v604_v58 = vsub.f32 %v3743_v40, %v6259_v49  ;;  %v3783_v59 = vsub.f32 %v169_v13, %v3683_v16  ;;  %v3811_v13 = vld [vmem:[#allocation2 + $0x78] sm:$0xff]  ;;  %v3878_v49 = vld [vmem:[#allocation2 + $0x48] sm:$0xff] }
  0x19   :  { %6671 = vst [vmem:[#allocation16_spill] sm:$0xff] %v3767_v50  ;;  %v3786_v60 = vand.u32 4294901760, %v3759_v46  ;;  %267 = vmatpush1.msra.mxu0 %v3698_v22  ;;  %582 = vmatpush1.msra.mxu1 %v581_v52  ;;  %v599_v62 = vand.u32 4294901760, %v598_v54  ;;  %v610_v63 = vsub.f32 %v3757_v45, %v6257_v55  ;;  %v3795_v0 = vsub.f32 %v167_v14, %v3685_v17 }
  0x1a   :  { %6672 = vst [vmem:[#allocation17_spill] sm:$0xff] %v3783_v59  ;;  %v3798_v1 = vand.u32 4294901760, %v3769_v51  ;;  %269 = vmatprep.subr.mxu0 %v3704_v24  ;;  %588 = vmatprep.subr.mxu1 %v587_v53  ;;  %v605_v6 = vand.u32 4294901760, %v604_v58  ;;  %v6255_v7 = vand.u32 4294901760, %v3783_v59  ;;  %v3806_v8 = vsub.f32 %v3690_v19, %v3698_v22 }
  0x1b   :  { %6673 = vst [vmem:[#allocation18_spill] sm:$0xff] %v3786_v60  ;;  %6674 = vst [vmem:[#allocation19_spill] sm:$0xff] %v3795_v0  ;;  %v3809_v12 = vand.u32 4294901760, %v3776_v56  ;;  %271 = vmatpush1.msra.mxu0 %v3718_v30  ;;  %594 = vmatpush1.msra.mxu1 %v593_v57  ;;  %v611_v14 = vand.u32 4294901760, %v610_v63  ;;  %v6254_v38 = vand.u32 4294901760, %v3795_v0  ;;  %v3817_v42 = vsub.f32 %v3692_v20, %v3704_v24  ;;  %v3834_v20 = vld [vmem:[#allocation2 + $0x68] sm:$0xff] }
  0x1c   :  { %6675 = vst [vmem:[#allocation20_spill] sm:$0xff] %v3798_v1  ;;  %6676 = vst [vmem:[#allocation21_spill] sm:$0xff] %v3806_v8  ;;  %v3820_v43 = vand.u32 4294901760, %v3788_v61  ;;  %273 = vmatprep.subr.mxu0 %v3724_v32  ;;  %600 = vmatprep.subr.mxu1 %v599_v62  ;;  %v616_v19 = vsub.f32 %v3783_v59, %v6255_v7  ;;  %v6256_v47 = vand.u32 4294901760, %v3806_v8  ;;  %v3832_v52 = vand.u32 4294901760, %v3800_v2 }
  0x1d   :  { %6677 = vst [vmem:[#allocation22_spill] sm:$0xff] %v3809_v12  ;;  %v3829_v48 = vsub.f32 %v3694_v21, %v3718_v30  ;;  %275 = vmatpush1.msra.mxu0 %v3733_v36  ;;  %606 = vmatpush1.msra.mxu1 %v605_v6  ;;  %v622_v53 = vsub.f32 %v3795_v0, %v6254_v38  ;;  %v6258_v54 = vand.u32 4294901760, %v3817_v42  ;;  %v3846_v21 = vand.u32 4294901760, %v3811_v13  ;;  %v3857_v38 = vld [vmem:[#allocation2 + $0x60] sm:$0xff] }
  0x1e   :  { %6678 = vst [vmem:[#allocation23_spill] sm:$0xff] %v3820_v43  ;;  %6679 = vst [vmem:[#allocation24_spill] sm:$0xff] %v3832_v52  ;;  %v3843_v57 = vsub.f32 %v3709_v26, %v3724_v32  ;;  %277 = vmatprep.subr.mxu0 %v3746_v41  ;;  %612 = vmatprep.subr.mxu1 %v611_v14  ;;  %v617_v58 = vand.u32 4294901760, %v616_v19  ;;  %v628_v62 = vsub.f32 %v3806_v8, %v6256_v47  ;;  %v3867_v47 = vld [vmem:[#allocation2 + $0x50] sm:$0xff] }
  0x1f   :  { %6680 = vst [vmem:[#allocation25_spill] sm:$0xff] %v3846_v21  ;;  %v6261_v63 = vand.u32 4294901760, %v3829_v48  ;;  %v3855_v6 = vsub.f32 %v3711_v27, %v3733_v36  ;;  %279 = vmatpush1.msra.mxu0 %v3767_v50  ;;  %v623_v26 = vand.u32 4294901760, %v622_v53  ;;  %v634_v14 = vsub.f32 %v3817_v42, %v6258_v54  ;;  %v3981_v36 = vld [vmem:[#allocation2 + $0x248] sm:$0xff] }
  0x20   :  { %v6263_v19 = vand.u32 4294901760, %v3843_v57  ;;  %v3865_v7 = vand.u32 4294901760, %v3834_v20  ;;  %618 = vmatpush1.msra.mxu1 %v617_v58  ;;  %281 = vmatprep.subr.mxu0 %v3786_v60  ;;  %v629_v27 = vand.u32 4294901760, %v628_v62  ;;  %v3876_v54 = vsub.f32 %v3713_v28, %v3746_v41 }
  0x21   :  { %v640_v55 = vsub.f32 %v3829_v48, %v6261_v63  ;;  %v6266_v53 = vand.u32 4294901760, %v3855_v6  ;;  %624 = vmatprep.subr.mxu1 %v623_v26  ;;  %283 = vmatpush1.msra.mxu0 %v3798_v1  ;;  %v635_v44 = vand.u32 4294901760, %v634_v14  ;;  %v3885_v62 = vand.u32 4294901760, %v3857_v38 }
  0x22   :  { %6681 = vst [vmem:[#allocation26_spill] sm:$0xff] %v3865_v7  ;;  %v646_v58 = vsub.f32 %v3843_v57, %v6263_v19  ;;  %v3889_v63 = vsub.f32 %v3735_v37, %v3767_v50  ;;  %630 = vmatpush1.msra.mxu1 %v629_v27  ;;  %285 = vmatprep.subr.mxu0 %v3809_v12  ;;  %v6270_v14 = vand.u32 4294901760, %v3876_v54  ;;  %v3899_v19 = vand.u32 4294901760, %v3867_v47 }
  0x23   :  { %6682 = vst [vmem:[#allocation27_spill] sm:$0xff] %v3885_v62  ;;  %v641_v28 = vand.u32 4294901760, %v640_v55  ;;  %v652_v26 = vsub.f32 %v3855_v6, %v6266_v53  ;;  %636 = vmatprep.subr.mxu1 %v635_v44  ;;  %287 = vmatpush1.msra.mxu0 %v3820_v43  ;;  %v3907_v55 = vsub.f32 %v3759_v46, %v3786_v60  ;;  %v3910_v33 = vand.u32 4294901760, %v3878_v49  ;;  %v3912_v53 = vld [vmem:[#allocation2 + $0x20] sm:$0xff] }
  0x24   :  { %6683 = vst [vmem:[#allocation28_spill] sm:$0xff] %v3899_v19  ;;  %v647_v37 = vand.u32 4294901760, %v646_v58  ;;  %v6273_v27 = vand.u32 4294901760, %v3889_v63  ;;  %289 = vmatprep.subr.mxu0 %v3832_v52  ;;  %v658_v44 = vsub.f32 %v3876_v54, %v6270_v14  ;;  %v3920_v58 = vsub.f32 %v3769_v51, %v3798_v1  ;;  %v3937_v51 = vld [vmem:[#allocation2 + $0x18] sm:$0xff] }
  0x25   :  { %6684 = vst [vmem:[#allocation29_spill] sm:$0xff] %v3910_v33  ;;  %642 = vmatpush1.msra.mxu1 %v641_v28  ;;  %v653_v29 = vand.u32 4294901760, %v652_v26  ;;  %v3923_v46 = vand.u32 4294901760, %v3891_v39  ;;  %291 = vmatpush1.msra.mxu0 %v3846_v21  ;;  %v3932_v60 = vsub.f32 %v3776_v56, %v3809_v12  ;;  %v3935_v14 = vand.u32 4294901760, %v3901_v34  ;;  %v3948_v56 = vld [vmem:[#allocation2 + $0x8] sm:$0xff] }
  0x26   :  { %6685 = vst [vmem:[#allocation30_spill] sm:$0xff] %v3920_v58  ;;  %648 = vmatprep.subr.mxu1 %v647_v37  ;;  %v664_v28 = vsub.f32 %v3889_v63, %v6273_v27  ;;  %293 = vmatprep.subr.mxu0 %v3865_v7  ;;  %v659_v37 = vand.u32 4294901760, %v658_v44  ;;  %v3943_v27 = vsub.f32 %v3788_v61, %v3820_v43  ;;  %v3946_v26 = vand.u32 4294901760, %v3912_v53  ;;  %v3971_v44 = vld [vmem:[#allocation2] sm:$0xff] }
  0x27   :  { %6686 = vst [vmem:[#allocation31_spill] sm:$0xff] %v3923_v46  ;;  %6687 = vst [vmem:[#allocation32_spill] sm:$0xff] %v3932_v60  ;;  %654 = vmatpush1.msra.mxu1 %v653_v29  ;;  %295 = vmatpush1.msra.mxu0 %v3885_v62  ;;  %v6691_v50 = vand.u32 4294901760, %v3907_v55  ;;  %v3957_v1 = vsub.f32 %v3800_v2, %v3832_v52  ;;  %v6693_v61 = vand.u32 4294901760, %v3920_v58  ;;  %v3979_v41 = vand.u32 4294901760, %v3948_v56 }
  0x28   :  { %6688 = vst [vmem:[#allocation33_spill] sm:$0xff] %v3935_v14  ;;  %6689 = vst [vmem:[#allocation34_spill] sm:$0xff] %v3943_v27  ;;  %v665_v12 = vand.u32 4294901760, %v664_v28  ;;  %660 = vmatprep.subr.mxu1 %v659_v37  ;;  %297 = vmatprep.subr.mxu0 %v3899_v19  ;;  %v3965_v28 = vand.u32 4294901760, %v3937_v51  ;;  %v6696_v37 = vand.u32 4294901760, %v3932_v60 }
  0x29   :  { %6690 = vst [vmem:[#allocation35_spill] sm:$0xff] %v3946_v26  ;;  %v670_v29 = vsub.f32 %v3907_v55, %v6691_v50  ;;  %6692 = vst [vmem:[#allocation36_spill] sm:$0xff] %v3957_v1  ;;  %v676_v43 = vsub.f32 %v3920_v58, %v6693_v61  ;;  %v3969_v50 = vsub.f32 %v3811_v13, %v3846_v21  ;;  %299 = vmatpush1.msra.mxu0 %v3910_v33 }
  0x2a   :  { %6694 = vst [vmem:[#allocation37_spill] sm:$0xff] %v3965_v28  ;;  %666 = vmatpush1.msra.mxu1 %v665_v12  ;;  %v682_v52 = vsub.f32 %v3932_v60, %v6696_v37  ;;  %6697 = vst [vmem:[#allocation39_spill] sm:$0xff] %v3979_v41  ;;  %301 = vmatprep.subr.mxu0 %v3923_v46  ;;  %v6698_v13 = vand.u32 4294901760, %v3943_v27  ;;  %v3990_v21 = vsub.f32 %v3834_v20, %v3865_v7  ;;  %v3992_v37 = vld [vmem:[#allocation2 + $0x240] sm:$0xff] }
  0x2b   :  { %6695 = vst [vmem:[#allocation38_spill] sm:$0xff] %v3969_v50  ;;  %v671_v2 = vand.u32 4294901760, %v670_v29  ;;  %v677_v32 = vand.u32 4294901760, %v676_v43  ;;  %303 = vmatpush1.msra.mxu0 %v3935_v14  ;;  %v6700_v43 = vand.u32 4294901760, %v3957_v1  ;;  %v3999_v60 = vand.u32 4294901760, %v3971_v44  ;;  %v4005_v29 = vld [vmem:[#allocation2 + $0x230] sm:$0xff] }
  0x2c   :  { %v688_v12 = vsub.f32 %v3943_v27, %v6698_v13  ;;  %6699 = vst [vmem:[#allocation40_spill] sm:$0xff] %v3990_v21  ;;  %v683_v61 = vand.u32 4294901760, %v682_v52  ;;  %v4003_v13 = vsub.f32 %v3857_v38, %v3885_v62  ;;  %305 = vmatprep.subr.mxu0 %v3946_v26  ;;  %v6703_v52 = vand.u32 4294901760, %v3969_v50 }
  0x2d   :  { %672 = vmatprep.subr.mxu1 %v671_v2  ;;  %v694_v30 = vsub.f32 %v3957_v1, %v6700_v43  ;;  %6701 = vst [vmem:[#allocation41_spill] sm:$0xff] %v3999_v60  ;;  %v4013_v43 = vand.u32 4294901760, %v3981_v36  ;;  %v4015_v1 = vld [vmem:[#allocation2 + $0x228] sm:$0xff]  ;;  %307 = vmatpush1.msra.mxu0 %v3965_v28  ;;  %v4024_v62 = vand.u32 4294901760, %v3992_v37 }
  0x2e   :  { %6702 = vst [vmem:[#allocation42_spill] sm:$0xff] %v4003_v13  ;;  %678 = vmatpush1.msra.mxu1 %v677_v32  ;;  %v689_v20 = vand.u32 4294901760, %v688_v12  ;;  %v700_v2 = vsub.f32 %v3969_v50, %v6703_v52  ;;  %v4021_v12 = vsub.f32 %v3867_v47, %v3899_v19  ;;  %v4026_v52 = vld [vmem:[#allocation2 + $0x218] sm:$0xff]  ;;  %309 = vmatprep.subr.mxu0 %v3979_v41  ;;  %v4037_v47 = vand.u32 4294901760, %v4005_v29 }
  0x2f   :  { %6704 = vst [vmem:[#allocation43_spill] sm:$0xff] %v4013_v43  ;;  %684 = vmatprep.subr.mxu1 %v683_v61  ;;  %v695_v38 = vand.u32 4294901760, %v694_v30  ;;  %6706 = vst [vmem:[#allocation45_spill] sm:$0xff] %v4024_v62  ;;  %v6707_v61 = vand.u32 4294901760, %v3990_v21  ;;  %v4034_v32 = vsub.f32 %v3878_v49, %v3910_v33  ;;  %311 = vmatpush1.msra.mxu0 %v3999_v60  ;;  %v6710_v19 = vand.u32 4294901760, %v4003_v13  ;;  %v4051_v49 = vld [vmem:[#allocation2 + $0x210] sm:$0xff] }
  0x30   :  { %6705 = vst [vmem:[#allocation44_spill] sm:$0xff] %v4021_v12  ;;  %690 = vmatpush1.msra.mxu1 %v689_v20  ;;  %v701_v7 = vand.u32 4294901760, %v700_v2  ;;  %6709 = vst [vmem:[#allocation47_spill] sm:$0xff] %v4037_v47  ;;  %v4046_v50 = vsub.f32 %v3891_v39, %v3923_v46  ;;  %327 = vmatprep.subr.mxu0 %v4013_v43  ;;  %v4060_v2 = vand.u32 4294901760, %v4026_v52  ;;  %v4062_v39 = vld [vmem:[#allocation2 + $0x200] sm:$0xff] }
  0x31   :  { %v706_v30 = vsub.f32 %v3990_v21, %v6707_v61  ;;  %6708 = vst [vmem:[#allocation46_spill] sm:$0xff] %v4034_v32  ;;  %696 = vmatprep.subr.mxu1 %v695_v38  ;;  %v712_v20 = vsub.f32 %v4003_v13, %v6710_v19  ;;  %v4049_v61 = vand.u32 4294901760, %v4015_v1  ;;  %v6316_v38 = vand.u32 4294901760, %v4034_v32  ;;  %329 = vmatpush2.msra.mxu0 %v4024_v62 }
  0x32   :  { %6711 = vst [vmem:[#allocation48_spill] sm:$0xff] %v4046_v50  ;;  %702 = vmatpush1.msra.mxu1 %v701_v7  ;;  %v4057_v19 = vsub.f32 %v3901_v34, %v3935_v14  ;;  %6714 = vst [vmem:[#allocation51_spill] sm:$0xff] %v4060_v2  ;;  %v6715_v13 = vand.u32 4294901760, %v4021_v12  ;;  %331 = vmatprep.subr.mxu0 %v4037_v47  ;;  %v4079_v14 = vand.u32 4294901760, %v4051_v49  ;;  %v4085_v7 = vld [vmem:[#allocation2 + $0x1f8] sm:$0xff] }
  0x33   :  { %6712 = vst [vmem:[#allocation49_spill] sm:$0xff] %v4049_v61  ;;  %v707_v33 = vand.u32 4294901760, %v706_v30  ;;  %v713_v46 = vand.u32 4294901760, %v712_v20  ;;  %v4071_v30 = vsub.f32 %v3912_v53, %v3946_v26  ;;  %v724_v34 = vsub.f32 %v4034_v32, %v6316_v38  ;;  %333 = vmatpush2.msra.mxu0 %v4049_v61  ;;  %v4095_v32 = vld [vmem:[#allocation2 + $0x1e8] sm:$0xff] }
  0x34   :  { %6713 = vst [vmem:[#allocation50_spill] sm:$0xff] %v4057_v19  ;;  %v718_v21 = vsub.f32 %v4021_v12, %v6715_v13  ;;  %6717 = vst [vmem:[#allocation53_spill] sm:$0xff] %v4079_v14  ;;  %v4083_v13 = vsub.f32 %v3937_v51, %v3965_v28  ;;  %v4093_v20 = vand.u32 4294901760, %v4062_v39  ;;  %v6721_v51 = vand.u32 4294901760, %v4057_v19  ;;  %335 = vmatprep.subr.mxu0 %v4060_v2 }
  0x35   :  { %6716 = vst [vmem:[#allocation52_spill] sm:$0xff] %v4071_v30  ;;  %708 = vmatprep.subr.mxu1 %v707_v33  ;;  %v6719_v33 = vand.u32 4294901760, %v4046_v50  ;;  %v725_v12 = vand.u32 4294901760, %v724_v34  ;;  %337 = vmatpush2.msra.mxu0 %v4079_v14 }
  0x36   :  { %6718 = vst [vmem:[#allocation54_spill] sm:$0xff] %v4083_v13  ;;  %714 = vmatpush1.msra.mxu1 %v713_v46  ;;  %v719_v53 = vand.u32 4294901760, %v718_v21  ;;  %6720 = vst [vmem:[#allocation55_spill] sm:$0xff] %v4093_v20  ;;  %v736_v28 = vsub.f32 %v4057_v19, %v6721_v51  ;;  %v4104_v46 = vsub.f32 %v3948_v56, %v3979_v41  ;;  %v4113_v51 = vand.u32 4294901760, %v4085_v7  ;;  %v4119_v19 = vld [vmem:[#allocation2 + $0x1d0] sm:$0xff] }
  0x37   :  { %v730_v26 = vsub.f32 %v4046_v50, %v6719_v33  ;;  %v4106_v33 = vld [vmem:[#allocation2 + $0x1e0] sm:$0xff]  ;;  %v6723_v50 = vand.u32 4294901760, %v4071_v30  ;;  %v4117_v21 = vsub.f32 %v3971_v44, %v3999_v60  ;;  %339 = vmatprep.subr.mxu0 %v4093_v20  ;;  %v4127_v41 = vand.u32 4294901760, %v4095_v32  ;;  %v4140_v60 = vld [vmem:[#allocation2 + $0x1b8] sm:$0xff] }
  0x38   :  { %6722 = vst [vmem:[#allocation56_spill] sm:$0xff] %v4104_v46  ;;  %720 = vmatprep.subr.mxu1 %v719_v53  ;;  %6724 = vst [vmem:[#allocation57_spill] sm:$0xff] %v4113_v51  ;;  %v737_v56 = vand.u32 4294901760, %v736_v28  ;;  %v6726_v53 = vand.u32 4294901760, %v4083_v13  ;;  %341 = vmatpush2.msra.mxu0 %v4113_v51  ;;  %v4135_v28 = vsub.f32 %v3981_v36, %v4013_v43  ;;  %v4151_v36 = vand.u32 4294901760, %v4119_v19 }
  0x39   :  { %v731_v38 = vand.u32 4294901760, %v730_v26  ;;  %v742_v34 = vsub.f32 %v4071_v30, %v6723_v50  ;;  %6725 = vst [vmem:[#allocation58_spill] sm:$0xff] %v4117_v21  ;;  %726 = vmatpush1.msra.mxu1 %v725_v12  ;;  %6727 = vst [vmem:[#allocation59_spill] sm:$0xff] %v4127_v41  ;;  %v4129_v30 = vld [vmem:[#allocation2 + $0x1c8] sm:$0xff]  ;;  %v6339_v12 = vand.u32 4294901760, %v4117_v21  ;;  %343 = vmatprep.subr.mxu0 %v4127_v41 }
  0x3a   :  { %v748_v26 = vsub.f32 %v4083_v13, %v6726_v53  ;;  %6728 = vst [vmem:[#allocation60_spill] sm:$0xff] %v4135_v28  ;;  %v4138_v53 = vand.u32 4294901760, %v4106_v33  ;;  %v6730_v13 = vand.u32 4294901760, %v4104_v46  ;;  %6732 = vst [vmem:[#allocation63_spill] sm:$0xff] %v4151_v36 }
  0x3b   :  { %732 = vmatprep.subr.mxu1 %v731_v38  ;;  %v743_v44 = vand.u32 4294901760, %v742_v34  ;;  %v4148_v34 = vsub.f32 %v3992_v37, %v4024_v62  ;;  %v760_v43 = vsub.f32 %v4117_v21, %v6339_v12  ;;  %v4165_v37 = vld [vmem:[#allocation2 + $0x1b0] sm:$0xff]  ;;  %v4171_v12 = vsub.f32 %v4015_v1, %v4049_v61 }
  0x3c   :  { %6729 = vst [vmem:[#allocation61_spill] sm:$0xff] %v4138_v53  ;;  %738 = vmatpush1.msra.mxu1 %v737_v56  ;;  %v749_v50 = vand.u32 4294901760, %v748_v26  ;;  %v754_v38 = vsub.f32 %v4104_v46, %v6730_v13  ;;  %345 = vmatpush2.msra.mxu0 %v4138_v53  ;;  %v4160_v13 = vsub.f32 %v4005_v29, %v4037_v47  ;;  %v4163_v26 = vand.u32 4294901760, %v4129_v30  ;;  %v4176_v29 = vld [vmem:[#allocation2 + $0x1a0] sm:$0xff] }
  0x3d   :  { %6731 = vst [vmem:[#allocation62_spill] sm:$0xff] %v4148_v34  ;;  %744 = vmatprep.subr.mxu1 %v743_v44  ;;  %v6350_v44 = vand.u32 4294901760, %v4148_v34  ;;  %347 = vmatprep.subr.mxu0 %v4151_v36  ;;  %6734 = vst [vmem:[#allocation65_spill] sm:$0xff] %v4171_v12  ;;  %v4174_v56 = vand.u32 4294901760, %v4140_v60  ;;  %v761_v47 = vand.u32 4294901760, %v760_v43  ;;  %v6736_v21 = vand.u32 4294901760, %v4135_v28 }
  0x3e   :  { %6733 = vst [vmem:[#allocation64_spill] sm:$0xff] %v4163_v26  ;;  %750 = vmatpush1.msra.mxu1 %v749_v50  ;;  %v755_v62 = vand.u32 4294901760, %v754_v38  ;;  %349 = vmatpush2.msra.mxu0 %v4163_v26  ;;  %v4185_v38 = vsub.f32 %v4026_v52, %v4060_v2  ;;  %v4193_v43 = vand.u32 4294901760, %v4165_v37  ;;  %v4199_v50 = vld [vmem:[#allocation2 + $0x198] sm:$0xff]  ;;  %v4206_v61 = vand.u32 4294901760, %v4176_v29 }
  0x3f   :  { %6735 = vst [vmem:[#allocation66_spill] sm:$0xff] %v4174_v56  ;;  %v780_v46 = vsub.f32 %v4135_v28, %v6736_v21  ;;  %v786_v1 = vsub.f32 %v4148_v34, %v6350_v44  ;;  %351 = vmatprep.subr.mxu0 %v4174_v56  ;;  %v4197_v21 = vsub.f32 %v4051_v49, %v4079_v14  ;;  %v4208_v34 = vld [vmem:[#allocation2 + $0x188] sm:$0xff]  ;;  %v6742_v27 = vand.u32 4294901760, %v4171_v12 }
  0x40   :  { %6737 = vst [vmem:[#allocation67_spill] sm:$0xff] %v4185_v38  ;;  %756 = vmatprep.subr.mxu1 %v755_v62  ;;  %6738 = vst [vmem:[#allocation68_spill] sm:$0xff] %v4193_v43  ;;  %v6740_v62 = vand.u32 4294901760, %v4160_v13  ;;  %353 = vmatpush2.msra.mxu0 %v4193_v43  ;;  %v6743_v14 = vand.u32 4294901760, %v4185_v38 }
  0x41   :  { %6739 = vst [vmem:[#allocation69_spill] sm:$0xff] %v4197_v21  ;;  %762 = vmatpush1.msra.mxu1 %v761_v47  ;;  %v781_v52 = vand.u32 4294901760, %v780_v46  ;;  %6741 = vst [vmem:[#allocation70_spill] sm:$0xff] %v4206_v61  ;;  %v787_v28 = vand.u32 4294901760, %v786_v1  ;;  %v798_v49 = vsub.f32 %v4171_v12, %v6742_v27  ;;  %v4217_v46 = vsub.f32 %v4062_v39, %v4093_v20  ;;  %v108_v39 = vld [vmem:[%s6251_s0 + $0x8] sm:$0xff] }
  0x42   :  { %v792_v2 = vsub.f32 %v4160_v13, %v6740_v62  ;;  %v4219_v62 = vld [vmem:[#allocation2 + $0x180] sm:$0xff]  ;;  %v804_v1 = vsub.f32 %v4185_v38, %v6743_v14  ;;  %355 = vmatprep.subr.mxu0 %v4206_v61  ;;  %v4226_v27 = vand.u32 4294901760, %v4199_v50  ;;  %v4230_v47 = vsub.f32 %v4085_v7, %v4113_v51 }
  0x43   :  { %782 = vmatprep.subr.mxu1 %v781_v52  ;;  %v799_v52 = vand.u32 4294901760, %v798_v49  ;;  %v4240_v38 = vand.u32 4294901760, %v4208_v34  ;;  %v107_v7 = vld [vmem:[%s6251_s0] sm:$0xff]  ;;  %v4249_v49 = vsub.f32 %v4095_v32, %v4127_v41 }
  0x44   :  { %v793_v44 = vand.u32 4294901760, %v792_v2  ;;  %6744 = vst [vmem:[#allocation71_spill] sm:$0xff] %v4226_v27  ;;  %788 = vmatpush2.msra.mxu1 %v787_v28  ;;  %v6745_v2 = vand.u32 4294901760, %v4197_v21  ;;  %v805_v51 = vand.u32 4294901760, %v804_v1  ;;  %357 = vmatpush2.msra.mxu0 %v4226_v27  ;;  %v6371_v28 = vand.u32 4294901760, %v4230_v47 }
  0x45   :  { %6746 = vst [vmem:[#allocation72_spill] sm:$0xff] %v4240_v38  ;;  %359 = vmatprep.subr.mxu0 %v4240_v38  ;;  %v4261_v1 = vsub.f32 %v4106_v33, %v4138_v53  ;;  %v4275_v33 = vsub.f32 %v4119_v19, %v4151_v36 }
  0x46   :  { %v810_v20 = vsub.f32 %v4197_v21, %v6745_v2  ;;  %794 = vmatprep.subr.mxu1 %v793_v44  ;;  %v4252_v2 = vand.u32 4294901760, %v4219_v62  ;;  %v6748_v21 = vand.u32 4294901760, %v4217_v46  ;;  %v210_v44 = vsel %vm208_vm0, %v108_v39, 0 }
  0x47   :  { %800 = vmatpush2.msra.mxu1 %v799_v52  ;;  %v822_v32 = vsub.f32 %v4230_v47, %v6371_v28  ;;  %6751 = vst [vmem:[#allocation76_spill] sm:$0xff] %v4275_v33  ;;  %v110_v28 = vld [vmem:[%s6251_s0 + $0x18] sm:$0xff] }
  0x48   :  { %6747 = vst [vmem:[#allocation73_spill] sm:$0xff] %v4252_v2  ;;  %v811_v14 = vand.u32 4294901760, %v810_v20  ;;  %v816_v12 = vsub.f32 %v4217_v46, %v6748_v21  ;;  %806 = vmatprep.subr.mxu1 %v805_v51  ;;  %361 = vmatpush2.msra.mxu0 %v4252_v2  ;;  %v4268_v20 = vand.u32 4294901760, %v210_v44  ;;  %v4270_v21 = vand.u32 4294901760, %v107_v7 }
  0x49   :  { %v4279_v51 = vsub.f32 %v4129_v30, %v4163_v26  ;;  %992 = vmatprep.subr.mxu0 %v3688_v18  ;;  %v823_v52 = vand.u32 4294901760, %v822_v32  ;;  %v6755_v30 = vand.u32 4294901760, %v4261_v1  ;;  %v6758_v32 = vand.u32 4294901760, %v4275_v33 }
  0x4a   :  { %6749 = vst [vmem:[#allocation74_spill] sm:$0xff] %v4268_v20  ;;  %6750 = vst [vmem:[#allocation75_spill] sm:$0xff] %v4270_v21  ;;  %812 = vmatpush2.msra.mxu1 %v811_v14  ;;  %v817_v41 = vand.u32 4294901760, %v816_v12  ;;  %v6752_v14 = vand.u32 4294901760, %v4249_v49  ;;  %v4289_v39 = vsub.f32 %v210_v44, %v4268_v20  ;;  %v4292_v19 = vsub.f32 %v107_v7, %v4270_v21 }
  0x4b   :  { %886 = vmatprep.mubr.f32.mxu1 %v4268_v20  ;;  %v834_v26 = vsub.f32 %v4261_v1, %v6755_v30  ;;  %v109_v30 = vld [vmem:[%s6251_s0 + $0x10] sm:$0xff] }
  0x4c   :  { %v828_v12 = vsub.f32 %v4249_v49, %v6752_v14  ;;  %6753 = vst [vmem:[#allocation77_spill] sm:$0xff] %v4289_v39  ;;  %6754 = vst [vmem:[#allocation78_spill] sm:$0xff] %v4292_v19  ;;  %818 = vmatprep.subr.mxu1 %v817_v41  ;;  %v4302_v14 = vsub.f32 %v4140_v60, %v4174_v56  ;;  %v4305_v7 = vand.u32 4294901760, %v4289_v39  ;;  %v4308_v20 = vand.u32 4294901760, %v4292_v19 }
  0x4d   :  { %824 = vmatpush2.msra.mxu1 %v823_v52  ;;  %v213_v41 = vsel %vm208_vm0, %v110_v28, 0  ;;  %v835_v18 = vand.u32 4294901760, %v834_v26  ;;  %v840_v60 = vsub.f32 %v4275_v33, %v6758_v32  ;;  %v6759_v52 = vand.u32 4294901760, %v4279_v51 }
  0x4e   :  { %v829_v44 = vand.u32 4294901760, %v828_v12  ;;  %6756 = vst [vmem:[#allocation79_spill] sm:$0xff] %v4305_v7  ;;  %6757 = vst [vmem:[#allocation80_spill] sm:$0xff] %v4308_v20  ;;  %v6391_v56 = vand.u32 4294901760, %v4302_v14  ;;  %v365_v36 = vsub.f32 %v4289_v39, %v4305_v7  ;;  %v371_v28 = vsub.f32 %v4292_v19, %v4308_v20  ;;  %v112_v7 = vld [vmem:[%s6251_s0 + $0x28] sm:$0xff] }
  0x4f   :  { %v846_v12 = vsub.f32 %v4279_v51, %v6759_v52  ;;  %v4325_v53 = vand.u32 4294901760, %v213_v41  ;;  %v4329_v26 = vsub.f32 %v4165_v37, %v4193_v43  ;;  %v841_v32 = vand.u32 4294901760, %v840_v60 }
  0x50   :  { %830 = vmatprep.subr.mxu1 %v829_v44  ;;  %v852_v52 = vsub.f32 %v4302_v14, %v6391_v56  ;;  %v4334_v44 = vand.u32 4294901760, %v109_v30  ;;  %v4339_v20 = vand.u32 4294901760, %v365_v36  ;;  %v4341_v19 = vand.u32 4294901760, %v371_v28 }
  0x51   :  { %6760 = vst [vmem:[#allocation81_spill] sm:$0xff] %v4325_v53  ;;  %836 = vmatpush2.msra.mxu1 %v835_v18  ;;  %v847_v33 = vand.u32 4294901760, %v846_v12  ;;  %v4344_v37 = vsub.f32 %v213_v41, %v4325_v53  ;;  %v6392_v18 = vand.u32 4294901760, %v4329_v26  ;;  %v4352_v56 = vsub.f32 %v4176_v29, %v4206_v61 }
  0x52   :  { %6761 = vst [vmem:[#allocation82_spill] sm:$0xff] %v4334_v44  ;;  %6762 = vst [vmem:[#allocation83_spill] sm:$0xff] %v4339_v20  ;;  %842 = vmatprep.subr.mxu1 %v841_v32  ;;  %v853_v60 = vand.u32 4294901760, %v852_v52  ;;  %v4348_v12 = vsub.f32 %v109_v30, %v4334_v44  ;;  %v4356_v36 = vsub.f32 %v4199_v50, %v4226_v27  ;;  %367 = vmatprep.mubr.f32.mxu0 %v4339_v20 }
  0x53   :  { %6763 = vst [vmem:[#allocation84_spill] sm:$0xff] %v4341_v19  ;;  %6764 = vst [vmem:[#allocation85_spill] sm:$0xff] %v4344_v37  ;;  %848 = vmatpush2.msra.mxu1 %v847_v33  ;;  %v4360_v41 = vand.u32 4294901760, %v4344_v37  ;;  %v858_v28 = vsub.f32 %v4329_v26, %v6392_v18  ;;  %v4367_v30 = vsub.f32 %v4208_v34, %v4240_v38  ;;  %v216_v29 = vsel %vm208_vm0, %v112_v7, 0  ;;  %v111_v18 = vld [vmem:[%s6251_s0 + $0x20] sm:$0xff] }
  0x54   :  { %6765 = vst [vmem:[#allocation86_spill] sm:$0xff] %v4348_v12  ;;  %373 = vmatmul.mubr.f32.vlgmr.msra.gmra.mxu0 %v4341_v19  ;;  %854 = vmatprep.subr.mxu1 %v853_v60  ;;  %v4372_v50 = vand.u32 4294901760, %v4348_v12  ;;  %v6399_v33 = vand.u32 4294901760, %v4352_v56  ;;  %v4376_v52 = vand.u32 4294901760, %v216_v29  ;;  %v4387_v19 = vsub.f32 %v4219_v62, %v4252_v2  ;;  %v114_v62 = vld [vmem:[%s6251_s0 + $0x38] sm:$0xff]  ;;  %v115_v2 = vld [vmem:[%s6251_s0 + $0x40] sm:$0xff] }
  0x55   :  { %6766 = vst [vmem:[#allocation87_spill] sm:$0xff] %v4360_v41  ;;  %6767 = vst [vmem:[#allocation88_spill] sm:$0xff] %v4367_v30  ;;  %v381_v34 = vsub.f32 %v4344_v37, %v4360_v41  ;;  %v859_v7 = vand.u32 4294901760, %v858_v28  ;;  %995 = vmatpush1.msra.mxu0 %v3701_v23  ;;  %v6770_v41 = vand.u32 4294901760, %v4356_v36  ;;  %v4411_v27 = vand.u32 4294901760, %v111_v18 }
  0x56   :  { %6768 = vst [vmem:[#allocation89_spill] sm:$0xff] %v4372_v50  ;;  %6769 = vst [vmem:[#allocation90_spill] sm:$0xff] %v4376_v52  ;;  %v387_v32 = vsub.f32 %v4348_v12, %v4372_v50  ;;  %v864_v20 = vsub.f32 %v4352_v56, %v6399_v33  ;;  %998 = vmatprep.subr.mxu0 %v3707_v25  ;;  %v4399_v38 = vsub.f32 %v216_v29, %v4376_v52  ;;  %v116_v29 = vld [vmem:[%s6251_s0 + $0x48] sm:$0xff] }
  0x57   :  { %v870_v28 = vsub.f32 %v4356_v36, %v6770_v41  ;;  %v4404_v60 = vand.u32 4294901760, %v381_v34  ;;  %860 = vmatpush2.msra.mxu1 %v859_v7  ;;  %1001 = vmatpush1.msra.mxu0 %v3721_v31  ;;  %v6773_v33 = vand.u32 4294901760, %v4367_v30  ;;  %6774 = vst [vmem:[#allocation93_spill] sm:$0xff] %v4411_v27  ;;  %v113_v41 = vld [vmem:[%s6251_s0 + $0x30] sm:$0xff]  ;;  %v6777_v61 = vand.u32 4294901760, %v4387_v19 }
  0x58   :  { %6771 = vst [vmem:[#allocation91_spill] sm:$0xff] %v4399_v38  ;;  %v4419_v34 = vand.u32 4294901760, %v387_v32  ;;  %v865_v7 = vand.u32 4294901760, %v864_v20  ;;  %1004 = vmatprep.subr.mxu0 %v3730_v35  ;;  %v4434_v20 = vsub.f32 %v111_v18, %v4411_v27  ;;  %v219_v32 = vsel %vm208_vm0, %v114_v62, 0 }
  0x59   :  { %6772 = vst [vmem:[#allocation92_spill] sm:$0xff] %v4404_v60  ;;  %v876_v50 = vsub.f32 %v4367_v30, %v6773_v33  ;;  %v871_v31 = vand.u32 4294901760, %v870_v28  ;;  %v4423_v33 = vand.u32 4294901760, %v4399_v38  ;;  %383 = vmatprep.mubr.f32.mxu0 %v4404_v60  ;;  %v882_v12 = vsub.f32 %v4387_v19, %v6777_v61  ;;  %1007 = vmatpush1.msra.mxu0 %v3743_v40  ;;  %v118_v28 = vld [vmem:[%s6251_s0 + $0x58] sm:$0xff] }
  0x5a   :  { %6775 = vst [vmem:[#allocation94_spill] sm:$0xff] %v4419_v34  ;;  %6778 = vst [vmem:[#allocation96_spill] sm:$0xff] %v4434_v20  ;;  %389 = vmatmul.mubr.f32.gmra.mxu0 %v4419_v34  ;;  %866 = vmatprep.subr.mxu1 %v865_v7  ;;  %v4443_v60 = vand.u32 4294901760, %v219_v32  ;;  %v4445_v61 = vand.u32 4294901760, %v113_v41  ;;  %v222_v40 = vsel %vm208_vm0, %v116_v29, 0  ;;  %v4449_v62 = vand.u32 4294901760, %v4434_v20 }
  0x5b   :  { %6776 = vst [vmem:[#allocation95_spill] sm:$0xff] %v4423_v33  ;;  %v877_v25 = vand.u32 4294901760, %v876_v50  ;;  %v397_v50 = vsub.f32 %v4399_v38, %v4423_v33  ;;  %872 = vmatpush2.msra.mxu1 %v871_v31  ;;  %v883_v18 = vand.u32 4294901760, %v882_v12  ;;  %1010 = vmatprep.subr.mxu0 %v3757_v45  ;;  %v4452_v35 = vand.u32 4294901760, %v222_v40  ;;  %v117_v7 = vld [vmem:[%s6251_s0 + $0x50] sm:$0xff]  ;;  %v120_v33 = vld [vmem:[%s6251_s0 + $0x68] sm:$0xff] }
  0x5c   :  { %6779 = vst [vmem:[#allocation97_spill] sm:$0xff] %v4443_v60  ;;  %6780 = vst [vmem:[#allocation98_spill] sm:$0xff] %v4445_v61  ;;  %v4454_v34 = vand.u32 4294901760, %v115_v2  ;;  %1013 = vmatpush1.msra.mxu0 %v3783_v59  ;;  %v4466_v12 = vsub.f32 %v219_v32, %v4443_v60  ;;  %v4469_v29 = vsub.f32 %v113_v41, %v4445_v61  ;;  %v225_v45 = vsel %vm208_vm0, %v118_v28, 0 }
  0x5d   :  { %6781 = vst [vmem:[#allocation99_spill] sm:$0xff] %v4449_v62  ;;  %6782 = vst [vmem:[#allocation100_spill] sm:$0xff] %v4452_v35  ;;  %878 = vmatprep.subr.mxu1 %v877_v25  ;;  %v4462_v31 = vand.u32 4294901760, %v397_v50  ;;  %v403_v38 = vsub.f32 %v4434_v20, %v4449_v62  ;;  %1016 = vmatprep.subr.mxu0 %v3795_v0  ;;  %v4476_v25 = vsub.f32 %v222_v40, %v4452_v35 }
  0x5e   :  { %6783 = vst [vmem:[#allocation101_spill] sm:$0xff] %v4454_v34  ;;  %6785 = vst [vmem:[#allocation103_spill] sm:$0xff] %v4466_v12  ;;  %884 = vmatpush2.msra.mxu1 %v883_v18  ;;  %v4479_v50 = vsub.f32 %v115_v2, %v4454_v34  ;;  %v4481_v59 = vand.u32 4294901760, %v225_v45  ;;  %v4486_v41 = vand.u32 4294901760, %v4466_v12  ;;  %v4489_v32 = vand.u32 4294901760, %v4469_v29  ;;  %v119_v2 = vld [vmem:[%s6251_s0 + $0x60] sm:$0xff]  ;;  %1019 = vmatpush1.msra.mxu0 %v3806_v8 }
  0x5f   :  { %6784 = vst [vmem:[#allocation102_spill] sm:$0xff] %v4462_v31  ;;  %6786 = vst [vmem:[#allocation104_spill] sm:$0xff] %v4469_v29  ;;  %399 = vmatprep.mubr.f32.mxu0 %v4462_v31  ;;  %888 = vmatmul.mubr.f32.vlgmr.msra.gmra.mxu1 %v4270_v21  ;;  %v4491_v28 = vand.u32 4294901760, %v117_v7  ;;  %v228_v40 = vsel %vm208_vm0, %v120_v33, 0  ;;  %v4497_v18 = vand.u32 4294901760, %v403_v38  ;;  %v4502_v31 = vand.u32 4294901760, %v4476_v25 }
  0x60   :  { %6787 = vst [vmem:[#allocation105_spill] sm:$0xff] %v4476_v25  ;;  %6788 = vst [vmem:[#allocation106_spill] sm:$0xff] %v4479_v50  ;;  %1286 = vmatprep.subr.mxu1 %v3668_v3  ;;  %894 = vmatprep.mubr.f32.mxu1 %v4325_v53  ;;  %v4505_v21 = vand.u32 4294901760, %v4479_v50  ;;  %v4508_v62 = vsub.f32 %v225_v45, %v4481_v59  ;;  %v413_v33 = vsub.f32 %v4466_v12, %v4486_v41 }
  0x61   :  { %6789 = vst [vmem:[#allocation107_spill] sm:$0xff] %v4481_v59  ;;  %6790 = vst [vmem:[#allocation108_spill] sm:$0xff] %v4486_v41  ;;  %1288 = vmatpush1.msra.mxu1 %v3670_v4  ;;  %v419_v38 = vsub.f32 %v4469_v29, %v4489_v32  ;;  %v4517_v53 = vsub.f32 %v117_v7, %v4491_v28  ;;  %v4519_v0 = vand.u32 4294901760, %v228_v40  ;;  %405 = vmatmul.mubr.f32.gmra.mxu0 %v4497_v18  ;;  %v122_v7 = vld [vmem:[%s6251_s0 + $0x78] sm:$0xff] }
  0x62   :  { %6791 = vst [vmem:[#allocation109_spill] sm:$0xff] %v4489_v32  ;;  %6792 = vst [vmem:[#allocation110_spill] sm:$0xff] %v4491_v28  ;;  %1290 = vmatprep.subr.mxu1 %v3672_v5  ;;  %v429_v45 = vsub.f32 %v4476_v25, %v4502_v31  ;;  %v435_v41 = vsub.f32 %v4479_v50, %v4505_v21  ;;  %v4528_v8 = vand.u32 4294901760, %v4508_v62  ;;  %v4530_v12 = vand.u32 4294901760, %v119_v2 }
  0x63   :  { %6793 = vst [vmem:[#allocation111_spill] sm:$0xff] %v4497_v18  ;;  %6794 = vst [vmem:[#allocation112_spill] sm:$0xff] %v4502_v31  ;;  %v4535_v32 = vand.u32 4294901760, %v413_v33  ;;  %v4537_v18 = vand.u32 4294901760, %v419_v38  ;;  %896 = vmatmul.mubr.f32.gmra.mxu1 %v4334_v44  ;;  %1022 = vmatprep.subr.mxu0 %v3817_v42  ;;  %v4542_v31 = vand.u32 4294901760, %v4517_v53  ;;  %v121_v33 = vld [vmem:[%s6251_s0 + $0x70] sm:$0xff] }
  0x64   :  { %6795 = vst [vmem:[#allocation113_spill] sm:$0xff] %v4505_v21  ;;  %6796 = vst [vmem:[#allocation114_spill] sm:$0xff] %v4508_v62  ;;  %v4545_v21 = vsub.f32 %v228_v40, %v4519_v0  ;;  %1292 = vmatpush1.msra.mxu1 %v3674_v9  ;;  %1025 = vmatpush1.msra.mxu0 %v3829_v48  ;;  %v4549_v50 = vand.u32 4294901760, %v429_v45  ;;  %v445_v38 = vsub.f32 %v4508_v62, %v4528_v8  ;;  %v124_v45 = vld [vmem:[%s6251_s0 + $0x88] sm:$0xff]  ;;  %v6829_v62 = vld [vmem:[#allocation36_spill] sm:$0xff] }
  0x65   :  { %6797 = vst [vmem:[#allocation115_spill] sm:$0xff] %v4517_v53  ;;  %6798 = vst [vmem:[#allocation116_spill] sm:$0xff] %v4519_v0  ;;  %415 = vmatprep.mubr.f32.mxu0 %v4535_v32  ;;  %1294 = vmatprep.subr.mxu1 %v3676_v10  ;;  %v4559_v40 = vsub.f32 %v119_v2, %v4530_v12  ;;  %v231_v44 = vsel %vm208_vm0, %v122_v7, 0  ;;  %v4567_v25 = vand.u32 4294901760, %v435_v41  ;;  %v234_v41 = vsel %vm208_vm0, %v124_v45, 0  ;;  %v123_v45 = vld [vmem:[%s6251_s0 + $0x80] sm:$0xff] }
  0x66   :  { %6799 = vst [vmem:[#allocation117_spill] sm:$0xff] %v4528_v8  ;;  %6800 = vst [vmem:[#allocation118_spill] sm:$0xff] %v4530_v12  ;;  %421 = vmatmul.mubr.f32.gmra.mxu0 %v4537_v18  ;;  %1028 = vmatprep.subr.mxu0 %v3843_v57  ;;  %v451_v2 = vsub.f32 %v4517_v53, %v4542_v31  ;;  %v4576_v7 = vand.u32 4294901760, %v4545_v21  ;;  %v4578_v8 = vand.u32 4294901760, %v121_v33 }
  0x67   :  { %6801 = vst [vmem:[#allocation119_spill] sm:$0xff] %v4535_v32  ;;  %6802 = vst [vmem:[#allocation120_spill] sm:$0xff] %v4537_v18  ;;  %v4569_v32 = vand.u32 4294901760, %v231_v44  ;;  %1296 = vmatpush1.msra.mxu1 %v3678_v11  ;;  %431 = vmatprep.mubr.f32.mxu0 %v4549_v50  ;;  %v4585_v18 = vand.u32 4294901760, %v445_v38 }
  0x68   :  { %6803 = vst [vmem:[#allocation121_spill] sm:$0xff] %v4542_v31  ;;  %6804 = vst [vmem:[#allocation122_spill] sm:$0xff] %v4545_v21  ;;  %902 = vmatprep.mubr.f32.mxu1 %v4376_v52  ;;  %1031 = vmatpush1.msra.mxu0 %v3855_v6  ;;  %v4600_v38 = vand.u32 4294901760, %v451_v2  ;;  %v4607_v52 = vand.u32 4294901760, %v234_v41 }
  0x69   :  { %6805 = vst [vmem:[#allocation123_spill] sm:$0xff] %v4549_v50  ;;  %6806 = vst [vmem:[#allocation124_spill] sm:$0xff] %v4559_v40  ;;  %1298 = vmatprep.subr.mxu1 %v3681_v15  ;;  %904 = vmatmul.mubr.f32.gmra.mxu1 %v4411_v27  ;;  %v4588_v50 = vand.u32 4294901760, %v4559_v40  ;;  %v4591_v31 = vsub.f32 %v231_v44, %v4569_v32  ;;  %v461_v27 = vsub.f32 %v4545_v21, %v4576_v7 }
  0x6a   :  { %6807 = vst [vmem:[#allocation125_spill] sm:$0xff] %v4567_v25  ;;  %6808 = vst [vmem:[#allocation126_spill] sm:$0xff] %v4569_v32  ;;  %437 = vmatmul.mubr.f32.gmra.mxu0 %v4567_v25  ;;  %1034 = vmatprep.subr.mxu0 %v3876_v54  ;;  %v4605_v44 = vsub.f32 %v121_v33, %v4578_v8  ;;  %v126_v25 = vld [vmem:[%s6251_s0 + $0x98] sm:$0xff] }
  0x6b   :  { %6809 = vst [vmem:[#allocation127_spill] sm:$0xff] %v4576_v7  ;;  %6810 = vst [vmem:[#allocation128_spill] sm:$0xff] %v4578_v8  ;;  %1300 = vmatpush1.msra.mxu1 %v3683_v16  ;;  %1037 = vmatpush1.msra.mxu0 %v3889_v63  ;;  %v467_v2 = vsub.f32 %v4559_v40, %v4588_v50  ;;  %v4619_v33 = vand.u32 4294901760, %v4591_v31  ;;  %v4621_v7 = vand.u32 4294901760, %v123_v45  ;;  %v237_v21 = vsel %vm208_vm0, %v126_v25, 0  ;;  %v6822_v40 = vld [vmem:[#allocation32_spill] sm:$0xff] }
  0x6c   :  { %6811 = vst [vmem:[#allocation129_spill] sm:$0xff] %v4585_v18  ;;  %6812 = vst [vmem:[#allocation130_spill] sm:$0xff] %v4588_v50  ;;  %1302 = vmatprep.subr.mxu1 %v3685_v17  ;;  %1040 = vmatprep.subr.mxu0 %v3907_v55  ;;  %v4628_v53 = vand.u32 4294901760, %v461_v27  ;;  %v4634_v50 = vsub.f32 %v234_v41, %v4607_v52  ;;  %v125_v25 = vld [vmem:[%s6251_s0 + $0x90] sm:$0xff] }
  0x6d   :  { %6813 = vst [vmem:[#allocation131_spill] sm:$0xff] %v4591_v31  ;;  %6814 = vst [vmem:[#allocation132_spill] sm:$0xff] %v4600_v38  ;;  %1304 = vmatpush1.msra.mxu1 %v3698_v22  ;;  %447 = vmatprep.mubr.f32.mxu0 %v4585_v18  ;;  %v4631_v18 = vand.u32 4294901760, %v4605_v44  ;;  %v4643_v27 = vand.u32 4294901760, %v467_v2  ;;  %v4648_v41 = vsub.f32 %v123_v45, %v4621_v7 }
  0x6e   :  { %6815 = vst [vmem:[#allocation133_spill] sm:$0xff] %v4605_v44  ;;  %6816 = vst [vmem:[#allocation134_spill] sm:$0xff] %v4607_v52  ;;  %910 = vmatprep.mubr.f32.mxu1 %v4443_v60  ;;  %1043 = vmatpush1.msra.mxu0 %v3920_v58  ;;  %v6823_v60 = vld [vmem:[#allocation8_spill] sm:$0xff]  ;;  %v4650_v58 = vand.u32 4294901760, %v237_v21  ;;  %v4662_v45 = vand.u32 4294901760, %v4634_v50 }
  0x6f   :  { %6817 = vst [vmem:[#allocation135_spill] sm:$0xff] %v4619_v33  ;;  %6818 = vst [vmem:[#allocation136_spill] sm:$0xff] %v4621_v7  ;;  %1306 = vmatprep.subr.mxu1 %v3704_v24  ;;  %453 = vmatmul.mubr.f32.gmra.mxu0 %v4600_v38  ;;  %v6824_v24 = vld [vmem:[#allocation34_spill] sm:$0xff]  ;;  %v477_v38 = vsub.f32 %v4591_v31, %v4619_v33  ;;  %v483_v2 = vsub.f32 %v4605_v44, %v4631_v18  ;;  %v4664_v33 = vand.u32 4294901760, %v125_v25  ;;  %v6838_v44 = vld [vmem:[#allocation40_spill] sm:$0xff] }
  0x70   :  { %6819 = vst [vmem:[#allocation137_spill] sm:$0xff] %v4628_v53  ;;  %6820 = vst [vmem:[#allocation138_spill] sm:$0xff] %v4631_v18  ;;  %912 = vmatmul.mubr.f32.gmra.mxu1 %v4445_v61  ;;  %1046 = vmatprep.subr.mxu0 %v6822_v40  ;;  %v128_v61 = vld [vmem:[%s6251_s0 + $0xa8] sm:$0xff]  ;;  %v6828_v40 = vld [vmem:[#allocation10_spill] sm:$0xff]  ;;  %v4677_v18 = vsub.f32 %v237_v21, %v4650_v58 }
  0x71   :  { %6821 = vst [vmem:[#allocation139_spill] sm:$0xff] %v4634_v50  ;;  %1308 = vmatpush1.msra.mxu1 %v6823_v60  ;;  %1049 = vmatpush1.msra.mxu0 %v6824_v24  ;;  %6825 = vst [vmem:[#allocation140_spill] sm:$0xff] %v4643_v27  ;;  %v6830_v60 = vld [vmem:[#allocation12_spill] sm:$0xff]  ;;  %v6833_v31 = vld [vmem:[#allocation38_spill] sm:$0xff]  ;;  %v4691_v21 = vsub.f32 %v125_v25, %v4664_v33 }
  0x72   :  { %6826 = vst [vmem:[#allocation141_spill] sm:$0xff] %v4648_v41  ;;  %6827 = vst [vmem:[#allocation142_spill] sm:$0xff] %v4650_v58  ;;  %1310 = vmatprep.subr.mxu1 %v6828_v40  ;;  %1052 = vmatprep.subr.mxu0 %v6829_v62  ;;  %v240_v40 = vsel %vm208_vm0, %v128_v61, 0  ;;  %v6834_v24 = vld [vmem:[#allocation14_spill] sm:$0xff]  ;;  %v6845_v62 = vld [vmem:[#allocation44_spill] sm:$0xff]  ;;  %v4705_v25 = vand.u32 4294901760, %v4677_v18 }
  0x73   :  { %1312 = vmatpush1.msra.mxu1 %v6830_v60  ;;  %463 = vmatprep.mubr.f32.mxu0 %v4628_v53  ;;  %6831 = vst [vmem:[#allocation143_spill] sm:$0xff] %v4662_v45  ;;  %6832 = vst [vmem:[#allocation144_spill] sm:$0xff] %v4664_v33  ;;  %v4671_v60 = vand.u32 4294901760, %v477_v38  ;;  %v4674_v53 = vand.u32 4294901760, %v4648_v41  ;;  %v127_v61 = vld [vmem:[%s6251_s0 + $0xa0] sm:$0xff]  ;;  %v4686_v38 = vand.u32 4294901760, %v483_v2 }
  0x74   :  { %918 = vmatprep.mubr.f32.mxu1 %v4452_v35  ;;  %1055 = vmatpush1.msra.mxu0 %v6833_v31  ;;  %6837 = vst [vmem:[#allocation147_spill] sm:$0xff] %v4677_v18  ;;  %v6839_v35 = vld [vmem:[#allocation16_spill] sm:$0xff]  ;;  %6842 = vst [vmem:[#allocation149_spill] sm:$0xff] %v4691_v21  ;;  %v4693_v31 = vand.u32 4294901760, %v240_v40 }
  0x75   :  { %1314 = vmatprep.subr.mxu1 %v6834_v24  ;;  %469 = vmatmul.mubr.f32.gmra.mxu0 %v4643_v27  ;;  %6835 = vst [vmem:[#allocation145_spill] sm:$0xff] %v4671_v60  ;;  %6836 = vst [vmem:[#allocation146_spill] sm:$0xff] %v4674_v53  ;;  %v6840_v24 = vld [vmem:[#allocation42_spill] sm:$0xff]  ;;  %v493_v27 = vsub.f32 %v4634_v50, %v4662_v45  ;;  %v499_v2 = vsub.f32 %v4648_v41, %v4674_v53  ;;  %v4707_v45 = vand.u32 4294901760, %v127_v61  ;;  %v6854_v41 = vld [vmem:[#allocation48_spill] sm:$0xff] }
  0x76   :  { %920 = vmatmul.mubr.f32.gmra.mxu1 %v4454_v34  ;;  %1058 = vmatprep.subr.mxu0 %v6838_v44  ;;  %6841 = vst [vmem:[#allocation148_spill] sm:$0xff] %v4686_v38  ;;  %6843 = vst [vmem:[#allocation150_spill] sm:$0xff] %v4693_v31  ;;  %v130_v34 = vld [vmem:[%s6251_s0 + $0xb8] sm:$0xff]  ;;  %v6844_v44 = vld [vmem:[#allocation18_spill] sm:$0xff]  ;;  %v4720_v53 = vsub.f32 %v240_v40, %v4693_v31 }
  0x77   :  { %1316 = vmatpush1.msra.mxu1 %v6839_v35  ;;  %1061 = vmatpush1.msra.mxu0 %v6840_v24  ;;  %v6846_v35 = vld [vmem:[#allocation20_spill] sm:$0xff]  ;;  %6847 = vst [vmem:[#allocation151_spill] sm:$0xff] %v4705_v25  ;;  %6848 = vst [vmem:[#allocation152_spill] sm:$0xff] %v4707_v45  ;;  %v6849_v50 = vld [vmem:[#allocation46_spill] sm:$0xff]  ;;  %v4734_v40 = vsub.f32 %v127_v61, %v4707_v45 }
  0x78   :  { %1318 = vmatprep.subr.mxu1 %v6844_v44  ;;  %1064 = vmatprep.subr.mxu0 %v6845_v62  ;;  %v243_v44 = vsel %vm208_vm0, %v130_v34, 0  ;;  %v6850_v24 = vld [vmem:[#allocation22_spill] sm:$0xff]  ;;  %6853 = vst [vmem:[#allocation155_spill] sm:$0xff] %v4720_v53  ;;  %v129_v34 = vld [vmem:[%s6251_s0 + $0xb0] sm:$0xff]  ;;  %v4748_v61 = vand.u32 4294901760, %v4720_v53 }
  0x79   :  { %1320 = vmatpush1.msra.mxu1 %v6846_v35  ;;  %479 = vmatprep.mubr.f32.mxu0 %v4671_v60  ;;  %v4714_v35 = vand.u32 4294901760, %v493_v27  ;;  %v4717_v60 = vand.u32 4294901760, %v4691_v21  ;;  %v4729_v27 = vand.u32 4294901760, %v499_v2  ;;  %6858 = vst [vmem:[#allocation157_spill] sm:$0xff] %v4734_v40  ;;  %v6861_v62 = vld [vmem:[#allocation52_spill] sm:$0xff] }
  0x7a   :  { %926 = vmatprep.mubr.f32.mxu1 %v4481_v59  ;;  %1067 = vmatpush1.msra.mxu0 %v6849_v50  ;;  %v6855_v59 = vld [vmem:[#allocation23_spill] sm:$0xff]  ;;  %v4736_v50 = vand.u32 4294901760, %v243_v44  ;;  %6863 = vst [vmem:[#allocation159_spill] sm:$0xff] %v4748_v61 }
  0x7b   :  { %1322 = vmatprep.subr.mxu1 %v6850_v24  ;;  %485 = vmatmul.mubr.f32.gmra.mxu0 %v4686_v38  ;;  %6851 = vst [vmem:[#allocation153_spill] sm:$0xff] %v4714_v35  ;;  %6852 = vst [vmem:[#allocation154_spill] sm:$0xff] %v4717_v60  ;;  %v6856_v24 = vld [vmem:[#allocation50_spill] sm:$0xff]  ;;  %v509_v38 = vsub.f32 %v4677_v18, %v4705_v25  ;;  %v515_v2 = vsub.f32 %v4691_v21, %v4717_v60  ;;  %v4750_v25 = vand.u32 4294901760, %v129_v34  ;;  %v6870_v21 = vld [vmem:[#allocation56_spill] sm:$0xff] }
  0x7c   :  { %928 = vmatmul.mubr.f32.gmra.mxu1 %v4491_v28  ;;  %1070 = vmatprep.subr.mxu0 %v6854_v41  ;;  %6857 = vst [vmem:[#allocation156_spill] sm:$0xff] %v4729_v27  ;;  %6859 = vst [vmem:[#allocation158_spill] sm:$0xff] %v4736_v50  ;;  %v132_v28 = vld [vmem:[%s6251_s0 + $0xc8] sm:$0xff]  ;;  %v6860_v41 = vld [vmem:[#allocation24_spill] sm:$0xff]  ;;  %v4763_v60 = vsub.f32 %v243_v44, %v4736_v50 }
  0x7d   :  { %1324 = vmatpush1.msra.mxu1 %v6855_v59  ;;  %1073 = vmatpush1.msra.mxu0 %v6856_v24  ;;  %v6862_v59 = vld [vmem:[#allocation25_spill] sm:$0xff]  ;;  %6864 = vst [vmem:[#allocation160_spill] sm:$0xff] %v4750_v25  ;;  %v6865_v18 = vld [vmem:[#allocation54_spill] sm:$0xff]  ;;  %v4777_v44 = vsub.f32 %v129_v34, %v4750_v25 }
  0x7e   :  { %1326 = vmatprep.subr.mxu1 %v6860_v41  ;;  %1076 = vmatprep.subr.mxu0 %v6861_v62  ;;  %v246_v41 = vsel %vm208_vm0, %v132_v28, 0  ;;  %v6866_v24 = vld [vmem:[#allocation26_spill] sm:$0xff]  ;;  %6869 = vst [vmem:[#allocation163_spill] sm:$0xff] %v4763_v60  ;;  %v6878_v62 = vld [vmem:[#allocation29_spill] sm:$0xff] }
  0x7f   :  { %1328 = vmatpush1.msra.mxu1 %v6862_v59  ;;  %495 = vmatprep.mubr.f32.mxu0 %v4714_v35  ;;  %v4757_v59 = vand.u32 4294901760, %v509_v38  ;;  %v4760_v35 = vand.u32 4294901760, %v4734_v40  ;;  %v131_v28 = vld [vmem:[%s6251_s0 + $0xc0] sm:$0xff]  ;;  %v4772_v38 = vand.u32 4294901760, %v515_v2  ;;  %6874 = vst [vmem:[#allocation164_spill] sm:$0xff] %v4777_v44 }
  0x80   :  { %934 = vmatprep.mubr.f32.mxu1 %v4519_v0  ;;  %1079 = vmatpush1.msra.mxu0 %v6865_v18  ;;  %v6871_v0 = vld [vmem:[#allocation27_spill] sm:$0xff]  ;;  %v4779_v18 = vand.u32 4294901760, %v246_v41  ;;  %v6881_v34 = vld [vmem:[#allocation62_spill] sm:$0xff] }
  0x81   :  { %1330 = vmatprep.subr.mxu1 %v6866_v24  ;;  %501 = vmatmul.mubr.f32.gmra.mxu0 %v4729_v27  ;;  %6867 = vst [vmem:[#allocation161_spill] sm:$0xff] %v4757_v59  ;;  %6868 = vst [vmem:[#allocation162_spill] sm:$0xff] %v4760_v35  ;;  %v6872_v24 = vld [vmem:[#allocation58_spill] sm:$0xff]  ;;  %v525_v27 = vsub.f32 %v4720_v53, %v4748_v61  ;;  %v531_v2 = vsub.f32 %v4734_v40, %v4760_v35  ;;  %v4790_v61 = vand.u32 4294901760, %v131_v28  ;;  %v6885_v40 = vld [vmem:[#allocation31_spill] sm:$0xff] }
  0x82   :  { %936 = vmatmul.mubr.f32.gmra.mxu1 %v4530_v12  ;;  %1082 = vmatprep.subr.mxu0 %v6870_v21  ;;  %6873 = vst [vmem:[#allocation27_spill] sm:$0xff] %v4772_v38  ;;  %6875 = vst [vmem:[#allocation165_spill] sm:$0xff] %v4779_v18  ;;  %v6876_v12 = vld [vmem:[#allocation28_spill] sm:$0xff]  ;;  %v4802_v35 = vsub.f32 %v246_v41, %v4779_v18  ;;  %v6891_v41 = vld [vmem:[#allocation35_spill] sm:$0xff] }
  0x83   :  { %1332 = vmatpush1.msra.mxu1 %v6871_v0  ;;  %1085 = vmatpush1.msra.mxu0 %v6872_v24  ;;  %v6877_v21 = vld [vmem:[#allocation60_spill] sm:$0xff]  ;;  %v4788_v24 = vand.u32 4294901760, %v4763_v60  ;;  %v4796_v53 = vand.u32 4294901760, %v525_v27 }
  0x84   :  { %1334 = vmatprep.subr.mxu1 %v6876_v12  ;;  %1102 = vmatprep.subr.mxu0 %v6877_v21  ;;  %6880 = vst [vmem:[#allocation60_spill] sm:$0xff] %v4790_v61  ;;  %6884 = vst [vmem:[#allocation168_spill] sm:$0xff] %v4802_v35 }
  0x85   :  { %1336 = vmatpush1.msra.mxu1 %v6878_v62  ;;  %511 = vmatprep.mubr.f32.mxu0 %v4757_v59  ;;  %6879 = vst [vmem:[#allocation28_spill] sm:$0xff] %v4788_v24  ;;  %6882 = vst [vmem:[#allocation166_spill] sm:$0xff] %v4796_v53  ;;  %v4799_v59 = vand.u32 4294901760, %v4777_v44  ;;  %v6886_v62 = vld [vmem:[#allocation65_spill] sm:$0xff]  ;;  %v541_v27 = vsub.f32 %v4763_v60, %v4788_v24 }
  0x86   :  { %942 = vmatprep.mubr.f32.mxu1 %v4569_v32  ;;  %1105 = vmatpush2.msra.mxu0 %v6881_v34  ;;  %v6887_v32 = vld [vmem:[#allocation33_spill] sm:$0xff]  ;;  %v4808_v34 = vand.u32 4294901760, %v531_v2  ;;  %v4822_v2 = vand.u32 4294901760, %v4802_v35 }
  0x87   :  { %517 = vmatmul.mubr.f32.gmra.mxu0 %v4772_v38  ;;  %944 = vmatmul.mubr.f32.gmra.mxu1 %v4578_v8  ;;  %6883 = vst [vmem:[#allocation167_spill] sm:$0xff] %v4799_v59  ;;  %v4813_v38 = vsub.f32 %v131_v28, %v4790_v61  ;;  %v6890_v8 = vld [vmem:[#allocation67_spill] sm:$0xff]  ;;  %v6894_v24 = vld [vmem:[#allocation37_spill] sm:$0xff]  ;;  %v4828_v28 = vand.u32 4294901760, %v541_v27 }
  0x88   :  { %1108 = vmatprep.subr.mxu0 %v4160_v13  ;;  %1338 = vmatprep.subr.mxu1 %v6885_v40  ;;  %6888 = vst [vmem:[#allocation31_spill] sm:$0xff] %v4808_v34  ;;  %6892 = vst [vmem:[#allocation67_spill] sm:$0xff] %v4822_v2  ;;  %v6900_v27 = vld [vmem:[#allocation43_spill] sm:$0xff]  ;;  %v6901_v60 = vld [vmem:[#allocation45_spill] sm:$0xff] }
  0x89   :  { %1111 = vmatpush2.msra.mxu0 %v6886_v62  ;;  %1340 = vmatpush1.msra.mxu1 %v6887_v32  ;;  %6889 = vst [vmem:[#allocation169_spill] sm:$0xff] %v4813_v38  ;;  %v547_v62 = vsub.f32 %v4777_v44, %v4799_v59  ;;  %v6893_v32 = vld [vmem:[#allocation69_spill] sm:$0xff]  ;;  %6895 = vst [vmem:[#allocation35_spill] sm:$0xff] %v4828_v28 }
  0x8a   :  { %1114 = vmatprep.subr.mxu0 %v6890_v8  ;;  %1342 = vmatprep.subr.mxu1 %v6891_v41  ;;  %v6898_v59 = vld [vmem:[#allocation41_spill] sm:$0xff] }
  0x8b   :  { %527 = vmatprep.mubr.f32.mxu0 %v4796_v53  ;;  %950 = vmatprep.mubr.f32.mxu1 %v4607_v52  ;;  %v4831_v53 = vand.u32 4294901760, %v4813_v38  ;;  %v6897_v52 = vld [vmem:[#allocation39_spill] sm:$0xff]  ;;  %v4837_v44 = vand.u32 4294901760, %v547_v62 }
  0x8c   :  { %1117 = vmatpush2.msra.mxu0 %v6893_v32  ;;  %1344 = vmatpush1.msra.mxu1 %v6894_v24 }
  0x8d   :  { %533 = vmatmul.mubr.f32.gmra.mxu0 %v4808_v34  ;;  %952 = vmatmul.mubr.f32.gmra.mxu1 %v4621_v7  ;;  %6896 = vst [vmem:[#allocation69_spill] sm:$0xff] %v4831_v53  ;;  %6899 = vst [vmem:[#allocation37_spill] sm:$0xff] %v4837_v44  ;;  %v557_v34 = vsub.f32 %v4802_v35, %v4822_v2  ;;  %v563_v7 = vsub.f32 %v4813_v38, %v4831_v53  ;;  %v6903_v2 = vld [vmem:[#allocation76_spill] sm:$0xff]  ;;  %v6904_v35 = vld [vmem:[#allocation47_spill] sm:$0xff] }
  0x8e   :  { %1120 = vmatprep.subr.mxu0 %v4217_v46  ;;  %1346 = vmatprep.subr.mxu1 %v6897_v52  ;;  %v6907_v53 = vld [vmem:[#allocation51_spill] sm:$0xff] }
  0x8f   :  { %1123 = vmatpush2.msra.mxu0 %v4230_v47  ;;  %1348 = vmatpush1.msra.mxu1 %v6898_v59  ;;  %v4851_v62 = vand.u32 4294901760, %v557_v34  ;;  %v6908_v34 = vld [vmem:[#allocation53_spill] sm:$0xff] }
  0x90   :  { %1126 = vmatprep.subr.mxu0 %v4249_v49  ;;  %1364 = vmatprep.subr.mxu1 %v6900_v27 }
  0x91   :  { %543 = vmatprep.mubr.f32.mxu0 %v4828_v28  ;;  %958 = vmatprep.mubr.f32.mxu1 %v4650_v58  ;;  %6902 = vst [vmem:[#allocation39_spill] sm:$0xff] %v4851_v62  ;;  %v6905_v28 = vld [vmem:[#allocation49_spill] sm:$0xff]  ;;  %v4857_v58 = vand.u32 4294901760, %v563_v7  ;;  %v6909_v7 = vld [vmem:[#allocation55_spill] sm:$0xff] }
  0x92   :  { %1129 = vmatpush2.msra.mxu0 %v4261_v1  ;;  %1366 = vmatpush2.msra.mxu1 %v6901_v60 }
  0x93   :  { %549 = vmatmul.mubr.f32.gmra.mxu0 %v4837_v44  ;;  %960 = vmatmul.mubr.f32.gmra.mxu1 %v4664_v33  ;;  %6906 = vst [vmem:[#allocation41_spill] sm:$0xff] %v4857_v58  ;;  %v6910_v44 = vld [vmem:[#allocation57_spill] sm:$0xff] }
  0x94   :  { %1132 = vmatprep.subr.mxu0 %v6903_v2  ;;  %1368 = vmatprep.subr.mxu1 %v6904_v35  ;;  %v6915_v33 = vld [vmem:[#allocation5_spill] sm:$0xff] }
  0x95   :  { %1135 = vmatpush2.msra.mxu0 %v4279_v51  ;;  %1370 = vmatpush2.msra.mxu1 %v6905_v28 }
  0x96   :  { %1138 = vmatprep.subr.mxu0 %v4302_v14  ;;  %1372 = vmatprep.subr.mxu1 %v6907_v53 }
  0x97   :  { %559 = vmatprep.mubr.f32.mxu0 %v4851_v62  ;;  %966 = vmatprep.mubr.f32.mxu1 %v4693_v31  ;;  %v6911_v62 = vld [vmem:[#allocation59_spill] sm:$0xff] }
  0x98   :  { %1141 = vmatpush2.msra.mxu0 %v4329_v26  ;;  %1374 = vmatpush2.msra.mxu1 %v6908_v34  ;;  %v6914_v31 = vld [vmem:[#allocation63_spill] sm:$0xff] }
  0x99   :  { %565 = vmatmul.mubr.f32.gmra.mxu0 %v4857_v58  ;;  %968 = vmatmul.mubr.f32.gmra.mxu1 %v4707_v45  ;;  %v6912_v58 = vld [vmem:[#allocation61_spill] sm:$0xff]  ;;  %v6913_v45 = vld [vmem:[#allocation78_spill] sm:$0xff] }
  0x9a   :  { %1144 = vmatprep.subr.mxu0 %v4352_v56  ;;  %1376 = vmatprep.subr.mxu1 %v6909_v7 }
  0x9b   :  { %1147 = vmatpush2.msra.mxu0 %v4356_v36  ;;  %1378 = vmatpush2.msra.mxu1 %v6910_v44  ;;  %v6916_v44 = vand.u32 4294901760, %v6915_v33  ;;  %v6922_v33 = vld [vmem:[#allocation7_spill] sm:$0xff] }
  0x9c   :  { %1150 = vmatprep.subr.mxu0 %v4367_v30  ;;  %1380 = vmatprep.subr.mxu1 %v6911_v62  ;;  %v6917_v30 = vld [vmem:[#allocation64_spill] sm:$0xff] }
  0x9d   :  { %974 = vmatprep.mubr.f32.mxu1 %v4736_v50  ;;  %1153 = vmatpush2.msra.mxu0 %v4387_v19  ;;  %v6918_v50 = vld [vmem:[#allocation66_spill] sm:$0xff] }
  0x9e   :  { %1156 = vmatprep.mubr.f32.mxu0 %v4289_v39  ;;  %1382 = vmatpush2.msra.mxu1 %v6912_v58  ;;  %v6919_v39 = vand.u32 4294901760, %v3701_v23  ;;  %v6930_v23 = vld [vmem:[#allocation91_spill] sm:$0xff] }
  0x9f   :  { %976 = vmatmul.mubr.f32.gmra.mxu1 %v4750_v25  ;;  %1159 = vmatmul.mubr.f32.vlgmr.msra.gmra.mxu0 %v6913_v45  ;;  %v6920_v45 = vld [vmem:[#allocation86_spill] sm:$0xff] }
  0xa0   :  { %1384 = vmatprep.subr.mxu1 %v6914_v31  ;;  %1559 = vmatprep.subr.mxu0 %v6916_v44  ;;  %v6921_v25 = vld [vmem:[#allocation70_spill] sm:$0xff]  ;;  %v6923_v44 = vand.u32 4294901760, %v6922_v33  ;;  %v6935_v33 = vld [vmem:[#allocation80_spill] sm:$0xff] }
  0xa1   :  { %1386 = vmatpush2.msra.mxu1 %v6917_v30  ;;  %982 = vmatprep.mubr.f32.mxu1 %v4779_v18  ;;  %v6924_v30 = vld [vmem:[#allocation71_spill] sm:$0xff]  ;;  %v6925_v18 = vld [vmem:[#allocation9_spill] sm:$0xff] }
  0xa2   :  { %1388 = vmatprep.subr.mxu1 %v6918_v50  ;;  %1166 = vmatprep.mubr.f32.mxu0 %v4344_v37  ;;  %v6926_v50 = vand.u32 4294901760, %v6925_v18  ;;  %v6927_v37 = vld [vmem:[#allocation72_spill] sm:$0xff]  ;;  %v6936_v18 = vld [vmem:[#allocation15_spill] sm:$0xff] }
  0xa3   :  { %1390 = vmatpush2.msra.mxu1 %v4193_v43  ;;  %1563 = vmatpush1.msra.mxu0 %v6919_v39  ;;  %v6928_v43 = vld [vmem:[#allocation11_spill] sm:$0xff]  ;;  %v6931_v39 = vld [vmem:[#allocation73_spill] sm:$0xff] }
  0xa4   :  { %984 = vmatmul.mubr.f32.gmra.mxu1 %v4790_v61  ;;  %1169 = vmatmul.mubr.f32.gmra.mxu0 %v6920_v45  ;;  %v6929_v31 = vand.u32 4294901760, %v6928_v43  ;;  %v6932_v45 = vld [vmem:[#allocation79_spill] sm:$0xff]  ;;  %v6933_v61 = vld [vmem:[#allocation13_spill] sm:$0xff] }
  0xa5   :  { %1392 = vmatprep.subr.mxu1 %v6921_v25  ;;  %1567 = vmatprep.subr.mxu0 %v6923_v44  ;;  %v6934_v25 = vand.u32 4294901760, %v6933_v61  ;;  %v6938_v43 = vld [vmem:[#allocation17_spill] sm:$0xff]  ;;  %v6940_v44 = vld [vmem:[#allocation19_spill] sm:$0xff] }
  0xa6   :  { %1394 = vmatpush2.msra.mxu1 %v6924_v30  ;;  %1571 = vmatpush1.msra.mxu0 %v6926_v50  ;;  %v6937_v50 = vand.u32 4294901760, %v6936_v18  ;;  %v6944_v61 = vld [vmem:[#allocation21_spill] sm:$0xff]  ;;  %v6947_v18 = vand.u32 4294901760, %v3817_v42  ;;  %v6954_v42 = vld [vmem:[#allocation99_spill] sm:$0xff] }
  0xa7   :  { %1396 = vmatprep.subr.mxu1 %v6927_v37  ;;  %1575 = vmatprep.subr.mxu0 %v6929_v31  ;;  %v6939_v31 = vand.u32 4294901760, %v6938_v43 }
  0xa8   :  { %1176 = vmatprep.mubr.f32.mxu0 %v6930_v23  ;;  %1398 = vmatpush2.msra.mxu1 %v6931_v39  ;;  %v6941_v23 = vand.u32 4294901760, %v6940_v44  ;;  %v6968_v44 = vld [vmem:[#allocation34_spill] sm:$0xff] }
  0xa9   :  { %1402 = vmatprep.mubr.f32.mxu1 %v6932_v45  ;;  %1579 = vmatpush1.msra.mxu0 %v6934_v25  ;;  %v6942_v45 = vld [vmem:[#allocation103_spill] sm:$0xff] }
  0xaa   :  { %1179 = vmatmul.mubr.f32.gmra.mxu0 %v4434_v20  ;;  %1406 = vmatmul.mubr.f32.vlgmr.msra.gmra.mxu1 %v6935_v33  ;;  %v6943_v25 = vld [vmem:[#allocation87_spill] sm:$0xff]  ;;  %v6945_v20 = vand.u32 4294901760, %v6944_v61  ;;  %v6970_v61 = vld [vmem:[#allocation10_spill] sm:$0xff] }
  0xab   :  { %1583 = vmatprep.subr.mxu0 %v6937_v50  ;;  %1876 = vmatprep.subr.mxu1 %v3668_v3  ;;  %v6946_v3 = vld [vmem:[#allocation89_spill] sm:$0xff]  ;;  %v6952_v50 = vand.u32 4294901760, %v3855_v6  ;;  %v6960_v6 = vld [vmem:[#allocation30_spill] sm:$0xff] }
  0xac   :  { %1587 = vmatpush1.msra.mxu0 %v6939_v31  ;;  %1878 = vmatpush1.msra.mxu1 %v3670_v4  ;;  %v6948_v4 = vand.u32 4294901760, %v3829_v48  ;;  %v6957_v48 = vand.u32 4294901760, %v3907_v55  ;;  %v6961_v43 = vand.u32 4294901760, %v6960_v6  ;;  %v6965_v31 = vld [vmem:[#allocation32_spill] sm:$0xff]  ;;  %v6978_v6 = vld [vmem:[#allocation14_spill] sm:$0xff] }
  0xad   :  { %1591 = vmatprep.subr.mxu0 %v6941_v23  ;;  %1186 = vmatprep.mubr.f32.mxu0 %v6942_v45  ;;  %v6949_v23 = vand.u32 4294901760, %v3843_v57  ;;  %v6959_v57 = vld [vmem:[#allocation108_spill] sm:$0xff]  ;;  %v201_v33 = vld [vmem:[#allocation2 + $0x220] sm:$0xff] }
  0xae   :  { %1414 = vmatprep.mubr.f32.mxu1 %v6943_v25  ;;  %1595 = vmatpush1.msra.mxu0 %v6945_v20  ;;  %v6951_v20 = vld [vmem:[#allocation95_spill] sm:$0xff]  ;;  %v6967_v55 = vld [vmem:[#allocation8_spill] sm:$0xff] }
  0xaf   :  { %1880 = vmatprep.subr.mxu1 %v3672_v5  ;;  %1189 = vmatmul.mubr.f32.gmra.mxu0 %v4469_v29  ;;  %v6950_v5 = vld [vmem:[#allocation105_spill] sm:$0xff] }
  0xb0   :  { %1418 = vmatmul.mubr.f32.gmra.mxu1 %v6946_v3  ;;  %1599 = vmatprep.subr.mxu0 %v6947_v18  ;;  %v6971_v18 = vld [vmem:[#allocation36_spill] sm:$0xff]  ;;  %v204_v3 = vld [vmem:[#allocation2 + $0x238] sm:$0xff] }
  0xb1   :  { %1882 = vmatpush1.msra.mxu1 %v3674_v9  ;;  %1603 = vmatpush1.msra.mxu0 %v6948_v4  ;;  %v6953_v9 = vld [vmem:[#allocation106_spill] sm:$0xff]  ;;  %v6972_v4 = vand.u32 4294901760, %v6971_v18  ;;  %v6987_v18 = vld [vmem:[#allocation44_spill] sm:$0xff] }
  0xb2   :  { %1884 = vmatprep.subr.mxu1 %v3676_v10  ;;  %1607 = vmatprep.subr.mxu0 %v6949_v23  ;;  %v6955_v10 = vand.u32 4294901760, %v3876_v54  ;;  %v6962_v54 = vld [vmem:[#allocation6_spill] sm:$0xff]  ;;  %v6973_v23 = vld [vmem:[#allocation12_spill] sm:$0xff] }
  0xb3   :  { %1886 = vmatpush1.msra.mxu1 %v3678_v11  ;;  %1196 = vmatprep.mubr.f32.mxu0 %v6950_v5  ;;  %v6956_v11 = vand.u32 4294901760, %v3889_v63  ;;  %v6964_v63 = vld [vmem:[#allocation109_spill] sm:$0xff] }
  0xb4   :  { %1426 = vmatprep.mubr.f32.mxu1 %v6951_v20  ;;  %1611 = vmatpush1.msra.mxu0 %v6952_v50  ;;  %v6974_v50 = vld [vmem:[#allocation122_spill] sm:$0xff]  ;;  %v7100_v20 = vld [vmem:[#allocation136_spill] sm:$0xff] }
  0xb5   :  { %1888 = vmatprep.subr.mxu1 %v3681_v15  ;;  %1199 = vmatmul.mubr.f32.gmra.mxu0 %v6953_v9  ;;  %v6958_v15 = vld [vmem:[#allocation114_spill] sm:$0xff] }
  0xb6   :  { %1430 = vmatmul.mubr.f32.gmra.mxu1 %v6954_v42  ;;  %1615 = vmatprep.subr.mxu0 %v6955_v10  ;;  %v6975_v10 = vld [vmem:[#allocation112_spill] sm:$0xff] }
  0xb7   :  { %1890 = vmatpush1.msra.mxu1 %v3683_v16  ;;  %1619 = vmatpush1.msra.mxu0 %v6956_v11  ;;  %v6963_v16 = vld [vmem:[#allocation115_spill] sm:$0xff]  ;;  %v6976_v11 = vld [vmem:[#allocation38_spill] sm:$0xff] }
  0xb8   :  { %1892 = vmatprep.subr.mxu1 %v3685_v17  ;;  %1623 = vmatprep.subr.mxu0 %v6957_v48  ;;  %v6966_v17 = vand.u32 4294901760, %v6965_v31  ;;  %v6977_v48 = vand.u32 4294901760, %v6976_v11  ;;  %v6981_v31 = vld [vmem:[#allocation40_spill] sm:$0xff]  ;;  %v6990_v11 = vld [vmem:[#allocation131_spill] sm:$0xff] }
  0xb9   :  { %1894 = vmatpush1.msra.mxu1 %v3698_v22  ;;  %1206 = vmatprep.mubr.f32.mxu0 %v6958_v15  ;;  %v6969_v22 = vand.u32 4294901760, %v6968_v44  ;;  %v6984_v44 = vld [vmem:[#allocation42_spill] sm:$0xff] }
  0xba   :  { %1438 = vmatprep.mubr.f32.mxu1 %v6959_v57  ;;  %1627 = vmatpush1.msra.mxu0 %v6961_v43  ;;  %v6979_v43 = vld [vmem:[#allocation124_spill] sm:$0xff] }
  0xbb   :  { %1896 = vmatprep.subr.mxu1 %v6962_v54  ;;  %1209 = vmatmul.mubr.f32.gmra.mxu0 %v6963_v16  ;;  %v6980_v54 = vld [vmem:[#allocation113_spill] sm:$0xff]  ;;  %v7091_v16 = vld [vmem:[#allocation126_spill] sm:$0xff] }
  0xbc   :  { %1442 = vmatmul.mubr.f32.gmra.mxu1 %v6964_v63  ;;  %1631 = vmatprep.subr.mxu0 %v6966_v17  ;;  %v6982_v17 = vand.u32 4294901760, %v6981_v31  ;;  %v6994_v31 = vld [vmem:[#allocation22_spill] sm:$0xff]  ;;  %v135_v63 = vld [vmem:[#allocation2 + $0x10] sm:$0xff] }
  0xbd   :  { %1898 = vmatpush1.msra.mxu1 %v6967_v55  ;;  %1635 = vmatpush1.msra.mxu0 %v6969_v22  ;;  %v6983_v55 = vld [vmem:[#allocation16_spill] sm:$0xff]  ;;  %v6985_v22 = vand.u32 4294901760, %v6984_v44  ;;  %v5273_v9 = vand.u32 4294901760, %v135_v63 }
  0xbe   :  { %1900 = vmatprep.subr.mxu1 %v6970_v61  ;;  %1639 = vmatprep.subr.mxu0 %v6972_v4  ;;  %v6986_v61 = vld [vmem:[#allocation18_spill] sm:$0xff]  ;;  %v6988_v4 = vand.u32 4294901760, %v6987_v18  ;;  %v6997_v44 = vld [vmem:[#allocation48_spill] sm:$0xff] }
  0xbf   :  { %1902 = vmatpush1.msra.mxu1 %v6973_v23  ;;  %1216 = vmatprep.mubr.f32.mxu0 %v6974_v50  ;;  %v6989_v23 = vld [vmem:[#allocation20_spill] sm:$0xff]  ;;  %v7000_v18 = vld [vmem:[#allocation50_spill] sm:$0xff]  ;;  %v138_v50 = vld [vmem:[#allocation2 + $0x28] sm:$0xff]  ;;  %7094 = vst [vmem:[#allocation51_spill] sm:$0xff] %v5273_v9  ;;  %v5291_v29 = vsub.f32 %v135_v63, %v5273_v9 }
  0xc0   :  { %1450 = vmatprep.mubr.f32.mxu1 %v6975_v10  ;;  %1643 = vmatpush1.msra.mxu0 %v6977_v48  ;;  %v6991_v48 = vld [vmem:[#allocation117_spill] sm:$0xff] }
  0xc1   :  { %1904 = vmatprep.subr.mxu1 %v6978_v6  ;;  %1219 = vmatmul.mubr.f32.gmra.mxu0 %v6979_v43  ;;  %v6992_v6 = vld [vmem:[#allocation46_spill] sm:$0xff]  ;;  %7098 = vst [vmem:[#allocation59_spill] sm:$0xff] %v5291_v29 }
  0xc2   :  { %1454 = vmatmul.mubr.f32.gmra.mxu1 %v6980_v54  ;;  %1647 = vmatprep.subr.mxu0 %v6982_v17  ;;  %v6993_v54 = vand.u32 4294901760, %v6992_v6  ;;  %v6995_v17 = vld [vmem:[#allocation133_spill] sm:$0xff]  ;;  %v7006_v6 = vld [vmem:[#allocation139_spill] sm:$0xff] }
  0xc3   :  { %1906 = vmatpush1.msra.mxu1 %v6983_v55  ;;  %1651 = vmatpush1.msra.mxu0 %v6985_v22  ;;  %v6996_v55 = vld [vmem:[#allocation121_spill] sm:$0xff]  ;;  %v6998_v22 = vand.u32 4294901760, %v6997_v44  ;;  %v7010_v44 = vld [vmem:[#allocation26_spill] sm:$0xff] }
  0xc4   :  { %1908 = vmatprep.subr.mxu1 %v6986_v61  ;;  %1655 = vmatprep.subr.mxu0 %v6988_v4  ;;  %v6999_v61 = vld [vmem:[#allocation23_spill] sm:$0xff]  ;;  %v7001_v4 = vand.u32 4294901760, %v7000_v18  ;;  %v7013_v18 = vld [vmem:[#allocation56_spill] sm:$0xff] }
  0xc5   :  { %1910 = vmatpush1.msra.mxu1 %v6989_v23  ;;  %1226 = vmatprep.mubr.f32.mxu0 %v6990_v11  ;;  %v7002_v23 = vld [vmem:[#allocation24_spill] sm:$0xff] }
  0xc6   :  { %1462 = vmatprep.mubr.f32.mxu1 %v6991_v48  ;;  %1659 = vmatpush1.msra.mxu0 %v6993_v54  ;;  %v7003_v48 = vld [vmem:[#allocation52_spill] sm:$0xff]  ;;  %v7005_v54 = vld [vmem:[#allocation25_spill] sm:$0xff] }
  0xc7   :  { %1912 = vmatprep.subr.mxu1 %v6994_v31  ;;  %1229 = vmatmul.mubr.f32.gmra.mxu0 %v6995_v17  ;;  %v7004_v11 = vand.u32 4294901760, %v7003_v48  ;;  %v7007_v31 = vld [vmem:[#allocation127_spill] sm:$0xff] }
  0xc8   :  { %1466 = vmatmul.mubr.f32.gmra.mxu1 %v6996_v55  ;;  %1663 = vmatprep.subr.mxu0 %v6998_v22  ;;  %v7008_v55 = vld [vmem:[#allocation54_spill] sm:$0xff]  ;;  %v7011_v22 = vld [vmem:[#allocation141_spill] sm:$0xff] }
  0xc9   :  { %1914 = vmatpush1.msra.mxu1 %v6999_v61  ;;  %1667 = vmatpush1.msra.mxu0 %v7001_v4  ;;  %v7009_v17 = vand.u32 4294901760, %v7008_v55  ;;  %v7012_v61 = vld [vmem:[#allocation130_spill] sm:$0xff]  ;;  %v7014_v4 = vand.u32 4294901760, %v7013_v18  ;;  %v7019_v55 = vld [vmem:[#allocation147_spill] sm:$0xff]  ;;  %v7023_v18 = vld [vmem:[#allocation149_spill] sm:$0xff] }
  0xca   :  { %1916 = vmatprep.subr.mxu1 %v7002_v23  ;;  %1671 = vmatprep.subr.mxu0 %v7004_v11  ;;  %v7015_v11 = vld [vmem:[#allocation58_spill] sm:$0xff]  ;;  %v7017_v23 = vand.u32 4294901760, %v6877_v21 }
  0xcb   :  { %1918 = vmatpush1.msra.mxu1 %v7005_v54  ;;  %1236 = vmatprep.mubr.f32.mxu0 %v7006_v6  ;;  %v7016_v48 = vand.u32 4294901760, %v7015_v11  ;;  %v7020_v54 = vld [vmem:[#allocation135_spill] sm:$0xff]  ;;  %v7028_v11 = vld [vmem:[#allocation33_spill] sm:$0xff] }
  0xcc   :  { %1474 = vmatprep.mubr.f32.mxu1 %v7007_v31  ;;  %1675 = vmatpush1.msra.mxu0 %v7009_v17  ;;  %v7018_v17 = vld [vmem:[#allocation29_spill] sm:$0xff]  ;;  %v7086_v31 = vld [vmem:[#allocation116_spill] sm:$0xff] }
  0xcd   :  { %1920 = vmatprep.subr.mxu1 %v7010_v44  ;;  %1239 = vmatmul.mubr.f32.gmra.mxu0 %v7011_v22  ;;  %v7021_v44 = vld [vmem:[#allocation62_spill] sm:$0xff] }
  0xce   :  { %1478 = vmatmul.mubr.f32.gmra.mxu1 %v7012_v61  ;;  %1679 = vmatprep.subr.mxu0 %v7014_v4  ;;  %v7022_v61 = vand.u32 4294901760, %v7021_v44  ;;  %v7025_v4 = vand.u32 4294901760, %v4160_v13  ;;  %v7033_v13 = vld [vmem:[#allocation157_spill] sm:$0xff]  ;;  %v7035_v44 = vand.u32 4294901760, %v4217_v46  ;;  %v7041_v46 = vld [vmem:[#allocation164_spill] sm:$0xff] }
  0xcf   :  { %1922 = vmatpush1.msra.mxu1 %v6871_v0  ;;  %1683 = vmatpush1.msra.mxu0 %v7016_v48  ;;  %v7024_v0 = vld [vmem:[#allocation138_spill] sm:$0xff]  ;;  %v7029_v48 = vand.u32 4294901760, %v6890_v8  ;;  %v7036_v8 = vand.u32 4294901760, %v4230_v47 }
  0xd0   :  { %1924 = vmatprep.subr.mxu1 %v6876_v12  ;;  %1701 = vmatprep.subr.mxu0 %v7017_v23  ;;  %v7026_v12 = vld [vmem:[#allocation65_spill] sm:$0xff]  ;;  %v7031_v23 = vld [vmem:[#allocation143_spill] sm:$0xff]  ;;  %v7042_v47 = vld [vmem:[#allocation154_spill] sm:$0xff] }
  0xd1   :  { %1926 = vmatpush1.msra.mxu1 %v7018_v17  ;;  %1246 = vmatprep.mubr.f32.mxu0 %v7019_v55  ;;  %v7027_v21 = vand.u32 4294901760, %v7026_v12  ;;  %v7032_v17 = vand.u32 4294901760, %v6893_v32  ;;  %v7039_v32 = vld [vmem:[#allocation151_spill] sm:$0xff]  ;;  %v7052_v12 = vld [vmem:[#allocation57_spill] sm:$0xff] }
  0xd2   :  { %1486 = vmatprep.mubr.f32.mxu1 %v7020_v54  ;;  %1705 = vmatpush2.msra.mxu0 %v7022_v61  ;;  %v7030_v61 = vld [vmem:[#allocation155_spill] sm:$0xff] }
  0xd3   :  { %1249 = vmatmul.mubr.f32.gmra.mxu0 %v7023_v18  ;;  %1490 = vmatmul.mubr.f32.gmra.mxu1 %v7024_v0 }
  0xd4   :  { %1709 = vmatprep.subr.mxu0 %v7025_v4  ;;  %1928 = vmatprep.subr.mxu1 %v6885_v40  ;;  %v7034_v40 = vld [vmem:[#allocation146_spill] sm:$0xff]  ;;  %v7040_v4 = vand.u32 4294901760, %v4261_v1  ;;  %v7045_v1 = vand.u32 4294901760, %v4302_v14  ;;  %v7050_v14 = vand.u32 4294901760, %v4352_v56  ;;  %v7056_v56 = vand.u32 4294901760, %v4387_v19 }
  0xd5   :  { %1713 = vmatpush2.msra.mxu0 %v7027_v21  ;;  %1930 = vmatpush1.msra.mxu1 %v7028_v11  ;;  %v174_v11 = vld [vmem:[#allocation2 + $0x148] sm:$0xff] }
  0xd6   :  { %1717 = vmatprep.subr.mxu0 %v7029_v48  ;;  %1932 = vmatprep.subr.mxu1 %v6891_v41  ;;  %v7037_v41 = vand.u32 4294901760, %v4249_v49  ;;  %v7044_v49 = vand.u32 4294901760, %v4279_v51  ;;  %v7049_v51 = vld [vmem:[#allocation162_spill] sm:$0xff]  ;;  %v7055_v48 = vld [vmem:[#allocation28_spill] sm:$0xff] }
  0xd7   :  { %1256 = vmatprep.mubr.f32.mxu0 %v7030_v61  ;;  %1498 = vmatprep.mubr.f32.mxu1 %v7031_v23  ;;  %v7081_v61 = vld [vmem:[#allocation107_spill] sm:$0xff] }
  0xd8   :  { %1721 = vmatpush2.msra.mxu0 %v7032_v17  ;;  %1934 = vmatpush1.msra.mxu1 %v6894_v24  ;;  %v7038_v24 = vld [vmem:[#allocation163_spill] sm:$0xff] }
  0xd9   :  { %1259 = vmatmul.mubr.f32.gmra.mxu0 %v7033_v13  ;;  %1502 = vmatmul.mubr.f32.gmra.mxu1 %v7034_v40  ;;  %v7058_v17 = vld [vmem:[#allocation167_spill] sm:$0xff] }
  0xda   :  { %1725 = vmatprep.subr.mxu0 %v7035_v44  ;;  %1936 = vmatprep.subr.mxu1 %v6897_v52  ;;  %v180_v52 = vld [vmem:[#allocation2 + $0x178] sm:$0xff]  ;;  %v7059_v44 = vld [vmem:[#allocation75_spill] sm:$0xff] }
  0xdb   :  { %1729 = vmatpush2.msra.mxu0 %v7036_v8  ;;  %1938 = vmatpush1.msra.mxu1 %v6898_v59  ;;  %v7043_v59 = vand.u32 4294901760, %v6903_v2  ;;  %v7048_v2 = vand.u32 4294901760, %v4329_v26  ;;  %v7053_v26 = vld [vmem:[#allocation88_spill] sm:$0xff]  ;;  %v7060_v8 = vld [vmem:[#allocation63_spill] sm:$0xff] }
  0xdc   :  { %1733 = vmatprep.subr.mxu0 %v7037_v41  ;;  %1954 = vmatprep.subr.mxu1 %v6900_v27  ;;  %v7047_v27 = vld [vmem:[#allocation159_spill] sm:$0xff]  ;;  %v7054_v21 = vand.u32 4294901760, %v7053_v26  ;;  %v6582_v41 = vmov 0.0   ;;  %v7066_v26 = vld [vmem:[#allocation69_spill] sm:$0xff] }
  0xdd   :  { %1266 = vmatprep.mubr.f32.mxu0 %v7038_v24  ;;  %1510 = vmatprep.mubr.f32.mxu1 %v7039_v32 }
  0xde   :  { %1737 = vmatpush2.msra.mxu0 %v7040_v4  ;;  %1956 = vmatpush2.msra.mxu1 %v6901_v60  ;;  %v7046_v60 = vld [vmem:[#allocation168_spill] sm:$0xff] }
  0xdf   :  { %1269 = vmatmul.mubr.f32.gmra.mxu0 %v7041_v46  ;;  %1514 = vmatmul.mubr.f32.gmra.mxu1 %v7042_v47  ;;  %v171_v4 = vld [vmem:[#allocation2 + $0x130] sm:$0xff] }
  0xe0   :  { %1741 = vmatprep.subr.mxu0 %v7043_v59  ;;  %1958 = vmatprep.subr.mxu1 %v6904_v35  ;;  %v5063_v35 = vand.u32 4294901760, %v180_v52  ;;  %v7061_v59 = vld [vmem:[#allocation64_spill] sm:$0xff] }
  0xe1   :  { %1745 = vmatpush2.msra.mxu0 %v7044_v49  ;;  %1960 = vmatpush2.msra.mxu1 %v6905_v28  ;;  %v7051_v28 = vand.u32 4294901760, %v4356_v36  ;;  %v7057_v36 = vld [vmem:[#allocation74_spill] sm:$0xff]  ;;  %v7062_v49 = vld [vmem:[#allocation67_spill] sm:$0xff]  ;;  %v7077_v46 = vld [vmem:[#allocation100_spill] sm:$0xff] }
  0xe2   :  { %1749 = vmatprep.subr.mxu0 %v7045_v1  ;;  %1962 = vmatprep.subr.mxu1 %v6907_v53  ;;  %v177_v53 = vld [vmem:[#allocation2 + $0x160] sm:$0xff]  ;;  %v7064_v1 = vld [vmem:[#allocation81_spill] sm:$0xff] }
  0xe3   :  { %1276 = vmatprep.mubr.f32.mxu0 %v7046_v60  ;;  %1522 = vmatprep.mubr.f32.mxu1 %v7047_v27 }
  0xe4   :  { %1753 = vmatpush2.msra.mxu0 %v7048_v2  ;;  %1964 = vmatpush2.msra.mxu1 %v6908_v34  ;;  %v5077_v34 = vsub.f32 %v180_v52, %v5063_v35  ;;  %v7063_v52 = vld [vmem:[#allocation66_spill] sm:$0xff]  ;;  %v168_v2 = vld [vmem:[#allocation2 + $0x118] sm:$0xff] }
  0xe5   :  { %1279 = vmatmul.mubr.f32.gmra.mxu0 %v4813_v38  ;;  %1526 = vmatmul.mubr.f32.gmra.mxu1 %v7049_v51 }
  0xe6   :  { %1757 = vmatprep.subr.mxu0 %v7050_v14  ;;  %1966 = vmatprep.subr.mxu1 %v6909_v7  ;;  %v5082_v7 = vand.u32 4294901760, %v177_v53  ;;  %v6581_v19 = vand.u32 4294901760, %v5077_v34  ;;  %v7065_v14 = vld [vmem:[#allocation68_spill] sm:$0xff] }
  0xe7   :  { %1761 = vmatpush2.msra.mxu0 %v7051_v28  ;;  %1968 = vmatpush2.msra.mxu1 %v7052_v12  ;;  %v5105_v12 = vand.u32 4294901760, %v171_v4 }
  0xe8   :  { %1765 = vmatprep.subr.mxu0 %v7054_v21  ;;  %1970 = vmatprep.subr.mxu1 %v6911_v62  ;;  %v5088_v62 = vand.u32 4294901760, %v174_v11  ;;  %v7067_v21 = vld [vmem:[#allocation82_spill] sm:$0xff] }
  0xe9   :  { %1534 = vmatprep.mubr.f32.mxu1 %v7055_v48  ;;  %1769 = vmatpush2.msra.mxu0 %v7056_v56  ;;  %v7068_v56 = vld [vmem:[#allocation70_spill] sm:$0xff] }
  0xea   :  { %1771 = vmatprep.mubr.f32.mxu0 %v7057_v36  ;;  %1972 = vmatpush2.msra.mxu1 %v6912_v58  ;;  %v5096_v58 = vsub.f32 %v177_v53, %v5082_v7  ;;  %v5103_v28 = vsub.f32 %v174_v11, %v5088_v62  ;;  %v2383_v53 = vsub.f32 %v5077_v34, %v6581_v19  ;;  %v165_v11 = vld [vmem:[#allocation2 + $0x100] sm:$0xff] }
  0xeb   :  { %1538 = vmatmul.mubr.f32.gmra.mxu1 %v7058_v17  ;;  %1773 = vmatmul.mubr.f32.vlgmr.msra.gmra.mxu0 %v7059_v44  ;;  %v7074_v17 = vld [vmem:[#allocation97_spill] sm:$0xff] }
  0xec   :  { %1974 = vmatprep.subr.mxu1 %v7060_v8  ;;  %2094 = vmatprep.subr.mxu0 %v6582_v41  ;;  %v5114_v8 = vand.u32 4294901760, %v168_v2  ;;  %v2384_v19 = vand.u32 4294901760, %v2383_v53  ;;  %v7073_v53 = vand.u32 4294901760, %v5103_v28 }
  0xed   :  { %1976 = vmatpush2.msra.mxu1 %v7061_v59  ;;  %1546 = vmatprep.mubr.f32.mxu1 %v7062_v49  ;;  %v162_v59 = vld [vmem:[#allocation2 + $0xe8] sm:$0xff]  ;;  %v7075_v49 = vld [vmem:[#allocation98_spill] sm:$0xff] }
  0xee   :  { %1978 = vmatprep.subr.mxu1 %v7063_v52  ;;  %1779 = vmatprep.mubr.f32.mxu0 %v7064_v1  ;;  %v5122_v52 = vsub.f32 %v171_v4, %v5105_v12 }
  0xef   :  { %1980 = vmatpush2.msra.mxu1 %v7065_v14  ;;  %2096 = vmatpush1.msra.mxu0 %v5063_v35  ;;  %v7071_v14 = vld [vmem:[#allocation93_spill] sm:$0xff] }
  0xf0   :  { %1550 = vmatmul.mubr.f32.gmra.mxu1 %v7066_v26  ;;  %1781 = vmatmul.mubr.f32.gmra.mxu0 %v7067_v21  ;;  %v2397_v26 = vsub.f32 %v5103_v28, %v7073_v53  ;;  %v156_v53 = vld [vmem:[#allocation2 + $0xb8] sm:$0xff] }
  0xf1   :  { %1982 = vmatprep.subr.mxu1 %v7068_v56  ;;  %2097 = vmatprep.subr.mxu0 %v6582_v41  ;;  %v7069_v56 = vld [vmem:[#allocation90_spill] sm:$0xff]  ;;  %v5172_v47 = vand.u32 4294901760, %v156_v53 }
  0xf2   :  { %1984 = vmatpush2.msra.mxu1 %v6924_v30  ;;  %2099 = vmatpush1.msra.mxu0 %v5082_v7  ;;  %v5130_v30 = vsub.f32 %v168_v2, %v5114_v8  ;;  %v5144_v2 = vand.u32 4294901760, %v162_v59 }
  0xf3   :  { %1986 = vmatprep.subr.mxu1 %v6927_v37  ;;  %2100 = vmatprep.subr.mxu0 %v6582_v41  ;;  %v7070_v37 = vand.u32 4294901760, %v5096_v58  ;;  %v5135_v41 = vand.u32 4294901760, %v165_v11 }
  0xf4   :  { %1787 = vmatprep.mubr.f32.mxu0 %v7069_v56  ;;  %1988 = vmatpush2.msra.mxu1 %v6931_v39  ;;  %v7072_v39 = vmov 0.0   ;;  %v6585_v38 = vand.u32 4294901760, %v5130_v30  ;;  %v5159_v27 = vsub.f32 %v162_v59, %v5144_v2  ;;  %v7078_v59 = vld [vmem:[#allocation101_spill] sm:$0xff] }
  0xf5   :  { %1990 = vmatprep.mubr.f32.mxu1 %v7057_v36  ;;  %2102 = vmatpush1.msra.mxu0 %v5088_v62  ;;  %v2390_v4 = vsub.f32 %v5096_v58, %v7070_v37  ;;  %v159_v37 = vld [vmem:[#allocation2 + $0xd0] sm:$0xff]  ;;  %v5151_v51 = vsub.f32 %v165_v11, %v5135_v41 }
  0xf6   :  { %1789 = vmatmul.mubr.f32.gmra.mxu0 %v7071_v14  ;;  %1992 = vmatmul.mubr.f32.vlgmr.msra.gmra.mxu1 %v7059_v44  ;;  %v5164_v60 = vand.u32 4294901760, %v159_v37  ;;  %v6586_v24 = vand.u32 4294901760, %v5159_v27 }
  0xf7   :  { %2103 = vmatprep.subr.mxu0 %v7072_v39  ;;  %2379 = vmatprep.subr.mxu1 %v7072_v39  ;;  %v2391_v48 = vand.u32 4294901760, %v2390_v4  ;;  %v7076_v4 = vand.u32 4294901760, %v5122_v52 }
  0xf8   :  { %2105 = vmatpush1.msra.mxu0 %v5105_v12  ;;  %2385 = vmatpush1.msra.mxu1 %v2384_v19  ;;  %v2398_v19 = vand.u32 4294901760, %v2397_v26  ;;  %v2411_v26 = vsub.f32 %v5130_v30, %v6585_v38  ;;  %v150_v38 = vld [vmem:[#allocation2 + $0x88] sm:$0xff] }
  0xf9   :  { %2106 = vmatprep.subr.mxu0 %v7072_v39  ;;  %1795 = vmatprep.mubr.f32.mxu0 %v7074_v17  ;;  %v2404_v11 = vsub.f32 %v5122_v52, %v7076_v4  ;;  %v153_v4 = vld [vmem:[#allocation2 + $0xa0] sm:$0xff]  ;;  %v5200_v23 = vand.u32 4294901760, %v150_v38 }
  0xfa   :  { %1998 = vmatprep.mubr.f32.mxu1 %v7064_v1  ;;  %2108 = vmatpush1.msra.mxu0 %v5114_v8  ;;  %v2412_v40 = vand.u32 4294901760, %v2411_v26  ;;  %v5192_v13 = vand.u32 4294901760, %v153_v4  ;;  %v2425_v26 = vsub.f32 %v5159_v27, %v6586_v24  ;;  %v144_v24 = vld [vmem:[#allocation2 + $0x58] sm:$0xff] }
  0xfb   :  { %2386 = vmatprep.subr.mxu1 %v7072_v39  ;;  %1797 = vmatmul.mubr.f32.gmra.mxu0 %v7075_v49  ;;  %v2405_v32 = vand.u32 4294901760, %v2404_v11  ;;  %v7079_v11 = vand.u32 4294901760, %v5151_v51  ;;  %7080 = vst [vmem:[#allocation43_spill] sm:$0xff] %v5200_v23  ;;  %v5228_v22 = vand.u32 4294901760, %v144_v24 }
  0xfc   :  { %2000 = vmatmul.mubr.f32.gmra.mxu1 %v7067_v21  ;;  %2109 = vmatprep.subr.mxu0 %v7072_v39  ;;  %v2426_v54 = vand.u32 4294901760, %v2425_v26 }
  0xfd   :  { %2392 = vmatpush1.msra.mxu1 %v2391_v48  ;;  %2111 = vmatpush1.msra.mxu0 %v5135_v41  ;;  %v5179_v48 = vsub.f32 %v159_v37, %v5164_v60  ;;  %v2418_v37 = vsub.f32 %v5151_v51, %v7079_v11  ;;  %v147_v11 = vld [vmem:[#allocation2 + $0x70] sm:$0xff]  ;;  %7085 = vst [vmem:[#allocation76_spill] sm:$0xff] %v5228_v22 }
  0xfe   :  { %2393 = vmatprep.subr.mxu1 %v7072_v39  ;;  %2112 = vmatprep.subr.mxu0 %v7072_v39  ;;  %v5220_v55 = vand.u32 4294901760, %v147_v11  ;;  %v5243_v10 = vsub.f32 %v144_v24, %v5228_v22 }
  0xff   :  { %2399 = vmatpush1.msra.mxu1 %v2398_v19  ;;  %1803 = vmatprep.mubr.f32.mxu0 %v7077_v46  ;;  %v5187_v19 = vsub.f32 %v156_v53, %v5172_v47  ;;  %v2419_v0 = vand.u32 4294901760, %v2418_v37  ;;  %v7082_v53 = vld [vmem:[#allocation110_spill] sm:$0xff]  ;;  %v7083_v37 = vand.u32 4294901760, %v5179_v48 }
 0x100   :  { %2006 = vmatprep.mubr.f32.mxu1 %v7069_v56  ;;  %2114 = vmatpush1.msra.mxu0 %v5144_v2  ;;  %7084 = vst [vmem:[#allocation45_spill] sm:$0xff] %v5220_v55  ;;  %v6590_v15 = vand.u32 4294901760, %v5243_v10 }
 0x101   :  { %2400 = vmatprep.subr.mxu1 %v7072_v39  ;;  %1805 = vmatmul.mubr.f32.gmra.mxu0 %v7078_v59  ;;  %v6587_v18 = vand.u32 4294901760, %v5187_v19 }
 0x102   :  { %2008 = vmatmul.mubr.f32.gmra.mxu1 %v7071_v14  ;;  %2115 = vmatprep.subr.mxu0 %v7072_v39 }
 0x103   :  { %2406 = vmatpush1.msra.mxu1 %v2405_v32  ;;  %2117 = vmatpush1.msra.mxu0 %v5164_v60  ;;  %v5207_v32 = vsub.f32 %v153_v4, %v5192_v13  ;;  %v2432_v4 = vsub.f32 %v5179_v48, %v7083_v37  ;;  %v2439_v26 = vsub.f32 %v5187_v19, %v6587_v18  ;;  %v141_v37 = vld [vmem:[#allocation2 + $0x40] sm:$0xff] }
 0x104   :  { %2407 = vmatprep.subr.mxu1 %v7072_v39  ;;  %2118 = vmatprep.subr.mxu0 %v7072_v39  ;;  %v7087_v18 = vld [vmem:[#allocation118_spill] sm:$0xff] }
 0x105   :  { %2413 = vmatpush1.msra.mxu1 %v2412_v40  ;;  %1811 = vmatprep.mubr.f32.mxu0 %v7081_v61  ;;  %v5215_v40 = vsub.f32 %v150_v38, %v5200_v23  ;;  %v2433_v6 = vand.u32 4294901760, %v2432_v4  ;;  %v2440_v38 = vand.u32 4294901760, %v2439_v26 }
 0x106   :  { %2014 = vmatprep.mubr.f32.mxu1 %v7074_v17  ;;  %2120 = vmatpush1.msra.mxu0 %v5172_v47 }
 0x107   :  { %2414 = vmatprep.subr.mxu1 %v7072_v39  ;;  %1813 = vmatmul.mubr.f32.gmra.mxu0 %v7082_v53  ;;  %v6588_v43 = vand.u32 4294901760, %v5215_v40 }
 0x108   :  { %2016 = vmatmul.mubr.f32.gmra.mxu1 %v7075_v49  ;;  %2121 = vmatprep.subr.mxu0 %v7072_v39 }
 0x109   :  { %2420 = vmatpush1.msra.mxu1 %v2419_v0  ;;  %2123 = vmatpush1.msra.mxu0 %v5192_v13  ;;  %v5235_v0 = vsub.f32 %v147_v11, %v5220_v55  ;;  %v5248_v11 = vand.u32 4294901760, %v141_v37  ;;  %v2453_v26 = vsub.f32 %v5215_v40, %v6588_v43  ;;  %v7092_v43 = vld [vmem:[#allocation128_spill] sm:$0xff] }
 0x10a   :  { %2421 = vmatprep.subr.mxu1 %v7072_v39  ;;  %2124 = vmatprep.subr.mxu0 %v7072_v39 }
 0x10b   :  { %2427 = vmatpush1.msra.mxu1 %v2426_v54  ;;  %1819 = vmatprep.mubr.f32.mxu0 %v7086_v31  ;;  %v7088_v54 = vand.u32 4294901760, %v5207_v32  ;;  %7089 = vst [vmem:[#allocation47_spill] sm:$0xff] %v5248_v11  ;;  %v2454_v24 = vand.u32 4294901760, %v2453_v26  ;;  %v7093_v42 = vand.u32 4294901760, %v5235_v0  ;;  %v2467_v26 = vsub.f32 %v5243_v10, %v6590_v15 }
 0x10c   :  { %2022 = vmatprep.mubr.f32.mxu1 %v7077_v46  ;;  %2126 = vmatpush1.msra.mxu0 %v5200_v23 }
 0x10d   :  { %2428 = vmatprep.subr.mxu1 %v7072_v39  ;;  %1821 = vmatmul.mubr.f32.gmra.mxu0 %v7087_v18  ;;  %v2446_v4 = vsub.f32 %v5207_v32, %v7088_v54  ;;  %v5259_v54 = vand.u32 4294901760, %v138_v50  ;;  %v2468_v45 = vand.u32 4294901760, %v2467_v26 }
 0x10e   :  { %2024 = vmatmul.mubr.f32.gmra.mxu1 %v7078_v59  ;;  %2127 = vmatprep.subr.mxu0 %v7072_v39 }
 0x10f   :  { %2434 = vmatpush1.msra.mxu1 %v2433_v6  ;;  %2129 = vmatpush1.msra.mxu0 %v5220_v55  ;;  %7090 = vst [vmem:[#allocation49_spill] sm:$0xff] %v5259_v54  ;;  %v2447_v57 = vand.u32 4294901760, %v2446_v4  ;;  %v5263_v6 = vsub.f32 %v141_v37, %v5248_v11  ;;  %v207_v4 = vld [vmem:[#allocation2 + $0x250] sm:$0xff]  ;;  %v5278_v37 = vsub.f32 %v138_v50, %v5259_v54  ;;  %v7097_v50 = vld [vmem:[#allocation134_spill] sm:$0xff] }
 0x110   :  { %2435 = vmatprep.subr.mxu1 %v7072_v39  ;;  %2130 = vmatprep.subr.mxu0 %v7072_v39  ;;  %v5287_v5 = vand.u32 4294901760, %v207_v4 }
 0x111   :  { %2441 = vmatpush1.msra.mxu1 %v2440_v38  ;;  %1827 = vmatprep.mubr.f32.mxu0 %v7091_v16  ;;  %v2460_v38 = vsub.f32 %v5235_v0, %v7093_v42  ;;  %7095 = vst [vmem:[#allocation53_spill] sm:$0xff] %v5278_v37 }
 0x112   :  { %2030 = vmatprep.mubr.f32.mxu1 %v7081_v61  ;;  %2132 = vmatpush1.msra.mxu0 %v5228_v22  ;;  %7096 = vst [vmem:[#allocation55_spill] sm:$0xff] %v5287_v5  ;;  %v198_v22 = vld [vmem:[#allocation2 + $0x208] sm:$0xff] }
 0x113   :  { %2442 = vmatprep.subr.mxu1 %v7072_v39  ;;  %1829 = vmatmul.mubr.f32.gmra.mxu0 %v7092_v43 }
 0x114   :  { %2032 = vmatmul.mubr.f32.gmra.mxu1 %v7082_v53  ;;  %2133 = vmatprep.subr.mxu0 %v7072_v39  ;;  %v374_v42 = vpop.f32.mrf.mxu0 }
 0x115   :  { %2448 = vmatpush1.msra.mxu1 %v2447_v57  ;;  %2135 = vmatpush1.msra.mxu0 %v5248_v11  ;;  %v2461_v57 = vand.u32 4294901760, %v2460_v38  ;;  %v7102_v38 = vand.u32 4294901760, %v5263_v6 }
 0x116   :  { %2449 = vmatprep.subr.mxu1 %v7072_v39  ;;  %2136 = vmatprep.subr.mxu0 %v7072_v39  ;;  %v5293_v25 = vpop.f32.mrf.mxu0 }
 0x117   :  { %2455 = vmatpush1.msra.mxu1 %v2454_v24  ;;  %1835 = vmatprep.mubr.f32.mxu0 %v7097_v50  ;;  %7099 = vst [vmem:[#allocation61_spill] sm:$0xff] %v5293_v25  ;;  %v5300_v24 = vand.u32 4294901760, %v204_v3  ;;  %v2474_v63 = vsub.f32 %v5263_v6, %v7102_v38  ;;  %v5308_v25 = vsub.f32 %v207_v4, %v5287_v5  ;;  %v7105_v38 = vand.u32 4294901760, %v5278_v37  ;;  %v7106_v4 = vld [vmem:[#allocation142_spill] sm:$0xff] }
 0x118   :  { %2038 = vmatprep.mubr.f32.mxu1 %v7086_v31  ;;  %2138 = vmatpush1.msra.mxu0 %v5259_v54  ;;  %v5314_v54 = vand.u32 4294901760, %v201_v33 }
 0x119   :  { %2456 = vmatprep.subr.mxu1 %v7072_v39  ;;  %1837 = vmatmul.mubr.f32.gmra.mxu0 %v7100_v20  ;;  %7101 = vst [vmem:[#allocation5_spill] sm:$0xff] %v5300_v24  ;;  %7103 = vst [vmem:[#allocation7_spill] sm:$0xff] %v5308_v25  ;;  %v2481_v11 = vsub.f32 %v5278_v37, %v7105_v38  ;;  %v5330_v38 = vand.u32 4294901760, %v198_v22  ;;  %v195_v37 = vld [vmem:[#allocation2 + $0x1f0] sm:$0xff] }
 0x11a   :  { %2040 = vmatmul.mubr.f32.gmra.mxu1 %v7087_v18  ;;  %2139 = vmatprep.subr.mxu0 %v7072_v39  ;;  %v390_v26 = vpop.f32.mrf.mxu0  ;;  %7104 = vst [vmem:[#allocation71_spill] sm:$0xff] %v5314_v54  ;;  %v7109_v18 = vld [vmem:[#allocation144_spill] sm:$0xff]  ;;  %v5338_v15 = vsub.f32 %v201_v33, %v5314_v54 }
 0x11b   :  { %2462 = vmatpush1.msra.mxu1 %v2461_v57  ;;  %2141 = vmatpush1.msra.mxu0 %v5273_v9  ;;  %v5321_v57 = vsub.f32 %v204_v3, %v5300_v24  ;;  %v2475_v9 = vand.u32 4294901760, %v2474_v63  ;;  %7110 = vst [vmem:[#allocation11_spill] sm:$0xff] %v5330_v38 }
 0x11c   :  { %2463 = vmatprep.subr.mxu1 %v7072_v39  ;;  %2156 = vmatprep.subr.mxu0 %v7072_v39  ;;  %v5326_v55 = vpop.f32.mrf.mxu0  ;;  %7112 = vst [vmem:[#allocation73_spill] sm:$0xff] %v5338_v15 }
 0x11d   :  { %2469 = vmatpush1.msra.mxu1 %v2468_v45  ;;  %1843 = vmatprep.mubr.f32.mxu0 %v7106_v4  ;;  %7107 = vst [vmem:[#allocation9_spill] sm:$0xff] %v5321_v57  ;;  %7108 = vst [vmem:[#allocation72_spill] sm:$0xff] %v5326_v55  ;;  %v7111_v45 = vand.u32 4294901760, %v5291_v29  ;;  %v2482_v55 = vand.u32 4294901760, %v2481_v11  ;;  %v192_v11 = vld [vmem:[#allocation2 + $0x1d8] sm:$0xff] }
 0x11e   :  { %2046 = vmatprep.mubr.f32.mxu1 %v7091_v16  ;;  %2158 = vmatpush2.msra.mxu0 %v5287_v5 }
 0x11f   :  { %1845 = vmatmul.mubr.f32.gmra.mxu0 %v7109_v18  ;;  %2048 = vmatmul.mubr.f32.gmra.mxu1 %v7092_v43  ;;  %v2488_v3 = vsub.f32 %v5291_v29, %v7111_v45  ;;  %v889_v63 = vpop.f32.mrf.mxu1  ;;  %v5348_v45 = vand.u32 4294901760, %v195_v37  ;;  %v7116_v29 = vand.u32 4294901760, %v5308_v25 }
 0x120   :  { %2159 = vmatprep.subr.mxu0 %v7072_v39  ;;  %2470 = vmatprep.subr.mxu1 %v7072_v39  ;;  %v5340_v5 = vadd.f32 %v889_v63, %v374_v42  ;;  %v7117_v63 = vld [vmem:[#allocation150_spill] sm:$0xff] }
 0x121   :  { %2161 = vmatpush2.msra.mxu0 %v5300_v24  ;;  %2476 = vmatpush1.msra.mxu1 %v2475_v9  ;;  %v5344_v16 = vpop.f32.mrf.mxu1  ;;  %7115 = vst [vmem:[#allocation17_spill] sm:$0xff] %v5348_v45  ;;  %v2509_v33 = vsub.f32 %v5308_v25, %v7116_v29  ;;  %v406_v42 = vpop.f32.mrf.mxu0  ;;  %v5356_v9 = vsub.f32 %v198_v22, %v5330_v38  ;;  %v2489_v43 = vand.u32 4294901760, %v2488_v3  ;;  %v7121_v25 = vld [vmem:[#allocation152_spill] sm:$0xff]  ;;  %v7123_v22 = vand.u32 4294901760, %v5321_v57 }
 0x122   :  { %7113 = vst [vmem:[#allocation13_spill] sm:$0xff] %v5340_v5  ;;  %7114 = vst [vmem:[#allocation15_spill] sm:$0xff] %v5344_v16  ;;  %2162 = vmatprep.subr.mxu0 %v7072_v39  ;;  %2477 = vmatprep.subr.mxu1 %v7072_v39  ;;  %v189_v16 = vld [vmem:[#allocation2 + $0x1c0] sm:$0xff] }
 0x123   :  { %1851 = vmatprep.mubr.f32.mxu0 %v7117_v63  ;;  %2054 = vmatprep.mubr.f32.mxu1 %v7097_v50  ;;  %7118 = vst [vmem:[#allocation19_spill] sm:$0xff] %v5356_v9  ;;  %v897_v5 = vpop.f32.mrf.mxu1  ;;  %v5360_v31 = vpop.f32.mrf.mxu0  ;;  %v5366_v50 = vand.u32 4294901760, %v192_v11  ;;  %v2516_v3 = vsub.f32 %v5321_v57, %v7123_v22  ;;  %v5379_v24 = vand.u32 4294901760, %v189_v16  ;;  %v7127_v22 = vand.u32 4294901760, %v5338_v15 }
 0x124   :  { %2164 = vmatpush2.msra.mxu0 %v5314_v54  ;;  %2483 = vmatpush1.msra.mxu1 %v2482_v55  ;;  %7119 = vst [vmem:[#allocation21_spill] sm:$0xff] %v5360_v31  ;;  %v5362_v29 = vadd.f32 %v897_v5, %v390_v26  ;;  %v5376_v55 = vsub.f32 %v195_v37, %v5348_v45  ;;  %v2510_v5 = vand.u32 4294901760, %v2509_v33  ;;  %v186_v31 = vld [vmem:[#allocation2 + $0x1a8] sm:$0xff]  ;;  %v7129_v33 = vld [vmem:[#allocation158_spill] sm:$0xff]  ;;  %v183_v54 = vld [vmem:[#allocation2 + $0x190] sm:$0xff] }
 0x125   :  { %1853 = vmatmul.mubr.f32.gmra.mxu0 %v7121_v25  ;;  %2056 = vmatmul.mubr.f32.gmra.mxu1 %v7100_v20  ;;  %7122 = vst [vmem:[#allocation6_spill] sm:$0xff] %v5366_v50  ;;  %v5371_v23 = vpop.f32.mrf.mxu1  ;;  %7126 = vst [vmem:[#allocation34_spill] sm:$0xff] %v5379_v24  ;;  %v5395_v20 = vand.u32 4294901760, %v186_v31  ;;  %v5410_v57 = vand.u32 4294901760, %v183_v54 }
 0x126   :  { %7120 = vst [vmem:[#allocation30_spill] sm:$0xff] %v5362_v29  ;;  %7124 = vst [vmem:[#allocation32_spill] sm:$0xff] %v5371_v23  ;;  %2165 = vmatprep.subr.mxu0 %v7072_v39  ;;  %2484 = vmatprep.subr.mxu1 %v7072_v39  ;;  %v422_v26 = vpop.f32.mrf.mxu0  ;;  %v2523_v23 = vsub.f32 %v5338_v15, %v7127_v22 }
 0x127   :  { %7125 = vst [vmem:[#allocation8_spill] sm:$0xff] %v5376_v55  ;;  %2167 = vmatpush2.msra.mxu0 %v5330_v38  ;;  %2490 = vmatpush1.msra.mxu1 %v2489_v43  ;;  %v5392_v43 = vsub.f32 %v192_v11, %v5366_v50  ;;  %v2517_v38 = vand.u32 4294901760, %v2516_v3  ;;  %7130 = vst [vmem:[#allocation36_spill] sm:$0xff] %v5395_v20  ;;  %v5403_v11 = vsub.f32 %v189_v16, %v5379_v24 }
 0x128   :  { %2168 = vmatprep.subr.mxu0 %v7072_v39  ;;  %2505 = vmatprep.subr.mxu1 %v7072_v39  ;;  %v5387_v37 = vpop.f32.mrf.mxu0  ;;  %v7133_v3 = vand.u32 4294901760, %v5356_v9  ;;  %7134 = vst [vmem:[#allocation38_spill] sm:$0xff] %v5410_v57  ;;  %v5431_v16 = vsub.f32 %v183_v54, %v5410_v57  ;;  %v7147_v54 = vld [vmem:[#allocation83_spill] sm:$0xff] }
 0x129   :  { %7128 = vst [vmem:[#allocation10_spill] sm:$0xff] %v5387_v37  ;;  %1859 = vmatprep.mubr.f32.mxu0 %v7129_v33  ;;  %2062 = vmatprep.mubr.f32.mxu1 %v7106_v4  ;;  %v905_v29 = vpop.f32.mrf.mxu1  ;;  %v7132_v37 = vld [vmem:[#allocation160_spill] sm:$0xff] }
 0x12a   :  { %2170 = vmatpush2.msra.mxu0 %v5348_v45  ;;  %2511 = vmatpush2.msra.mxu1 %v2510_v5  ;;  %v438_v22 = vpop.f32.mrf.mxu0  ;;  %v5398_v15 = vadd.f32 %v905_v29, %v406_v42  ;;  %v2530_v4 = vsub.f32 %v5356_v9, %v7133_v3  ;;  %v2524_v5 = vand.u32 4294901760, %v2523_v23  ;;  %v5421_v3 = vsub.f32 %v186_v31, %v5395_v20  ;;  %v7139_v45 = vld [vmem:[#allocation165_spill] sm:$0xff] }
 0x12b   :  { %1861 = vmatmul.mubr.f32.gmra.mxu0 %v7132_v37  ;;  %2064 = vmatmul.mubr.f32.gmra.mxu1 %v7109_v18  ;;  %v5414_v29 = vpop.f32.mrf.mxu1  ;;  %v7138_v23 = vand.u32 4294901760, %v5376_v55  ;;  %7140 = vst [vmem:[#allocation42_spill] sm:$0xff] %v5431_v16 }
 0x12c   :  { %7131 = vst [vmem:[#allocation12_spill] sm:$0xff] %v5398_v15  ;;  %2171 = vmatprep.subr.mxu0 %v7072_v39  ;;  %2512 = vmatprep.subr.mxu1 %v7072_v39  ;;  %v5412_v42 = vpop.f32.mrf.mxu0  ;;  %7136 = vst [vmem:[#allocation40_spill] sm:$0xff] %v5414_v29 }
 0x12d   :  { %7135 = vst [vmem:[#allocation14_spill] sm:$0xff] %v5412_v42  ;;  %2173 = vmatpush2.msra.mxu0 %v5366_v50  ;;  %2518 = vmatpush2.msra.mxu1 %v2517_v38  ;;  %7137 = vst [vmem:[#allocation16_spill] sm:$0xff] %v5421_v3  ;;  %v2537_v15 = vsub.f32 %v5376_v55, %v7138_v23  ;;  %v2531_v42 = vand.u32 4294901760, %v2530_v4  ;;  %v7141_v50 = vld [vmem:[#allocation60_spill] sm:$0xff]  ;;  %v7142_v23 = vand.u32 4294901760, %v5392_v43 }
 0x12e   :  { %2174 = vmatprep.subr.mxu0 %v7072_v39  ;;  %2519 = vmatprep.subr.mxu1 %v7072_v39 }
 0x12f   :  { %1867 = vmatprep.mubr.f32.mxu0 %v7139_v45  ;;  %2070 = vmatprep.mubr.f32.mxu1 %v7117_v63  ;;  %v454_v29 = vpop.f32.mrf.mxu0  ;;  %v2544_v18 = vsub.f32 %v5392_v43, %v7142_v23 }
 0x130   :  { %2176 = vmatpush2.msra.mxu0 %v5379_v24  ;;  %2525 = vmatpush2.msra.mxu1 %v2524_v5  ;;  %v913_v31 = vpop.f32.mrf.mxu1  ;;  %v2538_v5 = vand.u32 4294901760, %v2537_v15  ;;  %v7146_v24 = vand.u32 4294901760, %v5403_v11 }
 0x131   :  { %1869 = vmatmul.mubr.f32.gmra.mxu0 %v7141_v50  ;;  %2072 = vmatmul.mubr.f32.gmra.mxu1 %v7121_v25  ;;  %v5438_v63 = vadd.f32 %v913_v31, %v422_v26  ;;  %v5440_v4 = vpop.f32.mrf.mxu0  ;;  %v2545_v15 = vand.u32 4294901760, %v2544_v18  ;;  %v7152_v18 = vand.u32 4294901760, %v5431_v16 }
 0x132   :  { %7144 = vst [vmem:[#allocation44_spill] sm:$0xff] %v5440_v4  ;;  %2177 = vmatprep.subr.mxu0 %v7072_v39  ;;  %2526 = vmatprep.subr.mxu1 %v7072_v39  ;;  %v5445_v38 = vpop.f32.mrf.mxu1  ;;  %v2551_v23 = vsub.f32 %v5403_v11, %v7146_v24 }
 0x133   :  { %7143 = vst [vmem:[#allocation18_spill] sm:$0xff] %v5438_v63  ;;  %7145 = vst [vmem:[#allocation20_spill] sm:$0xff] %v5445_v38  ;;  %2179 = vmatpush2.msra.mxu0 %v5395_v20  ;;  %2532 = vmatpush2.msra.mxu1 %v2531_v42  ;;  %v7148_v42 = vand.u32 4294901760, %v5421_v3  ;;  %v7149_v63 = vld [vmem:[#allocation84_spill] sm:$0xff] }
 0x134   :  { %2180 = vmatprep.subr.mxu0 %v7072_v39  ;;  %2533 = vmatprep.subr.mxu1 %v7072_v39  ;;  %v2552_v38 = vand.u32 4294901760, %v2551_v23 }
 0x135   :  { %2078 = vmatprep.mubr.f32.mxu1 %v7129_v33  ;;  %2182 = vmatpush2.msra.mxu0 %v5410_v57  ;;  %v470_v31 = vpop.f32.mrf.mxu0  ;;  %v2558_v4 = vsub.f32 %v5421_v3, %v7148_v42  ;;  %v7155_v42 = vld [vmem:[#allocation94_spill] sm:$0xff] }
 0x136   :  { %2188 = vmatprep.mubr.f32.mxu0 %v7147_v54  ;;  %2539 = vmatpush2.msra.mxu1 %v2538_v5  ;;  %v921_v24 = vpop.f32.mrf.mxu1  ;;  %v2565_v5 = vsub.f32 %v5431_v16, %v7152_v18 }
 0x137   :  { %2080 = vmatmul.mubr.f32.gmra.mxu1 %v7132_v37  ;;  %2194 = vmatmul.mubr.f32.vlgmr.msra.gmra.mxu0 %v7149_v63  ;;  %v5462_v26 = vadd.f32 %v921_v24, %v438_v22  ;;  %v5464_v20 = vpop.f32.mrf.mxu0  ;;  %v7154_v63 = vld [vmem:[#allocation92_spill] sm:$0xff]  ;;  %v2559_v22 = vand.u32 4294901760, %v2558_v4  ;;  %v7159_v4 = vld [vmem:[#allocation102_spill] sm:$0xff] }
 0x138   :  { %7151 = vst [vmem:[#allocation22_spill] sm:$0xff] %v5464_v20  ;;  %2540 = vmatprep.subr.mxu1 %v7072_v39  ;;  %2660 = vmatprep.subr.mxu0 %v7072_v39  ;;  %v5471_v54 = vpop.f32.mrf.mxu1  ;;  %v2566_v24 = vand.u32 4294901760, %v2565_v5  ;;  %v7160_v5 = vld [vmem:[#allocation111_spill] sm:$0xff] }
 0x139   :  { %7150 = vst [vmem:[#allocation46_spill] sm:$0xff] %v5462_v26  ;;  %7153 = vst [vmem:[#allocation48_spill] sm:$0xff] %v5471_v54  ;;  %2546 = vmatpush2.msra.mxu1 %v2545_v15  ;;  %2086 = vmatprep.mubr.f32.mxu1 %v7139_v45  ;;  %v7194_v54 = vld [vmem:[#allocation27_spill] sm:$0xff] }
 0x13a   :  { %2547 = vmatprep.subr.mxu1 %v7072_v39  ;;  %2203 = vmatprep.mubr.f32.mxu0 %v7154_v63 }
 0x13b   :  { %2553 = vmatpush2.msra.mxu1 %v2552_v38  ;;  %2663 = vmatpush1.msra.mxu0 %v5077_v34  ;;  %v486_v23 = vpop.f32.mrf.mxu0 }
 0x13c   :  { %2088 = vmatmul.mubr.f32.gmra.mxu1 %v7141_v50  ;;  %2209 = vmatmul.mubr.f32.gmra.mxu0 %v7155_v42  ;;  %v929_v18 = vpop.f32.mrf.mxu1 }
 0x13d   :  { %2554 = vmatprep.subr.mxu1 %v7072_v39  ;;  %2664 = vmatprep.subr.mxu0 %v7072_v39  ;;  %v5481_v15 = vadd.f32 %v929_v18, %v454_v29  ;;  %v5483_v20 = vpop.f32.mrf.mxu0  ;;  %v7164_v18 = vld [vmem:[#allocation119_spill] sm:$0xff] }
 0x13e   :  { %7157 = vst [vmem:[#allocation50_spill] sm:$0xff] %v5483_v20  ;;  %2560 = vmatpush2.msra.mxu1 %v2559_v22  ;;  %2667 = vmatpush1.msra.mxu0 %v5096_v58  ;;  %v5486_v38 = vpop.f32.mrf.mxu1 }
 0x13f   :  { %7156 = vst [vmem:[#allocation23_spill] sm:$0xff] %v5481_v15  ;;  %7158 = vst [vmem:[#allocation24_spill] sm:$0xff] %v5486_v38  ;;  %2561 = vmatprep.subr.mxu1 %v7072_v39  ;;  %2668 = vmatprep.subr.mxu0 %v7072_v39  ;;  %v7184_v15 = vld [vmem:[#allocation118_spill] sm:$0xff]  ;;  %v7188_v38 = vld [vmem:[#allocation76_spill] sm:$0xff] }
 0x140   :  { %2218 = vmatprep.mubr.f32.mxu0 %v7159_v4  ;;  %2567 = vmatpush2.msra.mxu1 %v2566_v24 }
 0x141   :  { %2569 = vmatprep.mubr.f32.mxu1 %v7057_v36  ;;  %2671 = vmatpush1.msra.mxu0 %v5103_v28  ;;  %v502_v29 = vpop.f32.mrf.mxu0  ;;  %v7187_v36 = vld [vmem:[#allocation59_spill] sm:$0xff] }
 0x142   :  { %2224 = vmatmul.mubr.f32.gmra.mxu0 %v7160_v5  ;;  %2571 = vmatmul.mubr.f32.vlgmr.msra.gmra.mxu1 %v7059_v44  ;;  %v937_v63 = vpop.f32.mrf.mxu1 }
 0x143   :  { %2672 = vmatprep.subr.mxu0 %v7072_v39  ;;  %2892 = vmatprep.subr.mxu1 %v7072_v39  ;;  %v5497_v22 = vadd.f32 %v937_v63, %v470_v31  ;;  %v5499_v42 = vpop.f32.mrf.mxu0  ;;  %v7165_v31 = vld [vmem:[#allocation120_spill] sm:$0xff] }
 0x144   :  { %7162 = vst [vmem:[#allocation25_spill] sm:$0xff] %v5499_v42  ;;  %2675 = vmatpush1.msra.mxu0 %v5122_v52  ;;  %2894 = vmatpush1.msra.mxu1 %v5063_v35  ;;  %v5503_v24 = vpop.f32.mrf.mxu1 }
 0x145   :  { %7161 = vst [vmem:[#allocation52_spill] sm:$0xff] %v5497_v22  ;;  %7163 = vst [vmem:[#allocation54_spill] sm:$0xff] %v5503_v24  ;;  %2676 = vmatprep.subr.mxu0 %v7072_v39  ;;  %2233 = vmatprep.mubr.f32.mxu0 %v7164_v18 }
 0x146   :  { %2576 = vmatprep.mubr.f32.mxu1 %v7064_v1  ;;  %2679 = vmatpush1.msra.mxu0 %v5130_v30 }
 0x147   :  { %2895 = vmatprep.subr.mxu1 %v7072_v39  ;;  %2239 = vmatmul.mubr.f32.gmra.mxu0 %v7165_v31  ;;  %v518_v4 = vpop.f32.mrf.mxu0  ;;  %v945_v5 = vpop.f32.mrf.mxu1  ;;  %v7168_v31 = vld [vmem:[#allocation123_spill] sm:$0xff] }
 0x148   :  { %2578 = vmatmul.mubr.f32.gmra.mxu1 %v7067_v21  ;;  %2680 = vmatprep.subr.mxu0 %v7072_v39  ;;  %v5513_v63 = vadd.f32 %v945_v5, %v486_v23  ;;  %v7169_v23 = vld [vmem:[#allocation125_spill] sm:$0xff]  ;;  %v7183_v21 = vld [vmem:[#allocation156_spill] sm:$0xff] }
 0x149   :  { %2897 = vmatpush1.msra.mxu1 %v5082_v7  ;;  %2683 = vmatpush1.msra.mxu0 %v5151_v51  ;;  %v5517_v18 = vpop.f32.mrf.mxu0  ;;  %v5519_v42 = vpop.f32.mrf.mxu1 }
 0x14a   :  { %7166 = vst [vmem:[#allocation26_spill] sm:$0xff] %v5513_v63  ;;  %7167 = vst [vmem:[#allocation56_spill] sm:$0xff] %v5519_v42  ;;  %2898 = vmatprep.subr.mxu1 %v7072_v39  ;;  %2684 = vmatprep.subr.mxu0 %v7072_v39 }
 0x14b   :  { %2900 = vmatpush1.msra.mxu1 %v5088_v62  ;;  %2248 = vmatprep.mubr.f32.mxu0 %v7168_v31 }
 0x14c   :  { %2583 = vmatprep.mubr.f32.mxu1 %v7069_v56  ;;  %2687 = vmatpush1.msra.mxu0 %v5159_v27  ;;  %v7179_v56 = vld [vmem:[#allocation153_spill] sm:$0xff] }
 0x14d   :  { %2901 = vmatprep.subr.mxu1 %v7072_v39  ;;  %2254 = vmatmul.mubr.f32.gmra.mxu0 %v7169_v23  ;;  %v534_v5 = vpop.f32.mrf.mxu0  ;;  %v953_v63 = vpop.f32.mrf.mxu1  ;;  %v7172_v23 = vld [vmem:[#allocation129_spill] sm:$0xff] }
 0x14e   :  { %2585 = vmatmul.mubr.f32.gmra.mxu1 %v7071_v14  ;;  %2688 = vmatprep.subr.mxu0 %v7072_v39  ;;  %v5531_v42 = vadd.f32 %v953_v63, %v502_v29  ;;  %v7173_v29 = vld [vmem:[#allocation132_spill] sm:$0xff] }
 0x14f   :  { %2903 = vmatpush1.msra.mxu1 %v5105_v12  ;;  %2691 = vmatpush1.msra.mxu0 %v5179_v48  ;;  %v5535_v31 = vpop.f32.mrf.mxu0  ;;  %v5537_v20 = vpop.f32.mrf.mxu1 }
 0x150   :  { %7170 = vst [vmem:[#allocation58_spill] sm:$0xff] %v5531_v42  ;;  %7171 = vst [vmem:[#allocation29_spill] sm:$0xff] %v5537_v20  ;;  %2904 = vmatprep.subr.mxu1 %v7072_v39  ;;  %2692 = vmatprep.subr.mxu0 %v7072_v39 }
 0x151   :  { %2906 = vmatpush1.msra.mxu1 %v5114_v8  ;;  %2263 = vmatprep.mubr.f32.mxu0 %v7172_v23 }
 0x152   :  { %2590 = vmatprep.mubr.f32.mxu1 %v7074_v17  ;;  %2695 = vmatpush1.msra.mxu0 %v5187_v19 }
 0x153   :  { %2907 = vmatprep.subr.mxu1 %v7072_v39  ;;  %2269 = vmatmul.mubr.f32.gmra.mxu0 %v7173_v29  ;;  %v550_v63 = vpop.f32.mrf.mxu0  ;;  %v961_v42 = vpop.f32.mrf.mxu1  ;;  %v7174_v29 = vld [vmem:[#allocation137_spill] sm:$0xff] }
 0x154   :  { %2592 = vmatmul.mubr.f32.gmra.mxu1 %v7075_v49  ;;  %2696 = vmatprep.subr.mxu0 %v7072_v39  ;;  %v5549_v20 = vadd.f32 %v961_v42, %v518_v4  ;;  %v7175_v42 = vld [vmem:[#allocation140_spill] sm:$0xff] }
 0x155   :  { %2909 = vmatpush1.msra.mxu1 %v5135_v41  ;;  %2699 = vmatpush1.msra.mxu0 %v5207_v32  ;;  %v5553_v23 = vpop.f32.mrf.mxu0  ;;  %v5555_v17 = vpop.f32.mrf.mxu1 }
 0x156   :  { %2910 = vmatprep.subr.mxu1 %v7072_v39  ;;  %2700 = vmatprep.subr.mxu0 %v7072_v39 }
 0x157   :  { %2912 = vmatpush1.msra.mxu1 %v5144_v2  ;;  %2278 = vmatprep.mubr.f32.mxu0 %v7174_v29 }
 0x158   :  { %2597 = vmatprep.mubr.f32.mxu1 %v7077_v46  ;;  %2703 = vmatpush1.msra.mxu0 %v5215_v40 }
 0x159   :  { %2913 = vmatprep.subr.mxu1 %v7072_v39  ;;  %2284 = vmatmul.mubr.f32.gmra.mxu0 %v7175_v42  ;;  %v566_v4 = vpop.f32.mrf.mxu0  ;;  %v969_v49 = vpop.f32.mrf.mxu1  ;;  %v7176_v42 = vld [vmem:[#allocation145_spill] sm:$0xff] }
 0x15a   :  { %2599 = vmatmul.mubr.f32.gmra.mxu1 %v7078_v59  ;;  %2704 = vmatprep.subr.mxu0 %v7072_v39  ;;  %v5567_v14 = vadd.f32 %v969_v49, %v534_v5  ;;  %v7177_v49 = vld [vmem:[#allocation148_spill] sm:$0xff] }
 0x15b   :  { %2915 = vmatpush1.msra.mxu1 %v5164_v60  ;;  %2707 = vmatpush1.msra.mxu0 %v5235_v0  ;;  %v5571_v29 = vpop.f32.mrf.mxu0  ;;  %v5573_v46 = vpop.f32.mrf.mxu1 }
 0x15c   :  { %2916 = vmatprep.subr.mxu1 %v7072_v39  ;;  %2708 = vmatprep.subr.mxu0 %v7072_v39 }
 0x15d   :  { %2918 = vmatpush1.msra.mxu1 %v5172_v47  ;;  %2293 = vmatprep.mubr.f32.mxu0 %v7176_v42 }
 0x15e   :  { %2604 = vmatprep.mubr.f32.mxu1 %v7081_v61  ;;  %2711 = vmatpush1.msra.mxu0 %v5243_v10 }
 0x15f   :  { %2919 = vmatprep.subr.mxu1 %v7072_v39  ;;  %2299 = vmatmul.mubr.f32.gmra.mxu0 %v7177_v49  ;;  %v977_v5 = vpop.f32.mrf.mxu1  ;;  %v5583_v59 = vpop.f32.mrf.mxu0  ;;  %v7178_v49 = vld [vmem:[#allocation43_spill] sm:$0xff] }
 0x160   :  { %2606 = vmatmul.mubr.f32.gmra.mxu1 %v7082_v53  ;;  %2712 = vmatprep.subr.mxu0 %v7072_v39  ;;  %v5587_v22 = vadd.f32 %v977_v5, %v550_v63  ;;  %v7180_v53 = vld [vmem:[#allocation116_spill] sm:$0xff]  ;;  %v7181_v63 = vld [vmem:[#allocation53_spill] sm:$0xff] }
 0x161   :  { %2921 = vmatpush1.msra.mxu1 %v5192_v13  ;;  %2715 = vmatpush1.msra.mxu0 %v5263_v6  ;;  %v5591_v42 = vpop.f32.mrf.mxu1  ;;  %v5593_v61 = vpop.f32.mrf.mxu0 }
 0x162   :  { %2922 = vmatprep.subr.mxu1 %v7072_v39  ;;  %2716 = vmatprep.subr.mxu0 %v7072_v39 }
 0x163   :  { %2924 = vmatpush1.msra.mxu1 %v7178_v49  ;;  %2308 = vmatprep.mubr.f32.mxu0 %v7179_v56 }
 0x164   :  { %2611 = vmatprep.mubr.f32.mxu1 %v7180_v53  ;;  %2719 = vmatpush1.msra.mxu0 %v7181_v63  ;;  %v985_v5 = vpop.f32.mrf.mxu1  ;;  %v5601_v24 = vpop.f32.mrf.mxu0  ;;  %v7186_v53 = vld [vmem:[#allocation45_spill] sm:$0xff] }
 0x165   :  { %7182 = vst [vmem:[#allocation62_spill] sm:$0xff] %v5601_v24  ;;  %2925 = vmatprep.subr.mxu1 %v7072_v39  ;;  %2314 = vmatmul.mubr.f32.gmra.mxu0 %v7183_v21  ;;  %v5605_v1 = vadd.f32 %v985_v5, %v566_v4  ;;  %v7189_v21 = vld [vmem:[#allocation161_spill] sm:$0xff]  ;;  %v7190_v4 = vld [vmem:[#allocation126_spill] sm:$0xff]  ;;  %v7191_v5 = vld [vmem:[#allocation7_spill] sm:$0xff] }
 0x166   :  { %2613 = vmatmul.mubr.f32.gmra.mxu1 %v7184_v15  ;;  %2720 = vmatprep.subr.mxu0 %v7072_v39  ;;  %v5609_v44 = vpop.f32.mrf.mxu1  ;;  %v5611_v56 = vpop.f32.mrf.mxu0 }
 0x167   :  { %7185 = vst [vmem:[#allocation65_spill] sm:$0xff] %v5611_v56  ;;  %2927 = vmatpush1.msra.mxu1 %v7186_v53  ;;  %2723 = vmatpush1.msra.mxu0 %v7187_v36  ;;  %v7195_v56 = vld [vmem:[#allocation128_spill] sm:$0xff] }
 0x168   :  { %2928 = vmatprep.subr.mxu1 %v7072_v39  ;;  %2738 = vmatprep.subr.mxu0 %v7072_v39 }
 0x169   :  { %2930 = vmatpush1.msra.mxu1 %v7188_v38  ;;  %2323 = vmatprep.mubr.f32.mxu0 %v7189_v21  ;;  %v7198_v21 = vld [vmem:[#allocation9_spill] sm:$0xff] }
 0x16a   :  { %2618 = vmatprep.mubr.f32.mxu1 %v7190_v4  ;;  %2741 = vmatpush2.msra.mxu0 %v7191_v5  ;;  %v5621_v15 = vpop.f32.mrf.mxu0  ;;  %v5623_v26 = vpop.f32.mrf.mxu1  ;;  %v7199_v4 = vld [vmem:[#allocation47_spill] sm:$0xff]  ;;  %v7203_v5 = vld [vmem:[#allocation73_spill] sm:$0xff] }
 0x16b   :  { %7192 = vst [vmem:[#allocation33_spill] sm:$0xff] %v5621_v15  ;;  %7193 = vst [vmem:[#allocation57_spill] sm:$0xff] %v5623_v26  ;;  %2329 = vmatmul.mubr.f32.gmra.mxu0 %v7194_v54  ;;  %2620 = vmatmul.mubr.f32.gmra.mxu1 %v7195_v56  ;;  %v7200_v15 = vld [vmem:[#allocation166_spill] sm:$0xff]  ;;  %v7204_v26 = vld [vmem:[#allocation49_spill] sm:$0xff] }
 0x16c   :  { %2742 = vmatprep.subr.mxu0 %v7072_v39  ;;  %2931 = vmatprep.subr.mxu1 %v7072_v39  ;;  %v5629_v24 = vpop.f32.mrf.mxu0  ;;  %v5631_v38 = vpop.f32.mrf.mxu1  ;;  %v7201_v54 = vld [vmem:[#allocation134_spill] sm:$0xff] }
 0x16d   :  { %7196 = vst [vmem:[#allocation88_spill] sm:$0xff] %v5629_v24  ;;  %7197 = vst [vmem:[#allocation63_spill] sm:$0xff] %v5631_v38  ;;  %2745 = vmatpush2.msra.mxu0 %v7198_v21  ;;  %2933 = vmatpush1.msra.mxu1 %v7199_v4  ;;  %v7205_v38 = vld [vmem:[#allocation31_spill] sm:$0xff]  ;;  %v7206_v21 = vld [vmem:[#allocation136_spill] sm:$0xff] }
 0x16e   :  { %2746 = vmatprep.subr.mxu0 %v7072_v39  ;;  %2934 = vmatprep.subr.mxu1 %v7072_v39 }
 0x16f   :  { %2338 = vmatprep.mubr.f32.mxu0 %v7200_v15  ;;  %2625 = vmatprep.mubr.f32.mxu1 %v7201_v54  ;;  %v5639_v56 = vpop.f32.mrf.mxu0  ;;  %v7208_v54 = vld [vmem:[#allocation51_spill] sm:$0xff] }
 0x170   :  { %7202 = vst [vmem:[#allocation64_spill] sm:$0xff] %v5639_v56  ;;  %2749 = vmatpush2.msra.mxu0 %v7203_v5  ;;  %2936 = vmatpush1.msra.mxu1 %v7204_v26  ;;  %v5643_v24 = vpop.f32.mrf.mxu1  ;;  %v7209_v56 = vld [vmem:[#allocation35_spill] sm:$0xff]  ;;  %v7213_v5 = vld [vmem:[#allocation37_spill] sm:$0xff] }
 0x171   :  { %2344 = vmatmul.mubr.f32.gmra.mxu0 %v7205_v38  ;;  %2627 = vmatmul.mubr.f32.gmra.mxu1 %v7206_v21  ;;  %v5647_v4 = vpop.f32.mrf.mxu0  ;;  %v7210_v38 = vld [vmem:[#allocation142_spill] sm:$0xff] }
 0x172   :  { %7207 = vst [vmem:[#allocation66_spill] sm:$0xff] %v5647_v4  ;;  %2750 = vmatprep.subr.mxu0 %v7072_v39  ;;  %2937 = vmatprep.subr.mxu1 %v7072_v39  ;;  %v5651_v15 = vpop.f32.mrf.mxu1  ;;  %v7212_v4 = vld [vmem:[#allocation55_spill] sm:$0xff] }
 0x173   :  { %2753 = vmatpush2.msra.mxu0 %v5356_v9  ;;  %2939 = vmatpush1.msra.mxu1 %v7208_v54  ;;  %v7214_v9 = vld [vmem:[#allocation144_spill] sm:$0xff] }
 0x174   :  { %2754 = vmatprep.subr.mxu0 %v7072_v39  ;;  %2954 = vmatprep.subr.mxu1 %v7072_v39 }
 0x175   :  { %2353 = vmatprep.mubr.f32.mxu0 %v7209_v56  ;;  %2632 = vmatprep.mubr.f32.mxu1 %v7210_v38  ;;  %v5659_v21 = vpop.f32.mrf.mxu0  ;;  %v7216_v38 = vld [vmem:[#allocation5_spill] sm:$0xff] }
 0x176   :  { %7211 = vst [vmem:[#allocation68_spill] sm:$0xff] %v5659_v21  ;;  %2757 = vmatpush2.msra.mxu0 %v5376_v55  ;;  %2956 = vmatpush2.msra.mxu1 %v7212_v4  ;;  %v5663_v26 = vpop.f32.mrf.mxu1  ;;  %v7217_v21 = vld [vmem:[#allocation39_spill] sm:$0xff]  ;;  %v7221_v55 = vld [vmem:[#allocation41_spill] sm:$0xff] }
 0x177   :  { %2359 = vmatmul.mubr.f32.gmra.mxu0 %v7213_v5  ;;  %2634 = vmatmul.mubr.f32.gmra.mxu1 %v7214_v9  ;;  %v5667_v54 = vpop.f32.mrf.mxu0  ;;  %v7218_v5 = vld [vmem:[#allocation150_spill] sm:$0xff] }
 0x178   :  { %7215 = vst [vmem:[#allocation70_spill] sm:$0xff] %v5667_v54  ;;  %2758 = vmatprep.subr.mxu0 %v7072_v39  ;;  %2957 = vmatprep.subr.mxu1 %v7072_v39  ;;  %v5671_v56 = vpop.f32.mrf.mxu1  ;;  %v7220_v54 = vld [vmem:[#allocation71_spill] sm:$0xff] }
 0x179   :  { %2761 = vmatpush2.msra.mxu0 %v5392_v43  ;;  %2959 = vmatpush2.msra.mxu1 %v7216_v38 }
 0x17a   :  { %2762 = vmatprep.subr.mxu0 %v7072_v39  ;;  %2960 = vmatprep.subr.mxu1 %v7072_v39 }
 0x17b   :  { %2368 = vmatprep.mubr.f32.mxu0 %v7217_v21  ;;  %2639 = vmatprep.mubr.f32.mxu1 %v7218_v5  ;;  %v5679_v9 = vpop.f32.mrf.mxu0  ;;  %v7223_v5 = vld [vmem:[#allocation11_spill] sm:$0xff] }
 0x17c   :  { %7219 = vst [vmem:[#allocation83_spill] sm:$0xff] %v5679_v9  ;;  %2765 = vmatpush2.msra.mxu0 %v5403_v11  ;;  %2962 = vmatpush2.msra.mxu1 %v7220_v54  ;;  %v5683_v4 = vpop.f32.mrf.mxu1 }
 0x17d   :  { %2374 = vmatmul.mubr.f32.gmra.mxu0 %v7221_v55  ;;  %2641 = vmatmul.mubr.f32.gmra.mxu1 %v7121_v25  ;;  %v5687_v38 = vpop.f32.mrf.mxu0  ;;  %v7225_v25 = vld [vmem:[#allocation77_spill] sm:$0xff] }
 0x17e   :  { %7222 = vst [vmem:[#allocation84_spill] sm:$0xff] %v5687_v38  ;;  %2766 = vmatprep.subr.mxu0 %v7072_v39  ;;  %2963 = vmatprep.subr.mxu1 %v7072_v39  ;;  %v5691_v21 = vpop.f32.mrf.mxu1  ;;  %v7226_v38 = vld [vmem:[#allocation17_spill] sm:$0xff] }
 0x17f   :  { %2769 = vmatpush2.msra.mxu0 %v5421_v3  ;;  %2965 = vmatpush2.msra.mxu1 %v7223_v5  ;;  %v7227_v3 = vld [vmem:[#allocation78_spill] sm:$0xff] }
 0x180   :  { %2770 = vmatprep.subr.mxu0 %v7072_v39  ;;  %2966 = vmatprep.subr.mxu1 %v7072_v39 }
 0x181   :  { %2646 = vmatprep.mubr.f32.mxu1 %v7129_v33  ;;  %2773 = vmatpush2.msra.mxu0 %v5431_v16  ;;  %v5699_v55 = vpop.f32.mrf.mxu0  ;;  %v7229_v16 = vld [vmem:[#allocation6_spill] sm:$0xff] }
 0x182   :  { %7224 = vst [vmem:[#allocation92_spill] sm:$0xff] %v5699_v55  ;;  %2776 = vmatprep.mubr.f32.mxu0 %v7225_v25  ;;  %2968 = vmatpush2.msra.mxu1 %v7226_v38  ;;  %v5703_v9 = vpop.f32.mrf.mxu1  ;;  %v7230_v25 = vld [vmem:[#allocation85_spill] sm:$0xff]  ;;  %v7231_v55 = vld [vmem:[#allocation34_spill] sm:$0xff] }
 0x183   :  { %2648 = vmatmul.mubr.f32.gmra.mxu1 %v7132_v37  ;;  %2779 = vmatmul.mubr.f32.vlgmr.msra.gmra.mxu0 %v7227_v3  ;;  %v5707_v5 = vpop.f32.mrf.mxu0  ;;  %v7232_v3 = vand.u32 4294901760, %v5077_v34 }
 0x184   :  { %7228 = vst [vmem:[#allocation94_spill] sm:$0xff] %v5707_v5  ;;  %2969 = vmatprep.subr.mxu1 %v7072_v39  ;;  %3125 = vmatprep.subr.mxu0 %v7072_v39  ;;  %v5711_v33 = vpop.f32.mrf.mxu1  ;;  %v7234_v5 = vld [vmem:[#allocation86_spill] sm:$0xff] }
 0x185   :  { %2971 = vmatpush2.msra.mxu1 %v7229_v16  ;;  %2653 = vmatprep.mubr.f32.mxu1 %v7139_v45 }
 0x186   :  { %2972 = vmatprep.subr.mxu1 %v7072_v39  ;;  %2785 = vmatprep.mubr.f32.mxu0 %v7230_v25  ;;  %v7236_v25 = vld [vmem:[#allocation36_spill] sm:$0xff] }
 0x187   :  { %2974 = vmatpush2.msra.mxu1 %v7231_v55  ;;  %3129 = vmatpush1.msra.mxu0 %v7232_v3  ;;  %v5720_v37 = vpop.f32.mrf.mxu0  ;;  %v7237_v55 = vand.u32 4294901760, %v5096_v58  ;;  %v7239_v3 = vld [vmem:[#allocation79_spill] sm:$0xff]  ;;  %v7242_v58 = vld [vmem:[#allocation80_spill] sm:$0xff] }
 0x188   :  { %7233 = vst [vmem:[#allocation102_spill] sm:$0xff] %v5720_v37  ;;  %2655 = vmatmul.mubr.f32.gmra.mxu1 %v7141_v50  ;;  %2788 = vmatmul.mubr.f32.gmra.mxu0 %v7234_v5  ;;  %v5724_v38 = vpop.f32.mrf.mxu1  ;;  %v7238_v5 = vld [vmem:[#allocation91_spill] sm:$0xff]  ;;  %v7240_v50 = vand.u32 4294901760, %v5103_v28  ;;  %v7241_v37 = vld [vmem:[#allocation96_spill] sm:$0xff] }
 0x189   :  { %2975 = vmatprep.subr.mxu1 %v7072_v39  ;;  %3130 = vmatprep.subr.mxu0 %v7072_v39  ;;  %v5728_v45 = vpop.f32.mrf.mxu0 }
 0x18a   :  { %7235 = vst [vmem:[#allocation111_spill] sm:$0xff] %v5728_v45  ;;  %2977 = vmatpush2.msra.mxu1 %v7236_v25  ;;  %3134 = vmatpush1.msra.mxu0 %v7237_v55  ;;  %v5733_v34 = vpop.f32.mrf.mxu1 }
 0x18b   :  { %2978 = vmatprep.subr.mxu1 %v7072_v39  ;;  %3135 = vmatprep.subr.mxu0 %v7072_v39 }
 0x18c   :  { %2794 = vmatprep.mubr.f32.mxu0 %v7238_v5  ;;  %2980 = vmatpush2.msra.mxu1 %v5410_v57  ;;  %v7244_v57 = vand.u32 4294901760, %v5122_v52 }
 0x18d   :  { %2984 = vmatprep.mubr.f32.mxu1 %v7239_v3  ;;  %3139 = vmatpush1.msra.mxu0 %v7240_v50  ;;  %v5742_v45 = vpop.f32.mrf.mxu0  ;;  %v7245_v50 = vld [vmem:[#allocation103_spill] sm:$0xff]  ;;  %v7247_v3 = vand.u32 4294901760, %v5130_v30 }
 0x18e   :  { %2797 = vmatmul.mubr.f32.gmra.mxu0 %v7241_v37  ;;  %2988 = vmatmul.mubr.f32.vlgmr.msra.gmra.mxu1 %v7242_v58  ;;  %v5746_v55 = vpop.f32.mrf.mxu1  ;;  %v7246_v37 = vld [vmem:[#allocation87_spill] sm:$0xff]  ;;  %v7248_v58 = vld [vmem:[#allocation104_spill] sm:$0xff] }
 0x18f   :  { %3140 = vmatprep.subr.mxu0 %v7072_v39  ;;  %3356 = vmatprep.subr.mxu1 %v7072_v39  ;;  %v5750_v5 = vpop.f32.mrf.mxu0 }
 0x190   :  { %7243 = vst [vmem:[#allocation119_spill] sm:$0xff] %v5750_v5  ;;  %3144 = vmatpush1.msra.mxu0 %v7244_v57  ;;  %3358 = vmatpush1.msra.mxu1 %v5063_v35  ;;  %v5755_v28 = vpop.f32.mrf.mxu1  ;;  %v7249_v57 = vld [vmem:[#allocation89_spill] sm:$0xff] }
 0x191   :  { %3145 = vmatprep.subr.mxu0 %v7072_v39  ;;  %2803 = vmatprep.mubr.f32.mxu0 %v7245_v50  ;;  %v7250_v50 = vand.u32 4294901760, %v5151_v51  ;;  %v7254_v51 = vld [vmem:[#allocation106_spill] sm:$0xff] }
 0x192   :  { %2995 = vmatprep.mubr.f32.mxu1 %v7246_v37  ;;  %3149 = vmatpush1.msra.mxu0 %v7247_v3  ;;  %v7251_v3 = vld [vmem:[#allocation105_spill] sm:$0xff] }
 0x193   :  { %3359 = vmatprep.subr.mxu1 %v7072_v39  ;;  %2806 = vmatmul.mubr.f32.gmra.mxu0 %v7248_v58  ;;  %v1250_v5 = vpop.f32.mrf.mxu0  ;;  %v5764_v52 = vpop.f32.mrf.mxu1  ;;  %v7252_v58 = vld [vmem:[#allocation95_spill] sm:$0xff] }
 0x194   :  { %2999 = vmatmul.mubr.f32.gmra.mxu1 %v7249_v57  ;;  %3150 = vmatprep.subr.mxu0 %v7072_v39  ;;  %v1251_v35 = vadd.f32 %v1250_v5, %v5549_v20  ;;  %v7253_v20 = vand.u32 4294901760, %v5159_v27  ;;  %v7255_v57 = vld [vmem:[#allocation99_spill] sm:$0xff] }
 0x195   :  { %3361 = vmatpush1.msra.mxu1 %v5082_v7  ;;  %3154 = vmatpush1.msra.mxu0 %v7250_v50  ;;  %v1252_v30 = vpop.f32.mrf.mxu0  ;;  %v5772_v37 = vpop.f32.mrf.mxu1  ;;  %v7256_v50 = vand.u32 4294901760, %v5179_v48  ;;  %v7260_v48 = vld [vmem:[#allocation115_spill] sm:$0xff] }
 0x196   :  { %3362 = vmatprep.subr.mxu1 %v7072_v39  ;;  %3155 = vmatprep.subr.mxu0 %v7072_v39 }
 0x197   :  { %3364 = vmatpush1.msra.mxu1 %v5088_v62  ;;  %2812 = vmatprep.mubr.f32.mxu0 %v7251_v3 }
 0x198   :  { %3006 = vmatprep.mubr.f32.mxu1 %v7252_v58  ;;  %3159 = vmatpush1.msra.mxu0 %v7253_v20  ;;  %v7257_v58 = vld [vmem:[#allocation114_spill] sm:$0xff]  ;;  %v7258_v20 = vld [vmem:[#allocation108_spill] sm:$0xff] }
 0x199   :  { %3365 = vmatprep.subr.mxu1 %v7072_v39  ;;  %2815 = vmatmul.mubr.f32.gmra.mxu0 %v7254_v51  ;;  %v1260_v7 = vpop.f32.mrf.mxu0  ;;  %v5783_v5 = vpop.f32.mrf.mxu1 }
 0x19a   :  { %3010 = vmatmul.mubr.f32.gmra.mxu1 %v7255_v57  ;;  %3160 = vmatprep.subr.mxu0 %v7072_v39  ;;  %v1261_v62 = vadd.f32 %v1260_v7, %v5567_v14  ;;  %v7259_v14 = vand.u32 4294901760, %v5187_v19  ;;  %v7261_v57 = vld [vmem:[#allocation109_spill] sm:$0xff]  ;;  %v7262_v19 = vand.u32 4294901760, %v5207_v32  ;;  %v7266_v32 = vld [vmem:[#allocation124_spill] sm:$0xff] }
 0x19b   :  { %3367 = vmatpush1.msra.mxu1 %v5105_v12  ;;  %3164 = vmatpush1.msra.mxu0 %v7256_v50  ;;  %v1262_v27 = vpop.f32.mrf.mxu0  ;;  %v5791_v3 = vpop.f32.mrf.mxu1  ;;  %v964_v12 = vadd.f32 %v5555_v17, %v5517_v18 }
 0x19c   :  { %3368 = vmatprep.subr.mxu1 %v7072_v39  ;;  %3165 = vmatprep.subr.mxu0 %v7072_v39 }
 0x19d   :  { %3370 = vmatpush1.msra.mxu1 %v5114_v8  ;;  %2821 = vmatprep.mubr.f32.mxu0 %v7257_v58  ;;  %v1253_v8 = vadd.f32 %v1252_v30, %v964_v12  ;;  %v7263_v30 = vld [vmem:[#allocation122_spill] sm:$0xff] }
 0x19e   :  { %3017 = vmatprep.mubr.f32.mxu1 %v7258_v20  ;;  %3169 = vmatpush1.msra.mxu0 %v7259_v14 }
 0x19f   :  { %3371 = vmatprep.subr.mxu1 %v7072_v39  ;;  %2824 = vmatmul.mubr.f32.gmra.mxu0 %v7260_v48  ;;  %v1270_v51 = vpop.f32.mrf.mxu0  ;;  %v1515_v7 = vpop.f32.mrf.mxu1  ;;  %v7267_v48 = vld [vmem:[#allocation113_spill] sm:$0xff] }
 0x1a0   :  { %3021 = vmatmul.mubr.f32.gmra.mxu1 %v7261_v57  ;;  %3170 = vmatprep.subr.mxu0 %v7072_v39  ;;  %v1271_v50 = vadd.f32 %v1270_v51, %v5587_v22  ;;  %v5807_v58 = vadd.f32 %v1515_v7, %v1251_v35  ;;  %v7264_v22 = vld [vmem:[#allocation112_spill] sm:$0xff]  ;;  %v7265_v35 = vand.u32 4294901760, %v5215_v40  ;;  %v7268_v40 = vand.u32 4294901760, %v5235_v0  ;;  %v7272_v0 = vld [vmem:[#allocation133_spill] sm:$0xff] }
 0x1a1   :  { %3373 = vmatpush1.msra.mxu1 %v5135_v41  ;;  %3174 = vmatpush1.msra.mxu0 %v7262_v19  ;;  %v1272_v17 = vpop.f32.mrf.mxu0  ;;  %v1517_v18 = vpop.f32.mrf.mxu1  ;;  %v972_v41 = vadd.f32 %v5573_v46, %v5535_v31 }
 0x1a2   :  { %3374 = vmatprep.subr.mxu1 %v7072_v39  ;;  %3175 = vmatprep.subr.mxu0 %v7072_v39  ;;  %v5814_v20 = vadd.f32 %v1517_v18, %v1253_v8  ;;  %v7273_v18 = vld [vmem:[#allocation121_spill] sm:$0xff] }
 0x1a3   :  { %3376 = vmatpush1.msra.mxu1 %v5144_v2  ;;  %2830 = vmatprep.mubr.f32.mxu0 %v7263_v30  ;;  %v1263_v2 = vadd.f32 %v1262_v27, %v972_v41  ;;  %v7269_v27 = vld [vmem:[#allocation131_spill] sm:$0xff] }
 0x1a4   :  { %3028 = vmatprep.mubr.f32.mxu1 %v7264_v22  ;;  %3179 = vmatpush1.msra.mxu0 %v7265_v35  ;;  %v7275_v35 = vld [vmem:[#allocation139_spill] sm:$0xff] }
 0x1a5   :  { %3377 = vmatprep.subr.mxu1 %v7072_v39  ;;  %2833 = vmatmul.mubr.f32.gmra.mxu0 %v7266_v32  ;;  %v1280_v14 = vpop.f32.mrf.mxu0  ;;  %v1527_v12 = vpop.f32.mrf.mxu1  ;;  %v7279_v32 = vand.u32 4294901760, %v7181_v63  ;;  %v7283_v63 = vand.u32 4294901760, %v7187_v36  ;;  %v7289_v36 = vld [vmem:[#allocation32_spill] sm:$0xff] }
 0x1a6   :  { %3032 = vmatmul.mubr.f32.gmra.mxu1 %v7267_v48  ;;  %3180 = vmatprep.subr.mxu0 %v7072_v39  ;;  %v1281_v51 = vadd.f32 %v1280_v14, %v5605_v1  ;;  %v5828_v7 = vadd.f32 %v1527_v12, %v1261_v62  ;;  %v7270_v1 = vld [vmem:[#allocation117_spill] sm:$0xff]  ;;  %v7271_v62 = vand.u32 4294901760, %v5243_v10  ;;  %v7274_v10 = vand.u32 4294901760, %v5263_v6  ;;  %v7278_v6 = vld [vmem:[#allocation127_spill] sm:$0xff] }
 0x1a7   :  { %3379 = vmatpush1.msra.mxu1 %v5164_v60  ;;  %3184 = vmatpush1.msra.mxu0 %v7268_v40  ;;  %v1282_v46 = vpop.f32.mrf.mxu0  ;;  %v1529_v31 = vpop.f32.mrf.mxu1  ;;  %v980_v60 = vadd.f32 %v5591_v42, %v5553_v23  ;;  %v7280_v48 = vld [vmem:[#allocation141_spill] sm:$0xff] }
 0x1a8   :  { %3380 = vmatprep.subr.mxu1 %v7072_v39  ;;  %3185 = vmatprep.subr.mxu0 %v7072_v39  ;;  %v5835_v57 = vadd.f32 %v1529_v31, %v1263_v2 }
 0x1a9   :  { %3382 = vmatpush1.msra.mxu1 %v5172_v47  ;;  %2839 = vmatprep.mubr.f32.mxu0 %v7269_v27  ;;  %v1273_v47 = vadd.f32 %v1272_v17, %v980_v60  ;;  %v7276_v17 = vld [vmem:[#allocation61_spill] sm:$0xff] }
 0x1aa   :  { %3039 = vmatprep.mubr.f32.mxu1 %v7270_v1  ;;  %3189 = vmatpush1.msra.mxu0 %v7271_v62  ;;  %v7284_v62 = vld [vmem:[#allocation57_spill] sm:$0xff] }
 0x1ab   :  { %3383 = vmatprep.subr.mxu1 %v7072_v39  ;;  %2842 = vmatmul.mubr.f32.gmra.mxu0 %v7272_v0  ;;  %v1539_v8 = vpop.f32.mrf.mxu1  ;;  %v1774_v19 = vpop.f32.mrf.mxu0 }
 0x1ac   :  { %3043 = vmatmul.mubr.f32.gmra.mxu1 %v7273_v18  ;;  %3190 = vmatprep.subr.mxu0 %v7072_v39  ;;  %v5848_v30 = vadd.f32 %v1539_v8, %v1271_v50  ;;  %v988_v50 = vadd.f32 %v5609_v44, %v5571_v29  ;;  %v7282_v44 = vld [vmem:[#allocation130_spill] sm:$0xff]  ;;  %v7288_v18 = vld [vmem:[#allocation72_spill] sm:$0xff] }
 0x1ad   :  { %3385 = vmatpush1.msra.mxu1 %v5192_v13  ;;  %3194 = vmatpush1.msra.mxu0 %v7274_v10  ;;  %v1541_v22 = vpop.f32.mrf.mxu1  ;;  %v1776_v23 = vpop.f32.mrf.mxu0  ;;  %v7277_v13 = vld [vmem:[#allocation15_spill] sm:$0xff] }
 0x1ae   :  { %3386 = vmatprep.subr.mxu1 %v7072_v39  ;;  %3195 = vmatprep.subr.mxu0 %v7072_v39  ;;  %v5855_v42 = vadd.f32 %v1541_v22, %v1273_v47  ;;  %v892_v41 = vadd.f32 %v7277_v13, %v7276_v17  ;;  %v1283_v40 = vadd.f32 %v1282_v46, %v988_v50  ;;  %v7287_v46 = vld [vmem:[#allocation63_spill] sm:$0xff]  ;;  %v7293_v17 = vld [vmem:[#allocation149_spill] sm:$0xff]  ;;  %v7294_v13 = vld [vmem:[#allocation138_spill] sm:$0xff] }
 0x1af   :  { %3388 = vmatpush1.msra.mxu1 %v7178_v49  ;;  %2848 = vmatprep.mubr.f32.mxu0 %v7275_v35  ;;  %v7281_v49 = vld [vmem:[#allocation13_spill] sm:$0xff]  ;;  %v900_v47 = vadd.f32 %v7289_v36, %v7288_v18  ;;  %v7290_v10 = vld [vmem:[#allocation135_spill] sm:$0xff] }
 0x1b0   :  { %3050 = vmatprep.mubr.f32.mxu1 %v7278_v6  ;;  %3199 = vmatpush1.msra.mxu0 %v7279_v32  ;;  %v1551_v14 = vpop.f32.mrf.mxu1  ;;  %v1782_v12 = vpop.f32.mrf.mxu0  ;;  %v1161_v2 = vadd.f32 %v5583_v59, %v7281_v49  ;;  %v1163_v1 = vadd.f32 %v5593_v61, %v892_v41  ;;  %v7285_v59 = vld [vmem:[#allocation76_spill] sm:$0xff]  ;;  %v7291_v61 = vld [vmem:[#allocation7_spill] sm:$0xff]  ;;  %v7295_v41 = vld [vmem:[#allocation30_spill] sm:$0xff] }
 0x1b1   :  { %3389 = vmatprep.subr.mxu1 %v7072_v39  ;;  %2851 = vmatmul.mubr.f32.gmra.mxu0 %v7280_v48  ;;  %v5870_v31 = vadd.f32 %v1551_v14, %v1281_v51  ;;  %v7286_v51 = vld [vmem:[#allocation147_spill] sm:$0xff]  ;;  %v7292_v22 = vand.u32 4294901760, %v7291_v61  ;;  %v7296_v6 = vld [vmem:[#allocation62_spill] sm:$0xff]  ;;  %v7305_v18 = vld [vmem:[#allocation73_spill] sm:$0xff] }
 0x1b2   :  { %3054 = vmatmul.mubr.f32.gmra.mxu1 %v7282_v44  ;;  %3200 = vmatprep.subr.mxu0 %v7072_v39  ;;  %v1553_v29 = vpop.f32.mrf.mxu1  ;;  %v1784_v27 = vpop.f32.mrf.mxu0  ;;  %v1408_v60 = vadd.f32 %v7284_v62, %v1161_v2  ;;  %v1410_v8 = vadd.f32 %v7287_v46, %v1163_v1  ;;  %v1171_v32 = vadd.f32 %v7296_v6, %v7295_v41  ;;  %v7298_v44 = vld [vmem:[#allocation9_spill] sm:$0xff]  ;;  %v7306_v36 = vand.u32 4294901760, %v7305_v18  ;;  %v7312_v6 = vld [vmem:[#allocation88_spill] sm:$0xff]  ;;  %v7324_v18 = vld [vmem:[#allocation154_spill] sm:$0xff] }
 0x1b3   :  { %3391 = vmatpush1.msra.mxu1 %v7186_v53  ;;  %3204 = vmatpush1.msra.mxu0 %v7283_v63  ;;  %v5879_v0 = vadd.f32 %v1553_v29, %v1283_v40  ;;  %v7299_v29 = vand.u32 4294901760, %v7298_v44  ;;  %v7300_v63 = vld [vmem:[#allocation47_spill] sm:$0xff]  ;;  %v7308_v61 = vld [vmem:[#allocation157_spill] sm:$0xff] }
 0x1b4   :  { %3392 = vmatprep.subr.mxu1 %v7072_v39  ;;  %3219 = vmatprep.subr.mxu0 %v7072_v39  ;;  %v1775_v53 = vadd.f32 %v1774_v19, %v1408_v60  ;;  %v1777_v14 = vadd.f32 %v1776_v23, %v1410_v8  ;;  %v7297_v19 = vld [vmem:[#allocation65_spill] sm:$0xff]  ;;  %v1420_v1 = vadd.f32 %v5643_v24, %v1171_v32  ;;  %v7301_v23 = vld [vmem:[#allocation155_spill] sm:$0xff] }
 0x1b5   :  { %3394 = vmatpush1.msra.mxu1 %v7285_v59  ;;  %2857 = vmatprep.mubr.f32.mxu0 %v7286_v51  ;;  %v1173_v49 = vadd.f32 %v7297_v19, %v900_v47  ;;  %v7302_v60 = vld [vmem:[#allocation143_spill] sm:$0xff]  ;;  %v7303_v8 = vld [vmem:[#allocation21_spill] sm:$0xff] }
 0x1b6   :  { %3061 = vmatprep.mubr.f32.mxu1 %v7290_v10  ;;  %3223 = vmatpush2.msra.mxu0 %v7292_v22  ;;  %v1790_v35 = vpop.f32.mrf.mxu0  ;;  %v1993_v50 = vpop.f32.mrf.mxu1  ;;  %v1783_v51 = vadd.f32 %v1782_v12, %v1420_v1  ;;  %v7307_v47 = vld [vmem:[#allocation49_spill] sm:$0xff]  ;;  %v7309_v22 = vld [vmem:[#allocation146_spill] sm:$0xff]  ;;  %v7316_v44 = vld [vmem:[#allocation163_spill] sm:$0xff] }
 0x1b7   :  { %2860 = vmatmul.mubr.f32.gmra.mxu0 %v7293_v17  ;;  %3065 = vmatmul.mubr.f32.gmra.mxu1 %v7294_v13  ;;  %v1994_v48 = vadd.f32 %v1993_v50, %v1775_v53  ;;  %v1422_v59 = vadd.f32 %v5651_v15, %v1173_v49  ;;  %v7304_v53 = vld [vmem:[#allocation40_spill] sm:$0xff]  ;;  %v7311_v12 = vld [vmem:[#allocation33_spill] sm:$0xff]  ;;  %v7315_v49 = vld [vmem:[#allocation51_spill] sm:$0xff] }
 0x1b8   :  { %3224 = vmatprep.subr.mxu0 %v7072_v39  ;;  %3395 = vmatprep.subr.mxu1 %v7072_v39  ;;  %v1792_v2 = vpop.f32.mrf.mxu0  ;;  %v1995_v40 = vpop.f32.mrf.mxu1  ;;  %v908_v24 = vadd.f32 %v7304_v53, %v7303_v8  ;;  %v7310_v15 = vld [vmem:[#allocation12_spill] sm:$0xff]  ;;  %v7322_v8 = vld [vmem:[#allocation55_spill] sm:$0xff] }
 0x1b9   :  { %3228 = vmatpush2.msra.mxu0 %v7299_v29  ;;  %3397 = vmatpush1.msra.mxu1 %v7300_v63  ;;  %v1996_v62 = vadd.f32 %v1995_v40, %v1777_v14  ;;  %3576 = vst [vmem:[%s6253_s2] sm:$0xff] %v1994_v48  ;;  %v1181_v50 = vadd.f32 %v7311_v12, %v7310_v15  ;;  %v7313_v48 = vld [vmem:[#allocation19_spill] sm:$0xff] }
 0x1ba   :  { %3229 = vmatprep.subr.mxu0 %v7072_v39  ;;  %3398 = vmatprep.subr.mxu1 %v7072_v39  ;;  %v1785_v17 = vadd.f32 %v1784_v27, %v1422_v59  ;;  %v1183_v32 = vadd.f32 %v7312_v6, %v908_v24  ;;  %v7314_v19 = vand.u32 4294901760, %v7313_v48  ;;  %v7317_v29 = vld [vmem:[#allocation151_spill] sm:$0xff]  ;;  %v7320_v59 = vld [vmem:[#allocation8_spill] sm:$0xff] }
 0x1bb   :  { %2866 = vmatprep.mubr.f32.mxu0 %v7301_v23  ;;  %3072 = vmatprep.mubr.f32.mxu1 %v7302_v60  ;;  %v1798_v46 = vpop.f32.mrf.mxu0  ;;  %3577 = vst [vmem:[%s6253_s2 + $0x8] sm:$0xff] %v1996_v62  ;;  %v1432_v27 = vadd.f32 %v5663_v26, %v1181_v50  ;;  %v7318_v23 = vld [vmem:[#allocation10_spill] sm:$0xff]  ;;  %v7319_v60 = vld [vmem:[#allocation20_spill] sm:$0xff]  ;;  %v7328_v50 = vand.u32 4294901760, %v5392_v43 }
 0x1bc   :  { %3233 = vmatpush2.msra.mxu0 %v7306_v36  ;;  %3400 = vmatpush1.msra.mxu1 %v7307_v47  ;;  %v2001_v10 = vpop.f32.mrf.mxu1  ;;  %v1434_v63 = vadd.f32 %v5671_v56, %v1183_v32  ;;  %v916_v26 = vadd.f32 %v7319_v60, %v7318_v23  ;;  %v7323_v24 = vld [vmem:[#allocation164_spill] sm:$0xff]  ;;  %v7325_v56 = vld [vmem:[#allocation18_spill] sm:$0xff]  ;;  %v7331_v32 = vld [vmem:[#allocation159_spill] sm:$0xff] }
 0x1bd   :  { %2869 = vmatmul.mubr.f32.gmra.mxu0 %v7308_v61  ;;  %3076 = vmatmul.mubr.f32.gmra.mxu1 %v7309_v22  ;;  %v2002_v13 = vadd.f32 %v2001_v10, %v1783_v51  ;;  %v1800_v41 = vpop.f32.mrf.mxu0  ;;  %v1791_v1 = vadd.f32 %v1790_v35, %v1432_v27  ;;  %v7321_v51 = vand.u32 4294901760, %v7320_v59  ;;  %v7326_v35 = vld [vmem:[#allocation64_spill] sm:$0xff]  ;;  %v7327_v22 = vld [vmem:[#allocation66_spill] sm:$0xff]  ;;  %v7334_v27 = vand.u32 4294901760, %v5403_v11 }
 0x1be   :  { %3234 = vmatprep.subr.mxu0 %v7072_v39  ;;  %3401 = vmatprep.subr.mxu1 %v7072_v39  ;;  %v2003_v14 = vpop.f32.mrf.mxu1  ;;  %v1191_v36 = vadd.f32 %v7326_v35, %v7325_v56  ;;  %v1793_v47 = vadd.f32 %v1792_v2, %v1434_v63  ;;  %v1193_v15 = vadd.f32 %v7327_v22, %v916_v26  ;;  %v7330_v6 = vld [vmem:[#allocation168_spill] sm:$0xff]  ;;  %v7339_v11 = vld [vmem:[#allocation70_spill] sm:$0xff] }
 0x1bf   :  { %3238 = vmatpush2.msra.mxu0 %v7314_v19  ;;  %3403 = vmatpush1.msra.mxu1 %v7315_v49  ;;  %v2004_v40 = vadd.f32 %v2003_v14, %v1785_v17  ;;  %3579 = vst [vmem:[%s6253_s2 + $0x18] sm:$0xff] %v2002_v13  ;;  %v7329_v17 = vld [vmem:[#allocation5_spill] sm:$0xff]  ;;  %v7332_v19 = vld [vmem:[#allocation14_spill] sm:$0xff]  ;;  %v7333_v49 = vld [vmem:[#allocation48_spill] sm:$0xff] }
 0x1c0   :  { %3239 = vmatprep.subr.mxu0 %v7072_v39  ;;  %3418 = vmatprep.subr.mxu1 %v7072_v39  ;;  %v1444_v2 = vadd.f32 %v5683_v4, %v1191_v36  ;;  %v1446_v14 = vadd.f32 %v5691_v21, %v1193_v15  ;;  %v924_v4 = vadd.f32 %v7333_v49, %v7332_v19  ;;  %v7337_v21 = vld [vmem:[#allocation46_spill] sm:$0xff]  ;;  %v7340_v59 = vld [vmem:[#allocation16_spill] sm:$0xff] }
 0x1c1   :  { %2875 = vmatprep.mubr.f32.mxu0 %v7316_v44  ;;  %3083 = vmatprep.mubr.f32.mxu1 %v7317_v29  ;;  %v1806_v62 = vpop.f32.mrf.mxu0  ;;  %3580 = vst [vmem:[%s6253_s2 + $0x20] sm:$0xff] %v2004_v40  ;;  %v7335_v44 = vld [vmem:[#allocation169_spill] sm:$0xff]  ;;  %v7336_v29 = vld [vmem:[#allocation162_spill] sm:$0xff]  ;;  %v7355_v19 = vld [vmem:[#allocation84_spill] sm:$0xff] }
 0x1c2   :  { %3243 = vmatpush2.msra.mxu0 %v7321_v51  ;;  %3420 = vmatpush2.msra.mxu1 %v7322_v8  ;;  %v2009_v53 = vpop.f32.mrf.mxu1  ;;  %v1799_v48 = vadd.f32 %v1798_v46, %v1444_v2  ;;  %v7338_v46 = vld [vmem:[#allocation68_spill] sm:$0xff]  ;;  %v7341_v51 = vand.u32 4294901760, %v7340_v59  ;;  %v7342_v8 = vld [vmem:[#allocation11_spill] sm:$0xff]  ;;  %v7348_v15 = vld [vmem:[#allocation74_spill] sm:$0xff] }
 0x1c3   :  { %2878 = vmatmul.mubr.f32.gmra.mxu0 %v7323_v24  ;;  %3087 = vmatmul.mubr.f32.gmra.mxu1 %v7324_v18  ;;  %v2010_v10 = vadd.f32 %v2009_v53, %v1791_v1  ;;  %v1808_v61 = vpop.f32.mrf.mxu0  ;;  %v1201_v63 = vadd.f32 %v7338_v46, %v7337_v21  ;;  %v1801_v1 = vadd.f32 %v1800_v41, %v1446_v14  ;;  %v7343_v24 = vld [vmem:[#allocation28_spill] sm:$0xff]  ;;  %v7344_v18 = vld [vmem:[#allocation42_spill] sm:$0xff]  ;;  %v7351_v2 = vld [vmem:[#allocation75_spill] sm:$0xff] }
 0x1c4   :  { %3244 = vmatprep.subr.mxu0 %v7072_v39  ;;  %3421 = vmatprep.subr.mxu1 %v7072_v39  ;;  %v2011_v12 = vpop.f32.mrf.mxu1  ;;  %v7345_v56 = vand.u32 4294901760, %v7344_v18  ;;  %v7367_v18 = vld [vmem:[#allocation93_spill] sm:$0xff] }
 0x1c5   :  { %3248 = vmatpush2.msra.mxu0 %v7328_v50  ;;  %3423 = vmatpush2.msra.mxu1 %v7329_v17  ;;  %v2012_v13 = vadd.f32 %v2011_v12, %v1793_v47  ;;  %3582 = vst [vmem:[%s6253_s2 + $0x30] sm:$0xff] %v2010_v10  ;;  %v1456_v41 = vadd.f32 %v5703_v9, %v1201_v63  ;;  %v7346_v10 = vld [vmem:[#allocation44_spill] sm:$0xff]  ;;  %v7349_v12 = vld [vmem:[#allocation17_spill] sm:$0xff]  ;;  %v7350_v17 = vld [vmem:[#allocation167_spill] sm:$0xff] }
 0x1c6   :  { %3249 = vmatprep.subr.mxu0 %v7072_v39  ;;  %3424 = vmatprep.subr.mxu1 %v7072_v39  ;;  %v7347_v9 = vld [vmem:[#allocation24_spill] sm:$0xff] }
 0x1c7   :  { %2884 = vmatprep.mubr.f32.mxu0 %v7330_v6  ;;  %3094 = vmatprep.mubr.f32.mxu1 %v7331_v32  ;;  %v1814_v43 = vpop.f32.mrf.mxu0  ;;  %3583 = vst [vmem:[%s6253_s2 + $0x38] sm:$0xff] %v2012_v13  ;;  %v1807_v36 = vadd.f32 %v1806_v62, %v1456_v41  ;;  %v932_v22 = vadd.f32 %v7347_v9, %v7346_v10  ;;  %v7352_v13 = vld [vmem:[#allocation23_spill] sm:$0xff]  ;;  %v7365_v41 = vld [vmem:[#allocation94_spill] sm:$0xff] }
 0x1c8   :  { %3253 = vmatpush2.msra.mxu0 %v7334_v27  ;;  %3426 = vmatpush2.msra.mxu1 %v7220_v54  ;;  %v2017_v40 = vpop.f32.mrf.mxu1  ;;  %v1203_v54 = vadd.f32 %v7339_v11, %v924_v4  ;;  %v7356_v27 = vld [vmem:[#allocation81_spill] sm:$0xff]  ;;  %v7369_v9 = vld [vmem:[#allocation50_spill] sm:$0xff] }
 0x1c9   :  { %2887 = vmatmul.mubr.f32.gmra.mxu0 %v7335_v44  ;;  %3098 = vmatmul.mubr.f32.gmra.mxu1 %v7336_v29  ;;  %v2018_v23 = vadd.f32 %v2017_v40, %v1799_v48  ;;  %v1816_v60 = vpop.f32.mrf.mxu0  ;;  %v7354_v48 = vld [vmem:[#allocation67_spill] sm:$0xff]  ;;  %v1213_v49 = vadd.f32 %v7355_v19, %v932_v22  ;;  %v7357_v44 = vld [vmem:[#allocation34_spill] sm:$0xff]  ;;  %v7361_v11 = vld [vmem:[#allocation69_spill] sm:$0xff] }
 0x1ca   :  { %3254 = vmatprep.subr.mxu0 %v7072_v39  ;;  %3427 = vmatprep.subr.mxu1 %v7072_v39  ;;  %v2019_v26 = vpop.f32.mrf.mxu1  ;;  %v1458_v35 = vadd.f32 %v5711_v33, %v1203_v54  ;;  %v7353_v33 = vld [vmem:[#allocation83_spill] sm:$0xff]  ;;  %v7358_v29 = vld [vmem:[#allocation82_spill] sm:$0xff]  ;;  %v7370_v22 = vld [vmem:[#allocation56_spill] sm:$0xff] }
 0x1cb   :  { %3258 = vmatpush2.msra.mxu0 %v7341_v51  ;;  %3429 = vmatpush2.msra.mxu1 %v7342_v8  ;;  %v2020_v53 = vadd.f32 %v2019_v26, %v1801_v1  ;;  %3585 = vst [vmem:[%s6253_s2 + $0x48] sm:$0xff] %v2018_v23  ;;  %v1211_v62 = vadd.f32 %v7353_v33, %v7352_v13  ;;  %v7360_v1 = vld [vmem:[#allocation54_spill] sm:$0xff]  ;;  %v7363_v26 = vld [vmem:[#allocation52_spill] sm:$0xff]  ;;  %v7374_v33 = vld [vmem:[#allocation111_spill] sm:$0xff] }
 0x1cc   :  { %3259 = vmatprep.subr.mxu0 %v7072_v39  ;;  %3430 = vmatprep.subr.mxu1 %v7072_v39  ;;  %v1809_v6 = vadd.f32 %v1808_v61, %v1458_v35  ;;  %v1470_v21 = vadd.f32 %v5733_v34, %v1213_v49  ;;  %v7362_v54 = vld [vmem:[#allocation90_spill] sm:$0xff]  ;;  %v7364_v34 = vld [vmem:[#allocation92_spill] sm:$0xff]  ;;  %v7368_v35 = vld [vmem:[#allocation97_spill] sm:$0xff] }
 0x1cd   :  { %3105 = vmatprep.mubr.f32.mxu1 %v7343_v24  ;;  %3263 = vmatpush2.msra.mxu0 %v7345_v56  ;;  %v1822_v47 = vpop.f32.mrf.mxu0  ;;  %3586 = vst [vmem:[%s6253_s2 + $0x50] sm:$0xff] %v2020_v53  ;;  %v1468_v40 = vadd.f32 %v5724_v38, %v1211_v62 }
 0x1ce   :  { %3265 = vmatprep.mubr.f32.mxu0 %v7348_v15  ;;  %3432 = vmatpush2.msra.mxu1 %v7349_v12  ;;  %v2025_v50 = vpop.f32.mrf.mxu1  ;;  %v1817_v59 = vadd.f32 %v1816_v60, %v1470_v21  ;;  %v7371_v12 = vld [vmem:[#allocation26_spill] sm:$0xff] }
 0x1cf   :  { %3109 = vmatmul.mubr.f32.gmra.mxu1 %v7350_v17  ;;  %3267 = vmatmul.mubr.f32.vlgmr.msra.gmra.mxu0 %v7351_v2  ;;  %v2026_v32 = vadd.f32 %v2025_v50, %v1807_v36  ;;  %v1824_v14 = vpop.f32.mrf.mxu0  ;;  %v1815_v46 = vadd.f32 %v1814_v43, %v1468_v40  ;;  %v1221_v43 = vadd.f32 %v7364_v34, %v7363_v26  ;;  %v7379_v21 = vld [vmem:[#allocation58_spill] sm:$0xff]  ;;  %v7383_v26 = vld [vmem:[#allocation116_spill] sm:$0xff] }
 0x1d0   :  { %3433 = vmatprep.subr.mxu1 %v7072_v39  ;;  %3116 = vmatprep.mubr.f32.mxu1 %v7354_v48  ;;  %v2027_v4 = vpop.f32.mrf.mxu1 }
 0x1d1   :  { %3435 = vmatpush2.msra.mxu1 %v7229_v16  ;;  %3272 = vmatprep.mubr.f32.mxu0 %v7356_v27  ;;  %v2028_v61 = vadd.f32 %v2027_v4, %v1809_v6  ;;  %3588 = vst [vmem:[%s6253_s2 + $0x60] sm:$0xff] %v2026_v32  ;;  %v7359_v16 = vld [vmem:[#allocation22_spill] sm:$0xff]  ;;  %v1480_v56 = vadd.f32 %v5746_v55, %v1221_v43  ;;  %v7375_v6 = vld [vmem:[#allocation100_spill] sm:$0xff]  ;;  %v7376_v4 = vld [vmem:[#allocation25_spill] sm:$0xff] }
 0x1d2   :  { %3436 = vmatprep.subr.mxu1 %v7072_v39  ;;  %v940_v23 = vadd.f32 %v7360_v1, %v7359_v16  ;;  %v7372_v55 = vld [vmem:[#allocation102_spill] sm:$0xff] }
 0x1d3   :  { %3438 = vmatpush2.msra.mxu1 %v7357_v44  ;;  %3274 = vmatmul.mubr.f32.gmra.mxu0 %v7358_v29  ;;  %v1830_v63 = vpop.f32.mrf.mxu0  ;;  %3589 = vst [vmem:[%s6253_s2 + $0x68] sm:$0xff] %v2028_v61  ;;  %v1823_v36 = vadd.f32 %v1822_v47, %v1480_v56  ;;  %v1231_v50 = vadd.f32 %v7372_v55, %v7371_v12  ;;  %v7378_v61 = vld [vmem:[#allocation101_spill] sm:$0xff]  ;;  %v7386_v56 = vld [vmem:[#allocation128_spill] sm:$0xff]  ;;  %v7389_v12 = vld [vmem:[#allocation142_spill] sm:$0xff] }
 0x1d4   :  { %3120 = vmatmul.mubr.f32.gmra.mxu1 %v7361_v11  ;;  %3439 = vmatprep.subr.mxu1 %v7072_v39  ;;  %v2033_v38 = vpop.f32.mrf.mxu1  ;;  %v1223_v53 = vadd.f32 %v7365_v41, %v940_v23  ;;  %v7381_v23 = vld [vmem:[#allocation119_spill] sm:$0xff]  ;;  %v7384_v41 = vld [vmem:[#allocation118_spill] sm:$0xff] }
 0x1d5   :  { %3441 = vmatpush2.msra.mxu1 %v7236_v25  ;;  %3279 = vmatprep.mubr.f32.mxu0 %v7362_v54  ;;  %v2034_v51 = vadd.f32 %v2033_v38, %v1815_v46  ;;  %v1832_v8 = vpop.f32.mrf.mxu0  ;;  %v7366_v25 = vld [vmem:[#allocation38_spill] sm:$0xff]  ;;  %v1492_v32 = vadd.f32 %v5764_v52, %v1231_v50  ;;  %v1241_v52 = vadd.f32 %v5742_v45, %v7379_v21  ;;  %v7380_v46 = vld [vmem:[#allocation107_spill] sm:$0xff] }
 0x1d6   :  { %3442 = vmatprep.subr.mxu1 %v7072_v39  ;;  %3446 = vmatprep.mubr.f32.mxu1 %v7348_v15  ;;  %v2035_v24 = vpop.f32.mrf.mxu1  ;;  %v1482_v39 = vadd.f32 %v5755_v28, %v1223_v53  ;;  %v948_v15 = vadd.f32 %v7370_v22, %v7369_v9  ;;  %v7382_v45 = vld [vmem:[#allocation110_spill] sm:$0xff] }
 0x1d7   :  { %3444 = vmatpush2.msra.mxu1 %v7366_v25  ;;  %3281 = vmatmul.mubr.f32.gmra.mxu0 %v7367_v18  ;;  %v2036_v60 = vadd.f32 %v2035_v24, %v1817_v59  ;;  %3591 = vst [vmem:[%s6253_s2 + $0x78] sm:$0xff] %v2034_v51  ;;  %v1831_v49 = vadd.f32 %v1830_v63, %v1492_v32 }
 0x1d8   :  { %3448 = vmatmul.mubr.f32.vlgmr.msra.gmra.mxu1 %v7351_v2  ;;  %3286 = vmatprep.mubr.f32.mxu0 %v7368_v35  ;;  %v7373_v2 = vld [vmem:[#allocation98_spill] sm:$0xff]  ;;  %v1825_v13 = vadd.f32 %v1824_v14, %v1482_v39  ;;  %v1233_v62 = vadd.f32 %v7374_v33, %v948_v15  ;;  %v1504_v38 = vadd.f32 %v5783_v5, %v1241_v52  ;;  %v7388_v15 = vld [vmem:[#allocation136_spill] sm:$0xff] }
 0x1d9   :  { %3453 = vmatprep.mubr.f32.mxu1 %v7356_v27  ;;  %v1838_v10 = vpop.f32.mrf.mxu0  ;;  %3592 = vst [vmem:[%s6253_s2 + $0x80] sm:$0xff] %v2036_v60  ;;  %v7377_v27 = vld [vmem:[#allocation29_spill] sm:$0xff]  ;;  %v7387_v39 = vld [vmem:[#allocation134_spill] sm:$0xff] }
 0x1da   :  { %v2041_v17 = vpop.f32.mrf.mxu1  ;;  %v1494_v14 = vadd.f32 %v5772_v37, %v1233_v62  ;;  %v956_v40 = vadd.f32 %v7377_v27, %v7376_v4  ;;  %v1839_v43 = vadd.f32 %v1838_v10, %v1504_v38  ;;  %v7394_v27 = vld [vmem:[#allocation160_spill] sm:$0xff] }
 0x1db   :  { %3288 = vmatmul.mubr.f32.gmra.mxu0 %v7373_v2  ;;  %v2042_v28 = vadd.f32 %v2041_v17, %v1823_v36  ;;  %v1840_v47 = vpop.f32.mrf.mxu0 }
 0x1dc   :  { %3455 = vmatmul.mubr.f32.gmra.mxu1 %v7358_v29  ;;  %3293 = vmatprep.mubr.f32.mxu0 %v7375_v6  ;;  %v2043_v48 = vpop.f32.mrf.mxu1  ;;  %v1833_v37 = vadd.f32 %v1832_v8, %v1494_v14  ;;  %v1243_v11 = vadd.f32 %v7381_v23, %v956_v40 }
 0x1dd   :  { %3460 = vmatprep.mubr.f32.mxu1 %v7362_v54  ;;  %v2044_v19 = vadd.f32 %v2043_v48, %v1825_v13  ;;  %3594 = vst [vmem:[%s6253_s2 + $0x90] sm:$0xff] %v2042_v28  ;;  %v7390_v13 = vld [vmem:[#allocation144_spill] sm:$0xff]  ;;  %v7393_v48 = vld [vmem:[#allocation158_spill] sm:$0xff] }
 0x1de   :  { %v1506_v34 = vadd.f32 %v5791_v3, %v1243_v11  ;;  %v7385_v3 = vld [vmem:[#allocation126_spill] sm:$0xff] }
 0x1df   :  { %3295 = vmatmul.mubr.f32.gmra.mxu0 %v7378_v61  ;;  %v1846_v44 = vpop.f32.mrf.mxu0  ;;  %v2049_v29 = vpop.f32.mrf.mxu1  ;;  %3595 = vst [vmem:[%s6253_s2 + $0x98] sm:$0xff] %v2044_v19 }
 0x1e0   :  { %3462 = vmatmul.mubr.f32.gmra.mxu1 %v7367_v18  ;;  %3300 = vmatprep.mubr.f32.mxu0 %v7380_v46  ;;  %v2050_v63 = vadd.f32 %v2049_v29, %v1831_v49  ;;  %v1841_v8 = vadd.f32 %v1840_v47, %v1506_v34  ;;  %v1847_v18 = vadd.f32 %v1846_v44, %v5807_v58 }
 0x1e1   :  { %3467 = vmatprep.mubr.f32.mxu1 %v7368_v35  ;;  %v1848_v16 = vpop.f32.mrf.mxu0  ;;  %v2051_v1 = vpop.f32.mrf.mxu1 }
 0x1e2   :  { %v2052_v54 = vadd.f32 %v2051_v1, %v1833_v37  ;;  %3597 = vst [vmem:[%s6253_s2 + $0xa8] sm:$0xff] %v2050_v63  ;;  %v1849_v36 = vadd.f32 %v1848_v16, %v5814_v20 }
 0x1e3   :  { %3302 = vmatmul.mubr.f32.gmra.mxu0 %v7382_v45 }
 0x1e4   :  { %3469 = vmatmul.mubr.f32.gmra.mxu1 %v7373_v2  ;;  %3307 = vmatprep.mubr.f32.mxu0 %v7383_v26  ;;  %3598 = vst [vmem:[%s6253_s2 + $0xb0] sm:$0xff] %v2052_v54 }
 0x1e5   :  { %3474 = vmatprep.mubr.f32.mxu1 %v7375_v6  ;;  %v1854_v59 = vpop.f32.mrf.mxu0  ;;  %v2057_v51 = vpop.f32.mrf.mxu1 }
 0x1e6   :  { %v2058_v5 = vadd.f32 %v2057_v51, %v1839_v43  ;;  %v1855_v55 = vadd.f32 %v1854_v59, %v5828_v7  ;;  %v7391_v7 = vld [vmem:[#allocation150_spill] sm:$0xff] }
 0x1e7   :  { %3309 = vmatmul.mubr.f32.gmra.mxu0 %v7384_v41  ;;  %v1856_v53 = vpop.f32.mrf.mxu0  ;;  %v2059_v24 = vpop.f32.mrf.mxu1 }
 0x1e8   :  { %3476 = vmatmul.mubr.f32.gmra.mxu1 %v7378_v61  ;;  %3314 = vmatprep.mubr.f32.mxu0 %v7385_v3  ;;  %v2060_v25 = vadd.f32 %v2059_v24, %v1841_v8  ;;  %3600 = vst [vmem:[%s6253_s2 + $0xc0] sm:$0xff] %v2058_v5  ;;  %v1857_v17 = vadd.f32 %v1856_v53, %v5835_v57  ;;  %v7392_v57 = vld [vmem:[#allocation152_spill] sm:$0xff]  ;;  %v7395_v61 = vld [vmem:[#allocation165_spill] sm:$0xff] }
 0x1e9   :  { %3481 = vmatprep.mubr.f32.mxu1 %v7380_v46  ;;  %v7396_v46 = vld [vmem:[#allocation60_spill] sm:$0xff] }
 0x1ea   :  { %3601 = vst [vmem:[%s6253_s2 + $0xc8] sm:$0xff] %v2060_v25 }
 0x1eb   :  { %3316 = vmatmul.mubr.f32.gmra.mxu0 %v7386_v56  ;;  %v1862_v60 = vpop.f32.mrf.mxu0  ;;  %v2065_v35 = vpop.f32.mrf.mxu1 }
 0x1ec   :  { %3483 = vmatmul.mubr.f32.gmra.mxu1 %v7382_v45  ;;  %3321 = vmatprep.mubr.f32.mxu0 %v7387_v39  ;;  %v2066_v10 = vadd.f32 %v2065_v35, %v1847_v18  ;;  %v1863_v62 = vadd.f32 %v1862_v60, %v5848_v30 }
 0x1ed   :  { %3488 = vmatprep.mubr.f32.mxu1 %v7383_v26  ;;  %v1864_v58 = vpop.f32.mrf.mxu0  ;;  %v2067_v9 = vpop.f32.mrf.mxu1 }
 0x1ee   :  { %v2068_v22 = vadd.f32 %v2067_v9, %v1849_v36  ;;  %3603 = vst [vmem:[%s6253_s2 + $0xd8] sm:$0xff] %v2066_v10  ;;  %v1865_v19 = vadd.f32 %v1864_v58, %v5855_v42 }
 0x1ef   :  { %3323 = vmatmul.mubr.f32.gmra.mxu0 %v7388_v15 }
 0x1f0   :  { %3490 = vmatmul.mubr.f32.gmra.mxu1 %v7384_v41  ;;  %3328 = vmatprep.mubr.f32.mxu0 %v7389_v12  ;;  %3604 = vst [vmem:[%s6253_s2 + $0xe0] sm:$0xff] %v2068_v22 }
 0x1f1   :  { %3495 = vmatprep.mubr.f32.mxu1 %v7385_v3  ;;  %v1870_v20 = vpop.f32.mrf.mxu0  ;;  %v2073_v50 = vpop.f32.mrf.mxu1 }
 0x1f2   :  { %v2074_v2 = vadd.f32 %v2073_v50, %v1855_v55  ;;  %v1871_v40 = vadd.f32 %v1870_v20, %v5870_v31 }
 0x1f3   :  { %3330 = vmatmul.mubr.f32.gmra.mxu0 %v7390_v13  ;;  %v1872_v28 = vpop.f32.mrf.mxu0  ;;  %v2075_v47 = vpop.f32.mrf.mxu1 }
 0x1f4   :  { %3497 = vmatmul.mubr.f32.gmra.mxu1 %v7386_v56  ;;  %3335 = vmatprep.mubr.f32.mxu0 %v7391_v7  ;;  %v2076_v33 = vadd.f32 %v2075_v47, %v1857_v17  ;;  %3606 = vst [vmem:[%s6253_s2 + $0xf0] sm:$0xff] %v2074_v2  ;;  %v1873_v29 = vadd.f32 %v1872_v28, %v5879_v0 }
 0x1f5   :  { %3502 = vmatprep.mubr.f32.mxu1 %v7387_v39 }
 0x1f6   :  { %3607 = vst [vmem:[%s6253_s2 + $0xf8] sm:$0xff] %v2076_v33 }
 0x1f7   :  { %3337 = vmatmul.mubr.f32.gmra.mxu0 %v7392_v57  ;;  %v2081_v6 = vpop.f32.mrf.mxu1  ;;  %v2195_v32 = vpop.f32.mrf.mxu0 }
 0x1f8   :  { %3504 = vmatmul.mubr.f32.gmra.mxu1 %v7388_v15  ;;  %3342 = vmatprep.mubr.f32.mxu0 %v7393_v48  ;;  %v2082_v14 = vadd.f32 %v2081_v6, %v1863_v62 }
 0x1f9   :  { %3509 = vmatprep.mubr.f32.mxu1 %v7389_v12  ;;  %v2083_v30 = vpop.f32.mrf.mxu1  ;;  %v2197_v49 = vpop.f32.mrf.mxu0 }
 0x1fa   :  { %v2084_v4 = vadd.f32 %v2083_v30, %v1865_v19  ;;  %3609 = vst [vmem:[%s6253_s2 + $0x108] sm:$0xff] %v2082_v14 }
 0x1fb   :  { %3344 = vmatmul.mubr.f32.gmra.mxu0 %v7394_v27 }
 0x1fc   :  { %3511 = vmatmul.mubr.f32.gmra.mxu1 %v7390_v13  ;;  %3349 = vmatprep.mubr.f32.mxu0 %v7395_v61  ;;  %v2089_v42 = vpop.f32.mrf.mxu1  ;;  %v2210_v44 = vpop.f32.mrf.mxu0  ;;  %3610 = vst [vmem:[%s6253_s2 + $0x110] sm:$0xff] %v2084_v4 }
 0x1fd   :  { %3516 = vmatprep.mubr.f32.mxu1 %v7391_v7  ;;  %v2090_v21 = vadd.f32 %v2089_v42, %v1871_v40 }
 0x1fe   :  { %v2091_v31 = vpop.f32.mrf.mxu1  ;;  %v2212_v52 = vpop.f32.mrf.mxu0 }
 0x1ff   :  { %3351 = vmatmul.mubr.f32.gmra.mxu0 %v7396_v46  ;;  %v2092_v37 = vadd.f32 %v2091_v31, %v1873_v29  ;;  %3612 = vst [vmem:[%s6253_s2 + $0x120] sm:$0xff] %v2090_v21 }
 0x200   :  { %3518 = vmatmul.mubr.f32.gmra.mxu1 %v7392_v57 }
 0x201   :  { %3523 = vmatprep.mubr.f32.mxu1 %v7393_v48  ;;  %3613 = vst [vmem:[%s6253_s2 + $0x128] sm:$0xff] %v2092_v37 }
 0x202   :  { %v2225_v63 = vpop.f32.mrf.mxu0  ;;  %v2572_v0 = vpop.f32.mrf.mxu1 }
 0x203   :  { %v2573_v16 = vadd.f32 %v2572_v0, %v2195_v32 }
 0x204   :  { %3525 = vmatmul.mubr.f32.gmra.mxu1 %v7394_v27  ;;  %v2227_v1 = vpop.f32.mrf.mxu0  ;;  %v2574_v23 = vpop.f32.mrf.mxu1 }
 0x205   :  { %3530 = vmatprep.mubr.f32.mxu1 %v7395_v61 }
 0x207   :  { %v2240_v11 = vpop.f32.mrf.mxu0 }
 0x208   :  { %3532 = vmatmul.mubr.f32.gmra.mxu1 %v7396_v46  ;;  %v2579_v38 = vpop.f32.mrf.mxu1 }
 0x209   :  { %v2580_v54 = vadd.f32 %v2579_v38, %v2210_v44  ;;  %v2242_v45 = vpop.f32.mrf.mxu0 }
 0x20a   :  { %v2581_v26 = vpop.f32.mrf.mxu1 }
 0x20d   :  { %v2255_v34 = vpop.f32.mrf.mxu0 }
 0x20e   :  { %v2586_v43 = vpop.f32.mrf.mxu1 }
 0x20f   :  { %v2587_v59 = vadd.f32 %v2586_v43, %v2225_v63  ;;  %v2257_v51 = vpop.f32.mrf.mxu0 }
 0x210   :  { %v2588_v8 = vpop.f32.mrf.mxu1 }
 0x213   :  { %v2270_v5 = vpop.f32.mrf.mxu0 }
 0x214   :  { %v2593_v41 = vpop.f32.mrf.mxu1 }
 0x215   :  { %v2594_v53 = vadd.f32 %v2593_v41, %v2240_v11  ;;  %v2272_v24 = vpop.f32.mrf.mxu0 }
 0x216   :  { %v2595_v3 = vpop.f32.mrf.mxu1 }
 0x219   :  { %v2285_v25 = vpop.f32.mrf.mxu0 }
 0x21a   :  { %v2600_v18 = vpop.f32.mrf.mxu1 }
 0x21b   :  { %v2601_v56 = vadd.f32 %v2600_v18, %v2255_v34  ;;  %v2287_v60 = vpop.f32.mrf.mxu0 }
 0x21c   :  { %v2602_v35 = vpop.f32.mrf.mxu1 }
 0x21f   :  { %v2300_v39 = vpop.f32.mrf.mxu0 }
 0x220   :  { %v2607_v36 = vpop.f32.mrf.mxu1 }
 0x221   :  { %v2608_v10 = vadd.f32 %v2607_v36, %v2270_v5  ;;  %v2302_v58 = vpop.f32.mrf.mxu0 }
 0x222   :  { %v2609_v9 = vpop.f32.mrf.mxu1 }
 0x225   :  { %v2315_v22 = vpop.f32.mrf.mxu0 }
 0x226   :  { %v2614_v15 = vpop.f32.mrf.mxu1 }
 0x227   :  { %v2615_v12 = vadd.f32 %v2614_v15, %v2285_v25  ;;  %v2317_v55 = vpop.f32.mrf.mxu0 }
 0x228   :  { %v2616_v20 = vpop.f32.mrf.mxu1 }
 0x22b   :  { %v2330_v50 = vpop.f32.mrf.mxu0  ;;  %v2621_v17 = vpop.f32.mrf.mxu1 }
 0x22c   :  { %v2622_v2 = vadd.f32 %v2621_v17, %v2300_v39 }
 0x22d   :  { %v2332_v13 = vpop.f32.mrf.mxu0  ;;  %v2623_v28 = vpop.f32.mrf.mxu1 }
 0x231   :  { %v2345_v47 = vpop.f32.mrf.mxu0  ;;  %v2628_v7 = vpop.f32.mrf.mxu1 }
 0x232   :  { %v2629_v33 = vadd.f32 %v2628_v7, %v2315_v22 }
 0x233   :  { %v2347_v62 = vpop.f32.mrf.mxu0  ;;  %v2630_v57 = vpop.f32.mrf.mxu1 }
 0x237   :  { %v2360_v6 = vpop.f32.mrf.mxu0  ;;  %v2635_v32 = vpop.f32.mrf.mxu1 }
 0x238   :  { %v6149_v48 = vadd.f32 %v2635_v32, %v2330_v50 }
 0x239   :  { %v2362_v19 = vpop.f32.mrf.mxu0  ;;  %v2637_v14 = vpop.f32.mrf.mxu1 }
 0x23d   :  { %v2375_v30 = vpop.f32.mrf.mxu0  ;;  %v2642_v49 = vpop.f32.mrf.mxu1 }
 0x23e   :  { %v6151_v4 = vadd.f32 %v2642_v49, %v2345_v47 }
 0x23f   :  { %v2377_v27 = vpop.f32.mrf.mxu0  ;;  %v2644_v40 = vpop.f32.mrf.mxu1 }
 0x243   :  { %v2649_v61 = vpop.f32.mrf.mxu1  ;;  %v2780_v42 = vpop.f32.mrf.mxu0 }
 0x244   :  { %v6153_v44 = vadd.f32 %v2649_v61, %v2360_v6  ;;  %v2781_v29 = vadd.f32 %v2780_v42, %v2573_v16 }
 0x245   :  { %v2651_v21 = vpop.f32.mrf.mxu1  ;;  %v2782_v31 = vpop.f32.mrf.mxu0 }
 0x248   :  { %v2656_v52 = vpop.f32.mrf.mxu1  ;;  %v2789_v46 = vpop.f32.mrf.mxu0 }
 0x249   :  { %v6155_v37 = vadd.f32 %v2656_v52, %v2375_v30  ;;  %v2790_v63 = vadd.f32 %v2789_v46, %v2580_v54 }
 0x24a   :  { %v2658_v0 = vpop.f32.mrf.mxu1  ;;  %v2791_v1 = vpop.f32.mrf.mxu0 }
 0x24e   :  { %v2798_v23 = vpop.f32.mrf.mxu0  ;;  %v2989_v11 = vpop.f32.mrf.mxu1 }
 0x24f   :  { %v2799_v38 = vadd.f32 %v2798_v23, %v2587_v59  ;;  %v2990_v45 = vadd.f32 %v2989_v11, %v2781_v29 }
 0x250   :  { %v2800_v26 = vpop.f32.mrf.mxu0  ;;  %v2991_v34 = vpop.f32.mrf.mxu1 }
 0x253   :  { %v2807_v43 = vpop.f32.mrf.mxu0 }
 0x254   :  { %v2808_v51 = vadd.f32 %v2807_v43, %v2594_v53  ;;  %v3000_v8 = vpop.f32.mrf.mxu1 }
 0x255   :  { %v3001_v5 = vadd.f32 %v3000_v8, %v2790_v63  ;;  %v2809_v16 = vpop.f32.mrf.mxu0 }
 0x256   :  { %v3002_v41 = vpop.f32.mrf.mxu1 }
 0x259   :  { %v2816_v24 = vpop.f32.mrf.mxu0 }
 0x25a   :  { %v6157_v3 = vadd.f32 %v2816_v24, %v2601_v56  ;;  %v3011_v25 = vpop.f32.mrf.mxu1 }
 0x25b   :  { %v3012_v18 = vadd.f32 %v3011_v25, %v2799_v38  ;;  %v2818_v54 = vpop.f32.mrf.mxu0 }
 0x25c   :  { %v3013_v60 = vpop.f32.mrf.mxu1 }
 0x25f   :  { %v2825_v35 = vpop.f32.mrf.mxu0 }
 0x260   :  { %v6159_v39 = vadd.f32 %v2825_v35, %v2608_v10  ;;  %v3022_v59 = vpop.f32.mrf.mxu1 }
 0x261   :  { %v3023_v36 = vadd.f32 %v3022_v59, %v2808_v51  ;;  %v2827_v58 = vpop.f32.mrf.mxu0 }
 0x262   :  { %v3024_v9 = vpop.f32.mrf.mxu1 }
 0x265   :  { %v2834_v22 = vpop.f32.mrf.mxu0 }
 0x266   :  { %v6161_v53 = vadd.f32 %v2834_v22, %v2615_v12  ;;  %v3033_v15 = vpop.f32.mrf.mxu1 }
 0x267   :  { %v2836_v55 = vpop.f32.mrf.mxu0 }
 0x268   :  { %v3035_v20 = vpop.f32.mrf.mxu1 }
 0x26b   :  { %v2843_v50 = vpop.f32.mrf.mxu0 }
 0x26c   :  { %v6163_v56 = vadd.f32 %v2843_v50, %v2622_v2  ;;  %v6165_v17 = vpop.f32.mrf.mxu1 }
 0x26d   :  { %v2845_v13 = vpop.f32.mrf.mxu0 }
 0x26e   :  { %v3046_v28 = vpop.f32.mrf.mxu1  ;;  %v3034_v13 = vadd.f32 %v3033_v15, %v6157_v3 }
 0x271   :  { %v2852_v47 = vpop.f32.mrf.mxu0 }
 0x272   :  { %v6167_v10 = vadd.f32 %v2852_v47, %v2629_v33  ;;  %v6169_v7 = vpop.f32.mrf.mxu1 }
 0x273   :  { %v2854_v62 = vpop.f32.mrf.mxu0 }
 0x274   :  { %v3057_v57 = vpop.f32.mrf.mxu1 }
 0x277   :  { %v6171_v6 = vpop.f32.mrf.mxu0  ;;  %v6173_v12 = vpop.f32.mrf.mxu1 }
 0x279   :  { %v2863_v32 = vpop.f32.mrf.mxu0  ;;  %v3068_v19 = vpop.f32.mrf.mxu1 }
 0x27a   :  { %v3045_v19 = vadd.f32 %v6165_v17, %v6159_v39 }
 0x27d   :  { %v6175_v14 = vpop.f32.mrf.mxu0  ;;  %v6177_v2 = vpop.f32.mrf.mxu1 }
 0x27f   :  { %v2872_v30 = vpop.f32.mrf.mxu0  ;;  %v3079_v49 = vpop.f32.mrf.mxu1 }
 0x283   :  { %v6179_v27 = vpop.f32.mrf.mxu0  ;;  %v6181_v33 = vpop.f32.mrf.mxu1 }
 0x285   :  { %v2881_v40 = vpop.f32.mrf.mxu0  ;;  %v3090_v61 = vpop.f32.mrf.mxu1 }
 0x286   :  { %v3056_v61 = vadd.f32 %v6169_v7, %v6161_v53 }
 0x289   :  { %v6183_v42 = vpop.f32.mrf.mxu0  ;;  %v6185_v29 = vpop.f32.mrf.mxu1 }
 0x28b   :  { %v2890_v21 = vpop.f32.mrf.mxu0  ;;  %v3101_v31 = vpop.f32.mrf.mxu1 }
 0x28f   :  { %v6187_v52 = vpop.f32.mrf.mxu1  ;;  %v3268_v46 = vpop.f32.mrf.mxu0 }
 0x290   :  { %v3269_v26 = vadd.f32 %v3268_v46, %v2990_v45 }
 0x291   :  { %v3112_v63 = vpop.f32.mrf.mxu1  ;;  %v3270_v0 = vpop.f32.mrf.mxu0 }
 0x292   :  { %v3067_v0 = vadd.f32 %v6173_v12, %v6163_v56  ;;  %v2862_v12 = vadd.f32 %v6171_v6, %v6149_v48 }
 0x293   :  { %v3275_v1 = vpop.f32.mrf.mxu0 }
 0x294   :  { %v6189_v23 = vpop.f32.mrf.mxu1  ;;  %v3276_v41 = vadd.f32 %v3275_v1, %v3001_v5 }
 0x295   :  { %v3277_v11 = vpop.f32.mrf.mxu0 }
 0x296   :  { %v3123_v38 = vpop.f32.mrf.mxu1 }
 0x297   :  { %v3282_v34 = vpop.f32.mrf.mxu0 }
 0x298   :  { %v3449_v43 = vpop.f32.mrf.mxu1  ;;  %v3283_v59 = vadd.f32 %v3282_v34, %v3012_v18  ;;  %v3078_v34 = vadd.f32 %v6177_v2, %v6167_v10 }
 0x299   :  { %v3450_v51 = vadd.f32 %v3449_v43, %v3269_v26  ;;  %v3284_v8 = vpop.f32.mrf.mxu0 }
 0x29a   :  { %v3451_v16 = vpop.f32.mrf.mxu1 }
 0x29b   :  { %v3289_v24 = vpop.f32.mrf.mxu0  ;;  %3578 = vst [vmem:[%s6253_s2 + $0x10] sm:$0xff] %v3450_v51 }
 0x29c   :  { %v3456_v25 = vpop.f32.mrf.mxu1  ;;  %v3290_v5 = vadd.f32 %v3289_v24, %v3023_v36  ;;  %v3089_v24 = vadd.f32 %v6181_v33, %v2862_v12 }
 0x29d   :  { %v3457_v54 = vadd.f32 %v3456_v25, %v3276_v41  ;;  %v3291_v60 = vpop.f32.mrf.mxu0 }
 0x29e   :  { %v3458_v35 = vpop.f32.mrf.mxu1 }
 0x29f   :  { %v3296_v58 = vpop.f32.mrf.mxu0  ;;  %3581 = vst [vmem:[%s6253_s2 + $0x28] sm:$0xff] %v3457_v54  ;;  %v2871_v54 = vadd.f32 %v6175_v14, %v6151_v4 }
 0x2a0   :  { %v3463_v9 = vpop.f32.mrf.mxu1  ;;  %v3297_v62 = vadd.f32 %v3296_v58, %v3034_v13 }
 0x2a1   :  { %v3464_v45 = vadd.f32 %v3463_v9, %v3283_v59  ;;  %v3298_v22 = vpop.f32.mrf.mxu0  ;;  %v3100_v48 = vadd.f32 %v6185_v29, %v2871_v54  ;;  %v2880_v9 = vadd.f32 %v6179_v27, %v6153_v44 }
 0x2a2   :  { %v3465_v55 = vpop.f32.mrf.mxu1 }
 0x2a3   :  { %v3303_v20 = vpop.f32.mrf.mxu0  ;;  %3584 = vst [vmem:[%s6253_s2 + $0x40] sm:$0xff] %v3464_v45  ;;  %v3111_v4 = vadd.f32 %v6187_v52, %v2880_v9 }
 0x2a4   :  { %v3470_v50 = vpop.f32.mrf.mxu1  ;;  %v3304_v15 = vadd.f32 %v3303_v20, %v3045_v19  ;;  %v2889_v20 = vadd.f32 %v6183_v42, %v6155_v37 }
 0x2a5   :  { %v3471_v28 = vadd.f32 %v3470_v50, %v3290_v5  ;;  %v3305_v18 = vpop.f32.mrf.mxu0 }
 0x2a6   :  { %v3472_v47 = vpop.f32.mrf.mxu1 }
 0x2a7   :  { %v3310_v57 = vpop.f32.mrf.mxu0  ;;  %3587 = vst [vmem:[%s6253_s2 + $0x58] sm:$0xff] %v3471_v28  ;;  %v3122_v28 = vadd.f32 %v6189_v23, %v2889_v20 }
 0x2a8   :  { %v3477_v32 = vpop.f32.mrf.mxu1  ;;  %v3311_v17 = vadd.f32 %v3310_v57, %v3056_v61 }
 0x2a9   :  { %v3478_v36 = vadd.f32 %v3477_v32, %v3297_v62  ;;  %v3312_v30 = vpop.f32.mrf.mxu0 }
 0x2aa   :  { %v3479_v3 = vpop.f32.mrf.mxu1 }
 0x2ab   :  { %v3317_v49 = vpop.f32.mrf.mxu0  ;;  %3590 = vst [vmem:[%s6253_s2 + $0x70] sm:$0xff] %v3478_v36 }
 0x2ac   :  { %v3484_v40 = vpop.f32.mrf.mxu1  ;;  %v3318_v7 = vadd.f32 %v3317_v49, %v3067_v0 }
 0x2ad   :  { %v3485_v21 = vadd.f32 %v3484_v40, %v3304_v15  ;;  %v3319_v31 = vpop.f32.mrf.mxu0 }
 0x2ae   :  { %v3486_v39 = vpop.f32.mrf.mxu1 }
 0x2af   :  { %v3324_v46 = vpop.f32.mrf.mxu0  ;;  %3593 = vst [vmem:[%s6253_s2 + $0x88] sm:$0xff] %v3485_v21 }
 0x2b0   :  { %v3491_v63 = vpop.f32.mrf.mxu1  ;;  %v3325_v8 = vadd.f32 %v3324_v46, %v3078_v34 }
 0x2b1   :  { %v3492_v1 = vadd.f32 %v3491_v63, %v3311_v17  ;;  %v3326_v11 = vpop.f32.mrf.mxu0 }
 0x2b2   :  { %v3493_v53 = vpop.f32.mrf.mxu1 }
 0x2b3   :  { %v3331_v38 = vpop.f32.mrf.mxu0  ;;  %3596 = vst [vmem:[%s6253_s2 + $0xa0] sm:$0xff] %v3492_v1 }
 0x2b4   :  { %v3498_v26 = vpop.f32.mrf.mxu1  ;;  %v3332_v60 = vadd.f32 %v3331_v38, %v3089_v24 }
 0x2b5   :  { %v3499_v43 = vadd.f32 %v3498_v26, %v3318_v7  ;;  %v3333_v51 = vpop.f32.mrf.mxu0 }
 0x2b6   :  { %v3500_v56 = vpop.f32.mrf.mxu1 }
 0x2b7   :  { %v3338_v16 = vpop.f32.mrf.mxu0  ;;  %3599 = vst [vmem:[%s6253_s2 + $0xb8] sm:$0xff] %v3499_v43 }
 0x2b8   :  { %v3505_v41 = vpop.f32.mrf.mxu1  ;;  %v3339_v45 = vadd.f32 %v3338_v16, %v3100_v48 }
 0x2b9   :  { %v3506_v10 = vadd.f32 %v3505_v41, %v3325_v8  ;;  %v3340_v2 = vpop.f32.mrf.mxu0 }
 0x2ba   :  { %v3507_v25 = vpop.f32.mrf.mxu1 }
 0x2bb   :  { %v3345_v35 = vpop.f32.mrf.mxu0  ;;  %3602 = vst [vmem:[%s6253_s2 + $0xd0] sm:$0xff] %v3506_v10 }
 0x2bc   :  { %v3512_v59 = vpop.f32.mrf.mxu1  ;;  %v3346_v50 = vadd.f32 %v3345_v35, %v3111_v4 }
 0x2bd   :  { %v3513_v6 = vadd.f32 %v3512_v59, %v3332_v60  ;;  %v3347_v33 = vpop.f32.mrf.mxu0 }
 0x2be   :  { %v3514_v58 = vpop.f32.mrf.mxu1 }
 0x2bf   :  { %v3352_v22 = vpop.f32.mrf.mxu0  ;;  %3605 = vst [vmem:[%s6253_s2 + $0xe8] sm:$0xff] %v3513_v6 }
 0x2c0   :  { %v3519_v55 = vpop.f32.mrf.mxu1  ;;  %v3353_v52 = vadd.f32 %v3352_v22, %v3122_v28 }
 0x2c1   :  { %v3520_v14 = vadd.f32 %v3519_v55, %v3339_v45  ;;  %v3354_v29 = vpop.f32.mrf.mxu0 }
 0x2c2   :  { %v3521_v5 = vpop.f32.mrf.mxu1 }
 0x2c3   :  { %3608 = vst [vmem:[%s6253_s2 + $0x100] sm:$0xff] %v3520_v14 }
 0x2c4   :  { %v3526_v13 = vpop.f32.mrf.mxu1 }
 0x2c5   :  { %v3527_v44 = vadd.f32 %v3526_v13, %v3346_v50 }
 0x2c6   :  { %v3528_v27 = vpop.f32.mrf.mxu1 }
 0x2c7   :  { %3611 = vst [vmem:[%s6253_s2 + $0x118] sm:$0xff] %v3527_v44 }
 0x2c8   :  { %v3533_v18 = vpop.f32.mrf.mxu1 }
 0x2c9   :  { %v3534_v47 = vadd.f32 %v3533_v18, %v3353_v52 }
 0x2ca   :  { %v3535_v62 = vpop.f32.mrf.mxu1 }
 0x2cb   :  { %3614 = vst [vmem:[%s6253_s2 + $0x130] sm:$0xff] %v3534_v47 }
 0x2cc   :  { %3619 = vsyncpa [#allocation3], 1 }

</bundles_post_ra>
